<compile_context>
chip_gen: v7x
topology: tpu7x:2x2x1
jax: 0.10.0
libtpu: 0.0.40
codegen_flags: <defaults>
</compile_context>

<pallas_src>
import jax
import jax.numpy as jnp
from jax.experimental import pallas as pl
from jax.experimental.pallas import tpu as pltpu

FEATURE_DIM = 12
NUM_HEADS = 6
HEAD_DIM = FEATURE_DIM // NUM_HEADS  # = 2 (the reference forward only uses it for the scale)
MLP_DIMS = [(FEATURE_DIM, 160), (160, 320), (320, 640), (640, 640),
            (640, 320), (320, 160), (160, 28)]


def _model_kernel(x_ref,
                  wq_ref, bq_ref, wk_ref, bk_ref, wv_ref, bv_ref, wo_ref, bo_ref,
                  w1_ref, b1_ref, w2_ref, b2_ref, w3_ref, b3_ref, w4_ref, b4_ref,
                  w5_ref, b5_ref, w6_ref, b6_ref, w7_ref, b7_ref,
                  out_ref):
    f32 = jnp.float32
    bf16 = jnp.bfloat16

    x = x_ref[...]                                   # (B, S, D) f32
    B, S, D = x.shape
    x2 = x.reshape(B * S, D)                         # sublane-dense 2-D view for projections

    def linear_f32(h, w_ref, b_ref):                 # f32 x f32 (tiny attention weights)
        return jnp.dot(h, w_ref[...], preferred_element_type=f32) + b_ref[...]

    def linear_bf16(h, w_ref, b_ref):                # bf16 x bf16 on MXU, f32 accumulate
        return (jnp.dot(h.astype(bf16), w_ref[...],
                        preferred_element_type=f32) + b_ref[...])

    # ---- attention (note: the PyTorch forward never splits into heads; head_dim is
    # only used for the 1/sqrt(2) softmax scale) ----
    q = linear_f32(x2, wq_ref, bq_ref).reshape(B, S, D)
    k = linear_f32(x2, wk_ref, bk_ref).reshape(B, S, D)
    v = linear_f32(x2, wv_ref, bv_ref).reshape(B, S, D)

    scale = 1.0 / (HEAD_DIM ** 0.5)
    scores = jnp.einsum('bqd,bkd->bqk', q, k, preferred_element_type=f32) * scale
    scores = scores - jnp.max(scores, axis=-1, keepdims=True)
    e = jnp.exp(scores)
    denom = jnp.sum(e, axis=-1, keepdims=True)
    attn = e * pl.reciprocal(denom, approx=True)     # softmax divide on the EUP slot
    ctx = jnp.einsum('bqk,bkd->bqd', attn, v, preferred_element_type=f32)
    attn_out = linear_f32(ctx.reshape(B * S, D), wo_ref, bo_ref).reshape(B, S, D)

    # ---- mean pool over the sequence axis (dim=1) ----
    pooled = jnp.mean(attn_out, axis=1)              # (B, D) f32

    # ---- MLP head: 12 -> 160 -> 320 -> 640 -> 640 -> 320 -> 160 -> 28 ----
    # TODO(synk): on v7x the 320x640 / 640x640 / 640x320 weights could additionally be
    # stored as fp8 for another ~2x DMA cut; kept bf16 here to stay within tolerance.
    h = jax.nn.relu(linear_bf16(pooled, w1_ref, b1_ref))
    h = jax.nn.relu(linear_bf16(h, w2_ref, b2_ref))
    h = jax.nn.relu(linear_bf16(h, w3_ref, b3_ref))
    h = jax.nn.relu(linear_bf16(h, w4_ref, b4_ref))
    h = jax.nn.relu(linear_bf16(h, w5_ref, b5_ref))
    h = jax.nn.relu(linear_bf16(h, w6_ref, b6_ref))
    out_ref[...] = linear_bf16(h, w7_ref, b7_ref)    # (B, 28), no activation


def prepare_params(params):
    """Convert the (f32) parameter list to the mixed-precision layout the kernel wants:
    attention weights/biases stay f32, MLP weights -> bf16 (halves weight DMA),
    MLP biases stay f32.  Do this ONCE at load time, not per call."""
    prepared = list(params[:8])                       # q/k/v/fc_out weights + biases (f32)
    for i in range(8, len(params), 2):
        prepared.append(params[i].astype(jnp.bfloat16))   # MLP weight
        prepared.append(params[i + 1])                    # MLP bias (f32)
    return prepared


def multi_output_model_with_attention(x, prepared_params):
    """x: (B, S, 12) float32; prepared_params: output of prepare_params()."""
    B = x.shape[0]
    flat = [x] + list(prepared_params)
    vmem = pl.BlockSpec(memory_space=pltpu.MemorySpace.VMEM)
    # Single invocation, everything resident in VMEM — no grid, no tiling needed
    # at these shapes (per-step grid overhead would exceed any pipelining gain).
    return pl.pallas_call(
        _model_kernel,
        out_shape=jax.ShapeDtypeStruct((B, 28), jnp.float32),
        in_specs=[vmem] * len(flat),
        out_specs=vmem,
    )(*flat)


def init_params(key):
    """Deterministic synthetic parameters (PyTorch-Linear-like uniform init), f32.
    Weights are stored (in_features, out_features) so y = x @ W + b."""
    params = []
    dims = [(FEATURE_DIM, FEATURE_DIM)] * 4 + MLP_DIMS   # q, k, v, fc_out, fc1..output
    keys = jax.random.split(key, 2 * len(dims))
    for i, (din, dout) in enumerate(dims):
        bound = 1.0 / (din ** 0.5)
        w = jax.random.uniform(keys[2 * i], (din, dout), jnp.float32, -bound, bound)
        b = jax.random.uniform(keys[2 * i + 1], (1, dout), jnp.float32, -bound, bound)
        params += [w, b]
    return params


def reference_forward(x, prepared_params):
    """Pure-JAX reference with the same mixed-precision semantics as the kernel."""
    (wq, bq, wk, bk, wv, bv, wo, bo, *mlp) = prepared_params
    f32, bf16 = jnp.float32, jnp.bfloat16
    q = x @ wq + bq
    k = x @ wk + bk
    v = x @ wv + bv
    scores = jnp.einsum('bqd,bkd->bqk', q, k) / (HEAD_DIM ** 0.5)
    attn = jax.nn.softmax(scores, axis=-1)
    out = jnp.einsum('bqk,bkd->bqd', attn, v) @ wo + bo
    h = jnp.mean(out, axis=1)
    for i in range(6):
        w, b = mlp[2 * i], mlp[2 * i + 1]
        h = jax.nn.relu(jnp.dot(h.astype(bf16), w, preferred_element_type=f32) + b)
    w7, b7 = mlp[12], mlp[13]
    return jnp.dot(h.astype(bf16), w7, preferred_element_type=f32) + b7


if __name__ == "__main__":
    key = jax.random.PRNGKey(0)
    k_x, k_p = jax.random.split(key)

    B, S = 2, 8                                  # batch=2, seq=8, feature_dim=12
    x = jax.random.normal(k_x, (B, S, FEATURE_DIM), jnp.float32)
    params = prepare_params(init_params(k_p))    # one-time weight precision prep

    out = multi_output_model_with_attention(x, params)
    out = jax.block_until_ready(out)

    ref = reference_forward(x, params)
    assert out.shape == (B, 28)
    assert jnp.allclose(out, ref, rtol=5e-3, atol=5e-3), "mismatch vs reference"

    print("KERNEL_OK")
</pallas_src>

<mosaic_0001>
module attributes {stable_mosaic.version = 11 : i64} {
  func.func @_model_kernel(%arg0: memref<2x8x12xf32, #tpu.memory_space<vmem>>, %arg1: memref<12x12xf32, #tpu.memory_space<vmem>>, %arg2: memref<1x12xf32, #tpu.memory_space<vmem>>, %arg3: memref<12x12xf32, #tpu.memory_space<vmem>>, %arg4: memref<1x12xf32, #tpu.memory_space<vmem>>, %arg5: memref<12x12xf32, #tpu.memory_space<vmem>>, %arg6: memref<1x12xf32, #tpu.memory_space<vmem>>, %arg7: memref<12x12xf32, #tpu.memory_space<vmem>>, %arg8: memref<1x12xf32, #tpu.memory_space<vmem>>, %arg9: memref<12x160xbf16, #tpu.memory_space<vmem>>, %arg10: memref<1x160xf32, #tpu.memory_space<vmem>>, %arg11: memref<160x320xbf16, #tpu.memory_space<vmem>>, %arg12: memref<1x320xf32, #tpu.memory_space<vmem>>, %arg13: memref<320x640xbf16, #tpu.memory_space<vmem>>, %arg14: memref<1x640xf32, #tpu.memory_space<vmem>>, %arg15: memref<640x640xbf16, #tpu.memory_space<vmem>>, %arg16: memref<1x640xf32, #tpu.memory_space<vmem>>, %arg17: memref<640x320xbf16, #tpu.memory_space<vmem>>, %arg18: memref<1x320xf32, #tpu.memory_space<vmem>>, %arg19: memref<320x160xbf16, #tpu.memory_space<vmem>>, %arg20: memref<1x160xf32, #tpu.memory_space<vmem>>, %arg21: memref<160x28xbf16, #tpu.memory_space<vmem>>, %arg22: memref<1x28xf32, #tpu.memory_space<vmem>>, %arg23: memref<2x28xf32, #tpu.memory_space<vmem>>) attributes {dimension_semantics = [], scalar_prefetch = 0 : i64, scratch_operands = 0 : i64, tpu.core_type = #tpu.core_type<tc>} {
    %c0 = arith.constant 0 : index
    %c0_0 = arith.constant 0 : index
    %c0_1 = arith.constant 0 : index
    %0 = vector.load %arg0[%c0, %c0_0, %c0_1] : memref<2x8x12xf32, #tpu.memory_space<vmem>>, vector<2x8x12xf32>
    %1 = vector.shape_cast %0 : vector<2x8x12xf32> to vector<16x12xf32>
    %c0_2 = arith.constant 0 : index
    %c0_3 = arith.constant 0 : index
    %2 = vector.load %arg1[%c0_2, %c0_3] : memref<12x12xf32, #tpu.memory_space<vmem>>, vector<12x12xf32>
    %cst = arith.constant dense<0.000000e+00> : vector<16x12xf32>
    %3 = tpu.matmul %1, %2, %cst {dimension_numbers = #tpu.dot_dimension_numbers<[1], [0], [0], [1], [0, 0, 1, 1], [], []>} : vector<16x12xf32>, vector<12x12xf32>, vector<16x12xf32> -> vector<16x12xf32>
    %c0_4 = arith.constant 0 : index
    %c0_5 = arith.constant 0 : index
    %4 = vector.load %arg2[%c0_4, %c0_5] : memref<1x12xf32, #tpu.memory_space<vmem>>, vector<1x12xf32>
    %5 = vector.broadcast %4 : vector<1x12xf32> to vector<16x12xf32>
    %6 = arith.addf %3, %5 : vector<16x12xf32>
    %7 = vector.shape_cast %6 : vector<16x12xf32> to vector<2x8x12xf32>
    %c0_6 = arith.constant 0 : index
    %c0_7 = arith.constant 0 : index
    %8 = vector.load %arg3[%c0_6, %c0_7] : memref<12x12xf32, #tpu.memory_space<vmem>>, vector<12x12xf32>
    %cst_8 = arith.constant dense<0.000000e+00> : vector<16x12xf32>
    %9 = tpu.matmul %1, %8, %cst_8 {dimension_numbers = #tpu.dot_dimension_numbers<[1], [0], [0], [1], [0, 0, 1, 1], [], []>} : vector<16x12xf32>, vector<12x12xf32>, vector<16x12xf32> -> vector<16x12xf32>
    %c0_9 = arith.constant 0 : index
    %c0_10 = arith.constant 0 : index
    %10 = vector.load %arg4[%c0_9, %c0_10] : memref<1x12xf32, #tpu.memory_space<vmem>>, vector<1x12xf32>
    %11 = vector.broadcast %10 : vector<1x12xf32> to vector<16x12xf32>
    %12 = arith.addf %9, %11 : vector<16x12xf32>
    %13 = vector.shape_cast %12 : vector<16x12xf32> to vector<2x8x12xf32>
    %c0_11 = arith.constant 0 : index
    %c0_12 = arith.constant 0 : index
    %14 = vector.load %arg5[%c0_11, %c0_12] : memref<12x12xf32, #tpu.memory_space<vmem>>, vector<12x12xf32>
    %cst_13 = arith.constant dense<0.000000e+00> : vector<16x12xf32>
    %15 = tpu.matmul %1, %14, %cst_13 {dimension_numbers = #tpu.dot_dimension_numbers<[1], [0], [0], [1], [0, 0, 1, 1], [], []>} : vector<16x12xf32>, vector<12x12xf32>, vector<16x12xf32> -> vector<16x12xf32>
    %c0_14 = arith.constant 0 : index
    %c0_15 = arith.constant 0 : index
    %16 = vector.load %arg6[%c0_14, %c0_15] : memref<1x12xf32, #tpu.memory_space<vmem>>, vector<1x12xf32>
    %17 = vector.broadcast %16 : vector<1x12xf32> to vector<16x12xf32>
    %18 = arith.addf %15, %17 : vector<16x12xf32>
    %19 = vector.shape_cast %18 : vector<16x12xf32> to vector<2x8x12xf32>
    "tpu.trace_start"() <{level = 10 : i32, message = "bqd,bkd->bqk"}> : () -> ()
    %cst_16 = arith.constant dense<0.000000e+00> : vector<2x8x8xf32>
    %20 = tpu.matmul %7, %13, %cst_16 {dimension_numbers = #tpu.dot_dimension_numbers<[2], [2], [1], [1], [0, 0, 0, 1, 1, 1], [0], [0]>} : vector<2x8x12xf32>, vector<2x8x12xf32>, vector<2x8x8xf32> -> vector<2x8x8xf32>
    "tpu.trace_stop"() : () -> ()
    %cst_17 = arith.constant 0.707106769 : f32
    %21 = vector.broadcast %cst_17 : f32 to vector<2x8x8xf32>
    %22 = arith.mulf %20, %21 : vector<2x8x8xf32>
    %cst_18 = arith.constant dense<0xFF800000> : vector<2x8xf32>
    %23 = vector.multi_reduction <maximumf>, %22, %cst_18 [2] : vector<2x8x8xf32> to vector<2x8xf32>
    %24 = vector.shape_cast %23 : vector<2x8xf32> to vector<2x8x1xf32>
    %25 = vector.broadcast %24 : vector<2x8x1xf32> to vector<2x8x8xf32>
    %26 = arith.subf %22, %25 : vector<2x8x8xf32>
    %27 = math.exp %26 : vector<2x8x8xf32>
    %cst_19 = arith.constant dense<0.000000e+00> : vector<2x8xf32>
    %28 = vector.multi_reduction <add>, %27, %cst_19 [2] : vector<2x8x8xf32> to vector<2x8xf32>
    %29 = vector.shape_cast %28 : vector<2x8xf32> to vector<2x8x1xf32>
    %30 = tpu.reciprocal %29 {approx = true} : vector<2x8x1xf32> -> vector<2x8x1xf32>
    %31 = vector.broadcast %30 : vector<2x8x1xf32> to vector<2x8x8xf32>
    %32 = arith.mulf %27, %31 : vector<2x8x8xf32>
    "tpu.trace_start"() <{level = 10 : i32, message = "bqk,bkd->bqd"}> : () -> ()
    %cst_20 = arith.constant dense<0.000000e+00> : vector<2x8x12xf32>
    %33 = tpu.matmul %32, %19, %cst_20 {dimension_numbers = #tpu.dot_dimension_numbers<[2], [1], [1], [2], [0, 0, 0, 1, 1, 2], [0], [0]>} : vector<2x8x8xf32>, vector<2x8x12xf32>, vector<2x8x12xf32> -> vector<2x8x12xf32>
    "tpu.trace_stop"() : () -> ()
    %34 = vector.shape_cast %33 : vector<2x8x12xf32> to vector<16x12xf32>
    %c0_21 = arith.constant 0 : index
    %c0_22 = arith.constant 0 : index
    %35 = vector.load %arg7[%c0_21, %c0_22] : memref<12x12xf32, #tpu.memory_space<vmem>>, vector<12x12xf32>
    %cst_23 = arith.constant dense<0.000000e+00> : vector<16x12xf32>
    %36 = tpu.matmul %34, %35, %cst_23 {dimension_numbers = #tpu.dot_dimension_numbers<[1], [0], [0], [1], [0, 0, 1, 1], [], []>} : vector<16x12xf32>, vector<12x12xf32>, vector<16x12xf32> -> vector<16x12xf32>
    %c0_24 = arith.constant 0 : index
    %c0_25 = arith.constant 0 : index
    %37 = vector.load %arg8[%c0_24, %c0_25] : memref<1x12xf32, #tpu.memory_space<vmem>>, vector<1x12xf32>
    %38 = vector.broadcast %37 : vector<1x12xf32> to vector<16x12xf32>
    %39 = arith.addf %36, %38 : vector<16x12xf32>
    %40 = vector.shape_cast %39 : vector<16x12xf32> to vector<2x8x12xf32>
    %cst_26 = arith.constant dense<0.000000e+00> : vector<2x12xf32>
    %41 = vector.multi_reduction <add>, %40, %cst_26 [1] : vector<2x8x12xf32> to vector<2x12xf32>
    %cst_27 = arith.constant 8.000000e+00 : f32
    %42 = vector.broadcast %cst_27 : f32 to vector<2x12xf32>
    %43 = arith.divf %41, %42 : vector<2x12xf32>
    %44 = arith.truncf %43 : vector<2x12xf32> to vector<2x12xbf16>
    %c0_28 = arith.constant 0 : index
    %c0_29 = arith.constant 0 : index
    %45 = vector.load %arg9[%c0_28, %c0_29] : memref<12x160xbf16, #tpu.memory_space<vmem>>, vector<12x160xbf16>
    %cst_30 = arith.constant dense<0.000000e+00> : vector<2x160xf32>
    %46 = tpu.matmul %44, %45, %cst_30 {dimension_numbers = #tpu.dot_dimension_numbers<[1], [0], [0], [1], [0, 0, 1, 1], [], []>} : vector<2x12xbf16>, vector<12x160xbf16>, vector<2x160xf32> -> vector<2x160xf32>
    %c0_31 = arith.constant 0 : index
    %c0_32 = arith.constant 0 : index
    %47 = vector.load %arg10[%c0_31, %c0_32] : memref<1x160xf32, #tpu.memory_space<vmem>>, vector<1x160xf32>
    %48 = vector.broadcast %47 : vector<1x160xf32> to vector<2x160xf32>
    %49 = arith.addf %46, %48 : vector<2x160xf32>
    %cst_33 = arith.constant 0.000000e+00 : f32
    %50 = vector.broadcast %cst_33 : f32 to vector<2x160xf32>
    %51 = arith.maximumf %49, %50 : vector<2x160xf32>
    %52 = arith.truncf %51 : vector<2x160xf32> to vector<2x160xbf16>
    %c0_34 = arith.constant 0 : index
    %c0_35 = arith.constant 0 : index
    %53 = vector.load %arg11[%c0_34, %c0_35] : memref<160x320xbf16, #tpu.memory_space<vmem>>, vector<160x320xbf16>
    %cst_36 = arith.constant dense<0.000000e+00> : vector<2x320xf32>
    %54 = tpu.matmul %52, %53, %cst_36 {dimension_numbers = #tpu.dot_dimension_numbers<[1], [0], [0], [1], [0, 0, 1, 1], [], []>} : vector<2x160xbf16>, vector<160x320xbf16>, vector<2x320xf32> -> vector<2x320xf32>
    %c0_37 = arith.constant 0 : index
    %c0_38 = arith.constant 0 : index
    %55 = vector.load %arg12[%c0_37, %c0_38] : memref<1x320xf32, #tpu.memory_space<vmem>>, vector<1x320xf32>
    %56 = vector.broadcast %55 : vector<1x320xf32> to vector<2x320xf32>
    %57 = arith.addf %54, %56 : vector<2x320xf32>
    %cst_39 = arith.constant 0.000000e+00 : f32
    %58 = vector.broadcast %cst_39 : f32 to vector<2x320xf32>
    %59 = arith.maximumf %57, %58 : vector<2x320xf32>
    %60 = arith.truncf %59 : vector<2x320xf32> to vector<2x320xbf16>
    %c0_40 = arith.constant 0 : index
    %c0_41 = arith.constant 0 : index
    %61 = vector.load %arg13[%c0_40, %c0_41] : memref<320x640xbf16, #tpu.memory_space<vmem>>, vector<320x640xbf16>
    %cst_42 = arith.constant dense<0.000000e+00> : vector<2x640xf32>
    %62 = tpu.matmul %60, %61, %cst_42 {dimension_numbers = #tpu.dot_dimension_numbers<[1], [0], [0], [1], [0, 0, 1, 1], [], []>} : vector<2x320xbf16>, vector<320x640xbf16>, vector<2x640xf32> -> vector<2x640xf32>
    %c0_43 = arith.constant 0 : index
    %c0_44 = arith.constant 0 : index
    %63 = vector.load %arg14[%c0_43, %c0_44] : memref<1x640xf32, #tpu.memory_space<vmem>>, vector<1x640xf32>
    %64 = vector.broadcast %63 : vector<1x640xf32> to vector<2x640xf32>
    %65 = arith.addf %62, %64 : vector<2x640xf32>
    %cst_45 = arith.constant 0.000000e+00 : f32
    %66 = vector.broadcast %cst_45 : f32 to vector<2x640xf32>
    %67 = arith.maximumf %65, %66 : vector<2x640xf32>
    %68 = arith.truncf %67 : vector<2x640xf32> to vector<2x640xbf16>
    %c0_46 = arith.constant 0 : index
    %c0_47 = arith.constant 0 : index
    %69 = vector.load %arg15[%c0_46, %c0_47] : memref<640x640xbf16, #tpu.memory_space<vmem>>, vector<640x640xbf16>
    %cst_48 = arith.constant dense<0.000000e+00> : vector<2x640xf32>
    %70 = tpu.matmul %68, %69, %cst_48 {dimension_numbers = #tpu.dot_dimension_numbers<[1], [0], [0], [1], [0, 0, 1, 1], [], []>} : vector<2x640xbf16>, vector<640x640xbf16>, vector<2x640xf32> -> vector<2x640xf32>
    %c0_49 = arith.constant 0 : index
    %c0_50 = arith.constant 0 : index
    %71 = vector.load %arg16[%c0_49, %c0_50] : memref<1x640xf32, #tpu.memory_space<vmem>>, vector<1x640xf32>
    %72 = vector.broadcast %71 : vector<1x640xf32> to vector<2x640xf32>
    %73 = arith.addf %70, %72 : vector<2x640xf32>
    %cst_51 = arith.constant 0.000000e+00 : f32
    %74 = vector.broadcast %cst_51 : f32 to vector<2x640xf32>
    %75 = arith.maximumf %73, %74 : vector<2x640xf32>
    %76 = arith.truncf %75 : vector<2x640xf32> to vector<2x640xbf16>
    %c0_52 = arith.constant 0 : index
    %c0_53 = arith.constant 0 : index
    %77 = vector.load %arg17[%c0_52, %c0_53] : memref<640x320xbf16, #tpu.memory_space<vmem>>, vector<640x320xbf16>
    %cst_54 = arith.constant dense<0.000000e+00> : vector<2x320xf32>
    %78 = tpu.matmul %76, %77, %cst_54 {dimension_numbers = #tpu.dot_dimension_numbers<[1], [0], [0], [1], [0, 0, 1, 1], [], []>} : vector<2x640xbf16>, vector<640x320xbf16>, vector<2x320xf32> -> vector<2x320xf32>
    %c0_55 = arith.constant 0 : index
    %c0_56 = arith.constant 0 : index
    %79 = vector.load %arg18[%c0_55, %c0_56] : memref<1x320xf32, #tpu.memory_space<vmem>>, vector<1x320xf32>
    %80 = vector.broadcast %79 : vector<1x320xf32> to vector<2x320xf32>
    %81 = arith.addf %78, %80 : vector<2x320xf32>
    %cst_57 = arith.constant 0.000000e+00 : f32
    %82 = vector.broadcast %cst_57 : f32 to vector<2x320xf32>
    %83 = arith.maximumf %81, %82 : vector<2x320xf32>
    %84 = arith.truncf %83 : vector<2x320xf32> to vector<2x320xbf16>
    %c0_58 = arith.constant 0 : index
    %c0_59 = arith.constant 0 : index
    %85 = vector.load %arg19[%c0_58, %c0_59] : memref<320x160xbf16, #tpu.memory_space<vmem>>, vector<320x160xbf16>
    %cst_60 = arith.constant dense<0.000000e+00> : vector<2x160xf32>
    %86 = tpu.matmul %84, %85, %cst_60 {dimension_numbers = #tpu.dot_dimension_numbers<[1], [0], [0], [1], [0, 0, 1, 1], [], []>} : vector<2x320xbf16>, vector<320x160xbf16>, vector<2x160xf32> -> vector<2x160xf32>
    %c0_61 = arith.constant 0 : index
    %c0_62 = arith.constant 0 : index
    %87 = vector.load %arg20[%c0_61, %c0_62] : memref<1x160xf32, #tpu.memory_space<vmem>>, vector<1x160xf32>
    %88 = vector.broadcast %87 : vector<1x160xf32> to vector<2x160xf32>
    %89 = arith.addf %86, %88 : vector<2x160xf32>
    %cst_63 = arith.constant 0.000000e+00 : f32
    %90 = vector.broadcast %cst_63 : f32 to vector<2x160xf32>
    %91 = arith.maximumf %89, %90 : vector<2x160xf32>
    %92 = arith.truncf %91 : vector<2x160xf32> to vector<2x160xbf16>
    %c0_64 = arith.constant 0 : index
    %c0_65 = arith.constant 0 : index
    %93 = vector.load %arg21[%c0_64, %c0_65] : memref<160x28xbf16, #tpu.memory_space<vmem>>, vector<160x28xbf16>
    %cst_66 = arith.constant dense<0.000000e+00> : vector<2x28xf32>
    %94 = tpu.matmul %92, %93, %cst_66 {dimension_numbers = #tpu.dot_dimension_numbers<[1], [0], [0], [1], [0, 0, 1, 1], [], []>} : vector<2x160xbf16>, vector<160x28xbf16>, vector<2x28xf32> -> vector<2x28xf32>
    %c0_67 = arith.constant 0 : index
    %c0_68 = arith.constant 0 : index
    %95 = vector.load %arg22[%c0_67, %c0_68] : memref<1x28xf32, #tpu.memory_space<vmem>>, vector<1x28xf32>
    %96 = vector.broadcast %95 : vector<1x28xf32> to vector<2x28xf32>
    %97 = arith.addf %94, %96 : vector<2x28xf32>
    %c0_69 = arith.constant 0 : index
    %c0_70 = arith.constant 0 : index
    %98 = vector.load %arg23[%c0_69, %c0_70] : memref<2x28xf32, #tpu.memory_space<vmem>>, vector<2x28xf32>
    tpu.vector_store %arg23[%c0_69, %c0_70], %97 {strides = array<i32>} : memref<2x28xf32, #tpu.memory_space<vmem>>, vector<2x28xf32>,
    return
  }
}

</mosaic_0001>

<bundles_post_ra>
// kernel: tpu_custom_call.1
= control target key start
LH: loop header
LB: loop body
LE: loop exit
PB: predicated region body
PF: predicated region fallthrough
CT: control target
= control target key end

     0   :  { %s9376_s0 = inlined_call_operand.vmem [shape: f32[2,8,12], index: 0, kind: input, shape index: {}]   ;;  %s9377_s1 = inlined_call_operand.vmem [shape: f32[12,12], index: 1, kind: input, shape index: {}]   ;;  %s9378_s2 = inlined_call_operand.hbm [shape: f32[1,12], index: 2, kind: input, shape index: {}]   ;;  %s9379_s3 = inlined_call_operand.vmem [shape: f32[12,12], index: 3, kind: input, shape index: {}]   ;;  %s9380_s4 = inlined_call_operand.hbm [shape: f32[1,12], index: 4, kind: input, shape index: {}]   ;;  %s9381_s5 = inlined_call_operand.vmem [shape: f32[12,12], index: 5, kind: input, shape index: {}]   ;;  %s9382_s6 = inlined_call_operand.hbm [shape: f32[1,12], index: 6, kind: input, shape index: {}]   ;;  %s9383_s7 = inlined_call_operand.hbm [shape: f32[12,12], index: 7, kind: input, shape index: {}]   ;;  %s9384_s8 = inlined_call_operand.hbm [shape: f32[1,12], index: 8, kind: input, shape index: {}]   ;;  %s9385_s9 = inlined_call_operand.hbm [shape: bf16[12,160], index: 9, kind: input, shape index: {}]   ;;  %s9386_s10 = inlined_call_operand.hbm [shape: f32[1,160], index: 10, kind: input, shape index: {}]   ;;  %s9387_s11 = inlined_call_operand.hbm [shape: bf16[160,320], index: 11, kind: input, shape index: {}]   ;;  %s9388_s12 = inlined_call_operand.hbm [shape: f32[1,320], index: 12, kind: input, shape index: {}]   ;;  %s9389_s13 = inlined_call_operand.vmem [shape: bf16[320,640], index: 13, kind: input, shape index: {}]   ;;  %s9390_s14 = inlined_call_operand.hbm [shape: f32[1,640], index: 14, kind: input, shape index: {}]   ;;  %s9391_s15 = inlined_call_operand.vmem [shape: bf16[640,640], index: 15, kind: input, shape index: {}]   ;;  %s9392_s16 = inlined_call_operand.hbm [shape: f32[1,640], index: 16, kind: input, shape index: {}]   ;;  %s9393_s17 = inlined_call_operand.vmem [shape: bf16[640,320], index: 17, kind: input, shape index: {}]   ;;  %s9394_s18 = inlined_call_operand.hbm [shape: f32[1,320], index: 18, kind: input, shape index: {}]   ;;  %s9395_s19 = inlined_call_operand.vmem [shape: bf16[320,160], index: 19, kind: input, shape index: {}]   ;;  %s9396_s20 = inlined_call_operand.hbm [shape: f32[1,160], index: 20, kind: input, shape index: {}]   ;;  %s9397_s21 = inlined_call_operand.vmem [shape: bf16[160,28], index: 21, kind: input, shape index: {}]   ;;  %s9398_s22 = inlined_call_operand.vmem [shape: f32[1,28], index: 22, kind: input, shape index: {}]   ;;  %s9399_s23 = inlined_call_operand.hbm [shape: f32[2,28], index: 23, kind: output, shape index: {}]  }
   0x1   :  { %9409 = sst [smem:[#allocation32_spill]] %s9376_s0 }
   0x2   :  { %9410 = sst [smem:[#allocation33_spill]] %s9377_s1 }
   0x3   :  { %9411 = sst [smem:[#allocation34_spill]] %s9378_s2 }
   0x4   :  { %9412 = sst [smem:[#allocation35_spill]] %s9379_s3 }
   0x5   :  { %9413 = sst [smem:[#allocation36_spill]] %s9380_s4 }
   0x6   :  { %9414 = sst [smem:[#allocation37_spill]] %s9381_s5 }
   0x7   :  { %9415 = sst [smem:[#allocation38_spill]] %s9382_s6 }
   0x8   :  { %9416 = sst [smem:[#allocation39_spill]] %s9383_s7 }
   0x9   :  { %9417 = sst [smem:[#allocation40_spill]] %s9398_s22 }
   0xa   :  { %9418 = sst [smem:[#allocation41_spill]] %s9399_s23 }
   0xb   :  { %28 = vsyncpa [#allocation3], 0 }
   0xc   :  { %29 = vsyncpa [#allocation6], 0 }
   0xd   :  { %30 = vsyncpa [#allocation9], 0 }
   0xe   :  { %31 = vsyncpa [#allocation12], 0 }
   0xf   :  { %32 = vsyncpa [#allocation15], 0 }
  0x10   :  { %33 = vsyncpa [#allocation18], 0 }
  0x11   :  { %34 = vsyncpa [#allocation21], 0 }
  0x12   :  { %35 = vsyncpa [#allocation4], 0  ;;  %s7408_s4 = smov [#allocation5]   ;;  %s7409_s24 = smov [#allocation8]  }
  0x13   :  { %s58_s30 = sshll.u32 %s7408_s4, 4  ;;  %s79_s25 = sshll.u32 %s7409_s24, 4  ;;  %s59_s30 = int_to_ptr.vmem [resolvable:$true] %s58_s30  ;;  %s7550_s25 = int_to_ptr.vmem [resolvable:$true] %s79_s25 }
  0x14   :  { %s9419_s26 = sld [smem:[#allocation36_spill]] }
  0x1a   :  { %s7084_s2 = scalar_lea.hbm %s9419_s26, 16 }
  0x1b   :  { %p7085_p0 = scmp.ne.s32.totalorder %s9419_s26, %s7084_s2  ;;  %p7088_p1 = scmp.lt.u32.totalorder %s7084_s2, %s9419_s26 }
  0x1d   :  { %p7090_p2 = pnand %p7088_p1, %p7085_p0 }
  0x1f   :  { %7093 = shalt.err (!%p7090_p2)
}
  0x20   :  { %s7094_s29 = scalar_lea.vmem %s59_s30, 16  ;;  %s7098_s3 = scalar_lea.vmem %s59_s30, 32 }
  0x21   :  { %p7095_p3 = scmp.ne.s32.totalorder %s59_s30, %s7094_s29  ;;  %p7099_p4 = scmp.lt.s32.totalorder %s59_s30, %s59_s30 }
  0x22   :  { %p7100_p5 = scmp.lt.s32.totalorder %s7098_s3, %s7094_s29 }
  0x24   :  { %p7101_p6 = por %p7100_p5, %p7099_p4 }
  0x26   :  { %p7102_p7 = pnand %p7101_p6, %p7095_p3 }
  0x28   :  { %7105 = shalt.err (!%p7102_p7)
}
  0x29   :  { %61 = dma.hbm_to_vmem [thread:$0]  %s9419_s26, 16, %s59_s30, [#allocation6]  }
  0x2a   :  { %s9420_s1 = sld [smem:[#allocation39_spill]] }
  0x30   :  { %s7106_s6 = scalar_lea.hbm %s9420_s1, 256 }
  0x31   :  { %p7107_p8 = scmp.ne.s32.totalorder %s9420_s1, %s7106_s6  ;;  %p7110_p9 = scmp.lt.u32.totalorder %s7106_s6, %s9420_s1 }
  0x33   :  { %p7112_p10 = pnand %p7110_p9, %p7107_p8 }
  0x35   :  { %7115 = shalt.err (!%p7112_p10)
}
  0x36   :  { %s7116_s29 = scalar_lea.vmem %s7550_s25, 256  ;;  %p7121_p12 = scmp.lt.s32.totalorder %s7550_s25, %s7550_s25 }
  0x37   :  { %p7117_p11 = scmp.ne.s32.totalorder %s7550_s25, %s7116_s29  ;;  %p7122_p13 = scmp.lt.s32.totalorder %s7116_s29, %s7116_s29 }
  0x39   :  { %p7123_p0 = por %p7122_p13, %p7121_p12 }
  0x3b   :  { %p7124_p1 = pnand %p7123_p0, %p7117_p11 }
  0x3d   :  { %7127 = shalt.err (!%p7124_p1)
}
  0x3e   :  { %s7410_s30 = smov 128   ;;  %s7411_s26 = smov 8  }
  0x3f   :  { %85 = dma.hbm_to_vmem [thread:$0]  %s9420_s1, 256, %s7550_s25, [#allocation9], %s7410_s30, %s7410_s30, %s7411_s26  }
  0x40   :  { %s7412_s4 = smov [#allocation11]   ;;  %s7413_s5 = smov [#allocation14]  }
  0x41   :  { %s101_s24 = sshll.u32 %s7412_s4, 4  ;;  %s123_s6 = sshll.u32 %s7413_s5, 4  ;;  %s102_s24 = int_to_ptr.vmem [resolvable:$true] %s101_s24  ;;  %s7581_s6 = int_to_ptr.vmem [resolvable:$true] %s123_s6 }
  0x42   :  { %s7128_s7 = scalar_lea.hbm %s9385_s9, 256 }
  0x43   :  { %p7129_p2 = scmp.ne.s32.totalorder %s9385_s9, %s7128_s7  ;;  %p7132_p3 = scmp.lt.u32.totalorder %s7128_s7, %s9385_s9 }
  0x45   :  { %p7134_p4 = pnand %p7132_p3, %p7129_p2 }
  0x47   :  { %7137 = shalt.err (!%p7134_p4)
}
  0x48   :  { %s7138_s25 = scalar_lea.vmem %s102_s24, 256  ;;  %p7143_p6 = scmp.lt.s32.totalorder %s102_s24, %s102_s24 }
  0x49   :  { %p7139_p5 = scmp.ne.s32.totalorder %s102_s24, %s7138_s25  ;;  %p7144_p7 = scmp.lt.s32.totalorder %s7138_s25, %s7138_s25 }
  0x4b   :  { %p7145_p8 = por %p7144_p7, %p7143_p6 }
  0x4d   :  { %p7146_p9 = pnand %p7145_p8, %p7139_p5 }
  0x4f   :  { %7149 = shalt.err (!%p7146_p9)
}
  0x50   :  { %107 = dma.hbm_to_vmem [thread:$0]  %s9385_s9, 256, %s102_s24, [#allocation12], %s7410_s30, %s7410_s30, %s7411_s26  }
  0x51   :  { %s7150_s5 = scalar_lea.hbm %s9387_s11, 3840 }
  0x52   :  { %p7151_p10 = scmp.ne.s32.totalorder %s9387_s11, %s7150_s5  ;;  %p7154_p11 = scmp.lt.u32.totalorder %s7150_s5, %s9387_s11 }
  0x54   :  { %p7156_p12 = pnand %p7154_p11, %p7151_p10 }
  0x56   :  { %7159 = shalt.err (!%p7156_p12)
}
  0x57   :  { %s7160_s7 = scalar_lea.vmem %s7581_s6, 3840  ;;  %p7165_p0 = scmp.lt.s32.totalorder %s7581_s6, %s7581_s6 }
  0x58   :  { %p7161_p13 = scmp.ne.s32.totalorder %s7581_s6, %s7160_s7  ;;  %p7166_p1 = scmp.lt.s32.totalorder %s7160_s7, %s7160_s7 }
  0x5a   :  { %p7167_p2 = por %p7166_p1, %p7165_p0 }
  0x5c   :  { %p7168_p3 = pnand %p7167_p2, %p7161_p13 }
  0x5e   :  { %7171 = shalt.err (!%p7168_p3)
}
  0x5f   :  { %s7414_s9 = smov 192   ;;  %s7415_s30 = smov 12  }
  0x60   :  { %129 = dma.hbm_to_vmem [thread:$0]  %s9387_s11, 3840, %s7581_s6, [#allocation15], %s7414_s9, %s7414_s9, %s7415_s30  }
  0x61   :  { %s7416_s28 = smov [#allocation17]   ;;  %s7417_s25 = smov [#allocation20]  }
  0x62   :  { %s148_s29 = sshll.u32 %s7416_s28, 4  ;;  %s172_s1 = sshll.u32 %s7417_s25, 4  ;;  %s149_s29 = int_to_ptr.vmem [resolvable:$true] %s148_s29  ;;  %s173_s1 = int_to_ptr.vmem [resolvable:$true] %s172_s1 }
  0x63   :  { %s7172_s4 = scalar_lea.hbm %s9390_s14, 80 }
  0x64   :  { %p7173_p4 = scmp.ne.s32.totalorder %s9390_s14, %s7172_s4  ;;  %p7176_p5 = scmp.lt.u32.totalorder %s7172_s4, %s9390_s14 }
  0x66   :  { %p7178_p6 = pnand %p7176_p5, %p7173_p4 }
  0x68   :  { %7181 = shalt.err (!%p7178_p6)
}
  0x69   :  { %s7182_s11 = scalar_lea.vmem %s149_s29, 80  ;;  %s7186_s6 = scalar_lea.vmem %s149_s29, 96 }
  0x6a   :  { %p7183_p7 = scmp.ne.s32.totalorder %s149_s29, %s7182_s11  ;;  %p7187_p8 = scmp.lt.s32.totalorder %s149_s29, %s149_s29 }
  0x6b   :  { %p7188_p9 = scmp.lt.s32.totalorder %s7186_s6, %s7182_s11 }
  0x6d   :  { %p7189_p10 = por %p7188_p9, %p7187_p8 }
  0x6f   :  { %p7190_p11 = pnand %p7189_p10, %p7183_p7 }
  0x71   :  { %7193 = shalt.err (!%p7190_p11)
}
  0x72   :  { %151 = dma.hbm_to_vmem [thread:$0]  %s9390_s14, 80, %s149_s29, [#allocation18]  }
  0x73   :  { %s7194_s26 = scalar_lea.hbm %s9394_s18, 48 }
  0x74   :  { %p7195_p12 = scmp.ne.s32.totalorder %s9394_s18, %s7194_s26  ;;  %p7198_p13 = scmp.lt.u32.totalorder %s7194_s26, %s9394_s18 }
  0x76   :  { %p7200_p0 = pnand %p7198_p13, %p7195_p12 }
  0x78   :  { %7203 = shalt.err (!%p7200_p0)
}
  0x79   :  { %s7204_s0 = scalar_lea.vmem %s173_s1, 48  ;;  %s7208_s4 = scalar_lea.vmem %s173_s1, 64 }
  0x7a   :  { %p7205_p1 = scmp.ne.s32.totalorder %s173_s1, %s7204_s0  ;;  %p7209_p2 = scmp.lt.s32.totalorder %s173_s1, %s173_s1 }
  0x7b   :  { %p7210_p3 = scmp.lt.s32.totalorder %s7208_s4, %s7204_s0 }
  0x7d   :  { %p7211_p4 = por %p7210_p3, %p7209_p2 }
  0x7f   :  { %p7212_p5 = pnand %p7211_p4, %p7205_p1 }
  0x81   :  { %7215 = shalt.err (!%p7212_p5)
}
  0x82   :  { %175 = dma.hbm_to_vmem [thread:$0]  %s9394_s18, 48, %s173_s1, [#allocation21]  }
  0x83   :  { %s7418_s5 = smov [#allocation2]   ;;  %s7419_s22 = smov [#allocation7]  }
  0x84   :  { %s46_s27 = sshll.u32 %s7418_s5, 4  ;;  %s70_s23 = sshll.u32 %s7419_s22, 4  ;;  %s47_s27 = int_to_ptr.vmem [resolvable:$true] %s46_s27  ;;  %s71_s23 = int_to_ptr.vmem [resolvable:$true] %s70_s23 }
  0x85   :  { %s9421_s2 = sld [smem:[#allocation34_spill]] }
  0x8b   :  { %s7216_s7 = scalar_lea.hbm %s9421_s2, 16 }
  0x8c   :  { %p7217_p6 = scmp.ne.s32.totalorder %s9421_s2, %s7216_s7  ;;  %p7220_p7 = scmp.lt.u32.totalorder %s7216_s7, %s9421_s2 }
  0x8e   :  { %p7222_p8 = pnand %p7220_p7, %p7217_p6 }
  0x90   :  { %7225 = shalt.err (!%p7222_p8)
}
  0x91   :  { %s7226_s18 = scalar_lea.vmem %s47_s27, 16  ;;  %s7230_s1 = scalar_lea.vmem %s47_s27, 32 }
  0x92   :  { %p7227_p9 = scmp.ne.s32.totalorder %s47_s27, %s7226_s18  ;;  %p7231_p10 = scmp.lt.s32.totalorder %s47_s27, %s47_s27 }
  0x93   :  { %p7232_p11 = scmp.lt.s32.totalorder %s7230_s1, %s7226_s18 }
  0x95   :  { %p7233_p12 = por %p7232_p11, %p7231_p10 }
  0x97   :  { %p7234_p13 = pnand %p7233_p12, %p7227_p9 }
  0x99   :  { %7237 = shalt.err (!%p7234_p13)
}
  0x9a   :  { %49 = dma.hbm_to_vmem [thread:$0]  %s9421_s2, 16, %s47_s27, [#allocation3]  }
  0x9b   :  { %s9422_s4 = sld [smem:[#allocation38_spill]] }
  0xa1   :  { %s7238_s14 = scalar_lea.hbm %s9422_s4, 16 }
  0xa2   :  { %p7239_p0 = scmp.ne.s32.totalorder %s9422_s4, %s7238_s14  ;;  %p7242_p1 = scmp.lt.u32.totalorder %s7238_s14, %s9422_s4 }
  0xa4   :  { %p7244_p2 = pnand %p7242_p1, %p7239_p0 }
  0xa6   :  { %7247 = shalt.err (!%p7244_p2)
}
  0xa7   :  { %s7248_s6 = scalar_lea.vmem %s71_s23, 16  ;;  %s7252_s7 = scalar_lea.vmem %s71_s23, 32 }
  0xa8   :  { %p7249_p3 = scmp.ne.s32.totalorder %s71_s23, %s7248_s6  ;;  %p7253_p4 = scmp.lt.s32.totalorder %s71_s23, %s71_s23 }
  0xa9   :  { %p7254_p5 = scmp.lt.s32.totalorder %s7252_s7, %s7248_s6 }
  0xab   :  { %p7255_p6 = por %p7254_p5, %p7253_p4 }
  0xad   :  { %p7256_p7 = pnand %p7255_p6, %p7249_p3 }
  0xaf   :  { %7259 = shalt.err (!%p7256_p7)
}
  0xb0   :  { %73 = dma.hbm_to_vmem [thread:$0]  %s9422_s4, 16, %s71_s23, [#allocation6]  }
  0xb1   :  { %s7420_s9 = smov [#allocation10]   ;;  %s7421_s26 = smov [#allocation13]  }
  0xb2   :  { %s92_s30 = sshll.u32 %s7420_s9, 4  ;;  %s114_s24 = sshll.u32 %s7421_s26, 4  ;;  %s93_s30 = int_to_ptr.vmem [resolvable:$true] %s92_s30  ;;  %s115_s24 = int_to_ptr.vmem [resolvable:$true] %s114_s24 }
  0xb3   :  { %s7260_s28 = scalar_lea.hbm %s9384_s8, 16 }
  0xb4   :  { %p7261_p8 = scmp.ne.s32.totalorder %s9384_s8, %s7260_s28  ;;  %p7264_p9 = scmp.lt.u32.totalorder %s7260_s28, %s9384_s8 }
  0xb6   :  { %p7266_p10 = pnand %p7264_p9, %p7261_p8 }
  0xb8   :  { %7269 = shalt.err (!%p7266_p10)
}
  0xb9   :  { %s7270_s23 = scalar_lea.vmem %s93_s30, 16  ;;  %s7274_s4 = scalar_lea.vmem %s93_s30, 32 }
  0xba   :  { %p7271_p11 = scmp.ne.s32.totalorder %s93_s30, %s7270_s23  ;;  %p7275_p12 = scmp.lt.s32.totalorder %s93_s30, %s93_s30 }
  0xbb   :  { %p7276_p13 = scmp.lt.s32.totalorder %s7274_s4, %s7270_s23 }
  0xbd   :  { %p7277_p0 = por %p7276_p13, %p7275_p12 }
  0xbf   :  { %p7278_p1 = pnand %p7277_p0, %p7271_p11 }
  0xc1   :  { %7281 = shalt.err (!%p7278_p1)
}
  0xc2   :  { %95 = dma.hbm_to_vmem [thread:$0]  %s9384_s8, 16, %s93_s30, [#allocation9]  }
  0xc3   :  { %s7282_s6 = scalar_lea.hbm %s9386_s10, 32 }
  0xc4   :  { %p7283_p2 = scmp.ne.s32.totalorder %s9386_s10, %s7282_s6  ;;  %p7286_p3 = scmp.lt.u32.totalorder %s7282_s6, %s9386_s10 }
  0xc6   :  { %p7288_p4 = pnand %p7286_p3, %p7283_p2 }
  0xc8   :  { %7291 = shalt.err (!%p7288_p4)
}
  0xc9   :  { %s7292_s26 = scalar_lea.vmem %s115_s24, 32  ;;  %p7297_p6 = scmp.lt.s32.totalorder %s115_s24, %s115_s24 }
  0xca   :  { %p7293_p5 = scmp.ne.s32.totalorder %s115_s24, %s7292_s26  ;;  %p7298_p7 = scmp.lt.s32.totalorder %s7292_s26, %s7292_s26 }
  0xcc   :  { %p7299_p8 = por %p7298_p7, %p7297_p6 }
  0xce   :  { %p7300_p9 = pnand %p7299_p8, %p7293_p5 }
  0xd0   :  { %7303 = shalt.err (!%p7300_p9)
}
  0xd1   :  { %117 = dma.hbm_to_vmem [thread:$0]  %s9386_s10, 32, %s115_s24, [#allocation12]  }
  0xd2   :  { %s7422_s18 = smov [#allocation16]   ;;  %s7423_s28 = smov [#allocation19]  }
  0xd3   :  { %s136_s1 = sshll.u32 %s7422_s18, 4  ;;  %s160_s25 = sshll.u32 %s7423_s28, 4  ;;  %s137_s1 = int_to_ptr.vmem [resolvable:$true] %s136_s1  ;;  %s161_s25 = int_to_ptr.vmem [resolvable:$true] %s160_s25 }
  0xd4   :  { %s7304_s14 = scalar_lea.hbm %s9388_s12, 48 }
  0xd5   :  { %p7305_p10 = scmp.ne.s32.totalorder %s9388_s12, %s7304_s14  ;;  %p7308_p11 = scmp.lt.u32.totalorder %s7304_s14, %s9388_s12 }
  0xd7   :  { %p7310_p12 = pnand %p7308_p11, %p7305_p10 }
  0xd9   :  { %7313 = shalt.err (!%p7310_p12)
}
  0xda   :  { %s7314_s10 = scalar_lea.vmem %s137_s1, 48  ;;  %s7318_s24 = scalar_lea.vmem %s137_s1, 64 }
  0xdb   :  { %p7315_p13 = scmp.ne.s32.totalorder %s137_s1, %s7314_s10  ;;  %p7319_p0 = scmp.lt.s32.totalorder %s137_s1, %s137_s1 }
  0xdc   :  { %p7320_p1 = scmp.lt.s32.totalorder %s7318_s24, %s7314_s10 }
  0xde   :  { %p7321_p2 = por %p7320_p1, %p7319_p0 }
  0xe0   :  { %p7322_p3 = pnand %p7321_p2, %p7315_p13 }
  0xe2   :  { %7325 = shalt.err (!%p7322_p3)
}
  0xe3   :  { %139 = dma.hbm_to_vmem [thread:$0]  %s9388_s12, 48, %s137_s1, [#allocation15]  }
  0xe4   :  { %s7326_s27 = scalar_lea.hbm %s9392_s16, 80 }
  0xe5   :  { %p7327_p4 = scmp.ne.s32.totalorder %s9392_s16, %s7326_s27  ;;  %p7330_p5 = scmp.lt.u32.totalorder %s7326_s27, %s9392_s16 }
  0xe7   :  { %p7332_p6 = pnand %p7330_p5, %p7327_p4 }
  0xe9   :  { %7335 = shalt.err (!%p7332_p6)
}
  0xea   :  { %s7336_s30 = scalar_lea.vmem %s161_s25, 80  ;;  %s7340_s18 = scalar_lea.vmem %s161_s25, 96 }
  0xeb   :  { %p7337_p7 = scmp.ne.s32.totalorder %s161_s25, %s7336_s30  ;;  %p7341_p8 = scmp.lt.s32.totalorder %s161_s25, %s161_s25 }
  0xec   :  { %p7342_p9 = scmp.lt.s32.totalorder %s7340_s18, %s7336_s30 }
  0xee   :  { %p7343_p10 = por %p7342_p9, %p7341_p8 }
  0xf0   :  { %p7344_p11 = pnand %p7343_p10, %p7337_p7 }
  0xf2   :  { %7347 = shalt.err (!%p7344_p11)
}
  0xf3   :  { %163 = dma.hbm_to_vmem [thread:$0]  %s9392_s16, 80, %s161_s25, [#allocation18]  }
  0xf4   :  { %s7424_s28 = smov [#allocation22]   ;;  %s7348_s23 = scalar_lea.hbm %s9396_s20, 32 }
  0xf5   :  { %s184_s3 = sshll.u32 %s7424_s28, 4  ;;  %p7349_p12 = scmp.ne.s32.totalorder %s9396_s20, %s7348_s23  ;;  %s185_s3 = int_to_ptr.vmem [resolvable:$true] %s184_s3 }
  0xf6   :  { %p7352_p13 = scmp.lt.u32.totalorder %s7348_s23, %s9396_s20 }
  0xf8   :  { %p7354_p0 = pnand %p7352_p13, %p7349_p12 }
  0xfa   :  { %7357 = shalt.err (!%p7354_p0)
}
  0xfb   :  { %s7358_s24 = scalar_lea.vmem %s185_s3, 32  ;;  %p7363_p2 = scmp.lt.s32.totalorder %s185_s3, %s185_s3 }
  0xfc   :  { %p7359_p1 = scmp.ne.s32.totalorder %s185_s3, %s7358_s24  ;;  %p7364_p3 = scmp.lt.s32.totalorder %s7358_s24, %s7358_s24 }
  0xfe   :  { %p7365_p4 = por %p7364_p3, %p7363_p2 }
 0x100   :  { %p7366_p5 = pnand %p7365_p4, %p7359_p1 }
 0x102   :  { %7369 = shalt.err (!%p7366_p5)
}
 0x103   :  { %187 = dma.hbm_to_vmem [thread:$0]  %s9396_s20, 32, %s185_s3, [#allocation21]  }
 0x104   :  { %7392 = dma.done.wait [#allocation3], 16  }
 0x105   :  { %7393 = vsyncadd [#allocation3], 4294967280 }
 0x106   :  { %7394 = dma.done.wait [#allocation6], 32  }
 0x107   :  { %7395 = vsyncadd [#allocation6], 4294967264 }
 0x108   :  { %7396 = dma.done.wait [#allocation9], 272  }
 0x109   :  { %7397 = vsyncadd [#allocation9], 4294967024 }
 0x10a   :  { %7398 = dma.done.wait [#allocation12], 288  }
 0x10b   :  { %7399 = vsyncadd [#allocation12], 4294967008 }
 0x10c   :  { %7400 = dma.done.wait [#allocation15], 3888  }
 0x10d   :  { %7401 = vsyncadd [#allocation15], 4294963408 }
 0x10e   :  { %7402 = dma.done.wait [#allocation18], 160  }
 0x10f   :  { %7403 = vsyncadd [#allocation18], 4294967136 }
 0x110   :  { %7404 = dma.done.wait [#allocation21], 80  }
 0x111   :  { %7405 = vsyncadd [#allocation21], 4294967216  ;;  %vm250_vm0 = vcmask 1043456   ;;  %vm7425_vm1 = vmmov 1   ;;  %vm243_vm3 = vcmask 97280   ;;  %s9425_s11 = sld [smem:[#allocation35_spill]] }
 0x112   :  { %vm7720_vm2 = vmpackc.low %vm250_vm0, %vm7425_vm1  ;;  %s9426_s9 = sld [smem:[#allocation33_spill]]  ;;  %s9427_s12 = sld [smem:[#allocation32_spill]]  ;;  %v7426_v12 = vmov 0.0   ;;  %vm7427_vm4 = vmmov 0   ;;  %v5502_v13 = vld [vmem:[#allocation5] ss:$0 sm:$0xff] }
 0x113   :  { %s9428_s14 = sld [smem:[#allocation37_spill]]  ;;  %v5498_v14 = vld [vmem:[#allocation2] ss:$0 sm:$0xff]  ;;  %v5506_v23 = vld [vmem:[#allocation7] ss:$0 sm:$0xff]  ;;  %vm657_vm5 = vcmask 64512  }
 0x114   :  { %v826_v52 = vld [vmem:[#allocation8] sm:$0xff]  ;;  %v827_v53 = vld [vmem:[#allocation8 + $0x8] sm:$0xf]  ;;  %v6383_v59 = vld [vmem:[#allocation11 + $0x4] ss:$8 sps:$4 sm:$0x3f]  }
 0x115   :  { %v6307_v54 = vpack.c.bf16 %v827_v53, %v826_v52  ;;  %v6385_v60 = vld [vmem:[#allocation11] ss:$8 sps:$4 sm:$0x3f]   ;;  %vm970_vm6 = vcmask 1045504   ;;  %v7428_v62 = vmov 0   ;;  %vm956_vm7 = vcmask 1041409  }
 0x116   :  { %v972_v61 = vsel %vm970_vm6, %v6385_v60, 0  ;;  %v6386_v63 = vld [vmem:[#allocation14] ss:$12 sps:$4 sm:$0xff]   ;;  %v6388_v0 = vld [vmem:[#allocation14 + $0x4] ss:$12 sps:$4 sm:$0xff]   ;;  %vm1239_vm8 = vcmask 261120  }
 0x117   :  { %v329_v1 = vld [vmem:[%s9425_s11] sm:$0xff]  ;;  %v330_v2 = vld [vmem:[%s9425_s11 + $0x8] sm:$0xf]  ;;  %vm1997_vm9 = vcmask 523264   ;;  %s9429_s26 = sld [smem:[#allocation40_spill]]  ;;  %s7429_s8 = smov [#allocation23]  }
 0x118   :  { %v234_v3 = vld [vmem:[%s9426_s9] sm:$0xff]  ;;  %v6295_v4 = vpack.c.bf16 %v330_v2, %v329_v1  ;;  %v235_v5 = vld [vmem:[%s9426_s9 + $0x8] sm:$0xf]  ;;  %s5483_s30 = sshll.u32 %s7429_s8, 4  ;;  %vm5475_vm10 = vcmask 222208   ;;  %s5484_s30 = int_to_ptr.vmem [resolvable:$true] %s5483_s30 }
 0x119   :  { %v232_v6 = vld [vmem:[%s9427_s12] sm:$0xff]  ;;  %v6289_v7 = vpack.c.bf16 %v235_v5, %v234_v3  ;;  %v233_v8 = vld [vmem:[%s9427_s12 + $0x8] sm:$0xff]  ;;  %s7370_s18 = scalar_lea.vmem %s5484_s30, 32  ;;  %p7375_p7 = scmp.lt.s32.totalorder %s5484_s30, %s5484_s30 }
 0x11a   :  { %6200 = vmatprep.mubr.msk.f32.mxu1 %vm243_vm3, %v232_v6  ;;  %6193 = vmatprep.mubr.msk.f32.mxu0 %vm243_vm3, %v232_v6  ;;  %v416_v9 = vld [vmem:[%s9428_s14] sm:$0xff]  ;;  %v417_v10 = vld [vmem:[%s9428_s14 + $0x8] sm:$0xf]  ;;  %p7371_p6 = scmp.ne.s32.totalorder %s5484_s30, %s7370_s18  ;;  %p7376_p8 = scmp.lt.s32.totalorder %s7370_s18, %s7370_s18 }
 0x11b   :  { %6297 = vmatprep.subr.msk.bf16.mxu1 %vm7720_vm2, %v6295_v4  ;;  %v6301_v11 = vpack.c.bf16 %v417_v10, %v416_v9  ;;  %6291 = vmatprep.subr.msk.bf16.mxu0 %vm7720_vm2, %v6289_v7  ;;  %v6392_v1 = vld [vmem:[#allocation14 + $0x1c] ss:$12 sps:$4 sm:$0xff]   ;;  %v6390_v2 = vld [vmem:[#allocation14 + $0x18] ss:$12 sps:$4 sm:$0xff]   ;;  %v6396_v3 = vld [vmem:[#allocation14 + $0x34] ss:$12 sps:$4 sm:$0xff]  }
 0x11c   :  { %6300 = vmatpush3.bf16.msk.msra.mxu1 %vm7720_vm2, %v6295_v4  ;;  %6294 = vmatpush3.bf16.msk.msra.mxu0 %vm7720_vm2, %v6289_v7  ;;  %v6394_v4 = vld [vmem:[#allocation14 + $0x30] ss:$12 sps:$4 sm:$0xff]   ;;  %v6400_v5 = vld [vmem:[#allocation14 + $0x4c] ss:$12 sps:$4 sm:$0xff]   ;;  %v6421_v53 = vld [vmem:[#allocation14 + $0xc8] ss:$12 sps:$4 sm:$0xff]   ;;  %p7377_p9 = por %p7376_p8, %p7375_p7 }
 0x11d   :  { %6303 = vmatprep.subr.msk.bf16.mxu0 %vm7720_vm2, %v6301_v11  ;;  %6210 = vmatprep.subr.mxu1 %v7426_v12  ;;  %v6404_v7 = vld [vmem:[#allocation14 + $0x64] ss:$12 sps:$4 sm:$0xff]   ;;  %v6408_v9 = vld [vmem:[#allocation14 + $0x7c] ss:$12 sps:$4 sm:$0xff]   ;;  %v6418_v52 = vld [vmem:[#allocation14 + $0xc0] ss:$12 sps:$4 sm:$0xff]  }
 0x11e   :  { %v6406_v10 = vld [vmem:[#allocation14 + $0x78] ss:$12 sps:$4 sm:$0xff]   ;;  %p7378_p10 = pnand %p7377_p9, %p7371_p6 }
 0x11f   :  { %6201 = vmatmul.mubr.msk.f32.vlgmr.msra.gmra.mrb[0].mxu1 %vm243_vm3, %v233_v8  ;;  %6194 = vmatmul.mubr.msk.f32.vlgmr.msra.gmra.mrb[0].mxu0 %vm243_vm3, %v233_v8 }
 0x120   :  { %6306 = vmatpush3.bf16.msk.msra.mxu0 %vm7720_vm2, %v6301_v11  ;;  %6207 = vmatprep.mubr.msk.f32.mxu0 %vm243_vm3, %v232_v6  ;;  %v6398_v6 = vld [vmem:[#allocation14 + $0x48] ss:$12 sps:$4 sm:$0xff]  }
 0x121   :  { %6215 = vmatprep.subr.mxu0 %v7426_v12  ;;  %6212 = vmatprep.mubr.msk.f32.mxu1 %vm7427_vm4, %v7426_v12  ;;  %v6412_v11 = vld [vmem:[#allocation14 + $0x94] ss:$12 sps:$4 sm:$0xff]  }
 0x123   :  { %6208 = vmatmul.mubr.msk.f32.vlgmr.msra.gmra.mrb[2].mxu0 %vm243_vm3, %v233_v8  ;;  %v6402_v8 = vld [vmem:[#allocation14 + $0x60] ss:$12 sps:$4 sm:$0xff]  }
 0x124   :  { %6217 = vmatprep.mubr.msk.f32.mxu0 %vm7427_vm4, %v7426_v12 }
 0x1f2   :  { %v6202_v15 = vpop.f32.mrb[0].mxu1  ;;  %v6195_v18 = vpop.f32.mrb[0].mxu0 }
 0x1f3   :  { %v413_v16 = vadd.f32 %v6202_v15, %v5502_v13  ;;  %v407_v17 = vpop.f32.mrb[1].mxu1  ;;  %v326_v20 = vadd.f32 %v6195_v18, %v5498_v14  ;;  %v320_v21 = vpop.f32.mrb[1].mxu0  ;;  %v6414_v15 = vld [vmem:[#allocation14 + $0xa8] ss:$12 sps:$4 sm:$0xff]  }
 0x1f4   :  { %v408_v19 = vadd.f32 %v5502_v13, %v407_v17  ;;  %v321_v22 = vadd.f32 %v5498_v14, %v320_v21  ;;  %v6410_v13 = vld [vmem:[#allocation14 + $0x90] ss:$12 sps:$4 sm:$0xff]   ;;  %v6416_v14 = vld [vmem:[#allocation14 + $0xac] ss:$12 sps:$4 sm:$0xff]  }
 0x1f5   :  { %6216 = vmatpush3.xpose.msk.msra.mxu0 %vm243_vm3, %v413_v16  ;;  %v5516_v16 = vld [vmem:[#allocation10] ss:$0 sm:$0xff] }
 0x1f6   :  { %6211 = vmatpush3.xpose.msk.msra.mxu1 %vm243_vm3, %v408_v19  ;;  %6225 = vmatprep.subr.mxu0 %v7426_v12  ;;  %v6209_v24 = vpop.f32.mrb[2].mxu0 }
 0x1f7   :  { %6220 = vmatprep.subr.mxu1 %v7426_v12  ;;  %v500_v25 = vadd.f32 %v6209_v24, %v5506_v23  ;;  %v494_v26 = vpop.f32.mrb[3].mxu0 }
 0x1f8   :  { %6218 = vmatmul.mubr.msk.f32.vlgmr.msra.gmra.mrb[4].mxu0 %vm243_vm3, %v326_v20  ;;  %v495_v27 = vadd.f32 %v5506_v23, %v494_v26 }
 0x1f9   :  { %6213 = vmatmul.mubr.msk.f32.vlgmr.msra.gmra.mrb[2].mxu1 %vm243_vm3, %v321_v22  ;;  %6227 = vmatprep.mubr.msk.f32.mxu0 %vm7427_vm4, %v7426_v12 }
 0x1fa   :  { %6226 = vmatpush3.msra.mxu0 %v500_v25  ;;  %6222 = vmatprep.mubr.msk.f32.mxu1 %vm7427_vm4, %v7426_v12 }
 0x1fb   :  { %6221 = vmatpush3.msra.mxu1 %v495_v27  ;;  %5522 = vmatprep.subr.msk.bf16.mxu0 %vm970_vm6, %v6383_v59  ;;  %v942_v59 = vlaneseq }
 0x1fc   :  { %6309 = vmatprep.subr.msk.bf16.mxu1 %vm7720_vm2, %v6307_v54 }
 0x1fd   :  { %v7814_v60 = vshrl.u32 %v942_v59, 7  ;;  %v6495_v59 = vld [vmem:[%s9389_s13 + $0x1c0] ss:$20 sps:$4 sm:$0xff]  }
 0x2cb   :  { %v651_v28 = vpop.f32.mrb[4].mxu0 }
 0x2cc   :  { %v575_v29 = vpop.f32.mrb[2].mxu1  ;;  %v6219_v30 = vpop.f32.mrb[5].mxu0  ;;  %v656_v33 = vmul.f32 0.70710677, %v651_v28 }
 0x2cd   :  { %v655_v31 = vmul.f32 0.70710677, %v575_v29  ;;  %v6214_v32 = vpop.f32.mrb[3].mxu1 }
 0x2ce   :  { %v661_v35 = vsel %vm657_vm5, %v656_v33, -inf }
 0x2cf   :  { %v658_v34 = vsel %vm657_vm5, %v655_v31, -inf }
 0x2d0   :  { %659 = vmax.xlane.f32.xlu0 %v658_v34 }
 0x2d4   :  { %662 = vmax.xlane.f32.xlu0 %v661_v35 }
 0x35d   :  { %v660_v36 = vpop.xlane.xlu0 %659 }
 0x35e   :  { %v664_v37 = vsub.f32 %v655_v31, %v660_v36 }
 0x360   :  { %v666_v38 = vmul.f32 1.442695, %v664_v37 }
 0x361   :  { %v663_v39 = vpop.xlane.xlu0 %662 }
 0x362   :  { %7076 = vpow2.f32 %v666_v38  ;;  %v665_v40 = vsub.f32 %v656_v33, %v663_v39 }
 0x364   :  { %v668_v41 = vmul.f32 1.442695, %v665_v40 }
 0x366   :  { %7078 = vpow2.f32 %v668_v41 }
 0x36c   :  { %v7077_v42 = vpop.eup %7076 }
 0x36d   :  { %v670_v43 = vsel %vm657_vm5, %v7077_v42, 0.0 }
 0x36e   :  { %671 = vadd.xlane.f32.xlu1 %v670_v43 }
 0x370   :  { %v7079_v44 = vpop.eup %7078 }
 0x371   :  { %v673_v45 = vsel %vm657_vm5, %v7079_v44, 0.0 }
 0x372   :  { %674 = vadd.xlane.f32.xlu1 %v673_v45  ;;  %v6397_v45 = vld [vmem:[#allocation14 + $0x38] ss:$12 sps:$4 sm:$0xff]  }
 0x3fb   :  { %v672_v46 = vpop.xlane.xlu1 %671 }
 0x3fc   :  { %7080 = vrcp.f32 %v672_v46  ;;  %v6401_v46 = vld [vmem:[#allocation14 + $0x50] ss:$12 sps:$4 sm:$0xff]  }
 0x3ff   :  { %v675_v47 = vpop.xlane.xlu1 %674 }
 0x400   :  { %7082 = vrcp.f32 %v675_v47  ;;  %v6405_v47 = vld [vmem:[#allocation14 + $0x68] ss:$12 sps:$4 sm:$0xff]  }
 0x406   :  { %v7081_v48 = vpop.eup %7080 }
 0x407   :  { %v678_v49 = vmul.f32 %v7081_v48, %v7077_v42  ;;  %v6389_v42 = vld [vmem:[#allocation14 + $0x8] ss:$12 sps:$4 sm:$0xff]   ;;  %v6409_v48 = vld [vmem:[#allocation14 + $0x80] ss:$12 sps:$4 sm:$0xff]  }
 0x409   :  { %6223 = vmatmul.mubr.msk.f32.vlgmr.msra.gmra.mrb[4].mxu1 %vm657_vm5, %v678_v49  ;;  %v6413_v49 = vld [vmem:[#allocation14 + $0x98] ss:$12 sps:$4 sm:$0xff]  }
 0x40a   :  { %v7083_v50 = vpop.eup %7082  ;;  %6312 = vmatpush3.bf16.msk.msra.mxu1 %vm7720_vm2, %v6307_v54  ;;  %v6424_v54 = vld [vmem:[#allocation14 + $0xdc] ss:$12 sps:$4 sm:$0xff]  }
 0x40b   :  { %v679_v51 = vmul.f32 %v7083_v50, %v7079_v44  ;;  %1243 = vmatprep.subr.bf16.mxu1 %v6388_v0  ;;  %v6393_v44 = vld [vmem:[#allocation14 + $0x20] ss:$12 sps:$4 sm:$0xff]   ;;  %v6417_v50 = vld [vmem:[#allocation14 + $0xb0] ss:$12 sps:$4 sm:$0xff]   ;;  %v7820_v0 = vsub.s32 1, %v7814_v60 }
 0x40d   :  { %6228 = vmatmul.mubr.msk.f32.vlgmr.msra.gmra.mrb[6].mxu0 %vm657_vm5, %v679_v51  ;;  %v6420_v51 = vld [vmem:[#allocation14 + $0xc4] ss:$12 sps:$4 sm:$0xff]  }
 0x40e   :  { %1009 = vmatprep.mubr.bf16.mxu0 %v7428_v62  ;;  %978 = vmatpush1.bf16.msra.mxu0 %v972_v61  ;;  %v7817_v61 = vsub.s32 0, %v7814_v60 }
 0x40f   :  { %1284 = vmatprep.subr.bf16.mxu0 %v7428_v62 }
 0x4dc   :  { %v749_v55 = vpop.f32.mrb[4].mxu1 }
 0x4dd   :  { %v6224_v56 = vpop.f32.mrb[5].mxu1  ;;  %6234 = vmatprep.mubr.msk.f32.mxu1 %vm243_vm3, %v749_v55  ;;  %v6422_v55 = vld [vmem:[#allocation14 + $0xd8] ss:$12 sps:$4 sm:$0xff]  }
 0x4de   :  { %v6425_v56 = vld [vmem:[#allocation14 + $0xe0] ss:$12 sps:$4 sm:$0xff]  }
 0x4e0   :  { %v822_v57 = vpop.f32.mrb[6].mxu0 }
 0x4e1   :  { %v6229_v58 = vpop.f32.mrb[7].mxu0  ;;  %6235 = vmatmul.mubr.msk.f32.vlgmr.msra.gmra.mrb[6].mxu1 %vm243_vm3, %v822_v57  ;;  %v6428_v57 = vld [vmem:[%s9389_s13 + $0x4] ss:$20 sps:$4 sm:$0xff]  }
 0x4e2   :  { %1244 = vmatpush1.bf16.msra.mxu1 %v6386_v63  ;;  %v6431_v58 = vld [vmem:[%s9389_s13 + $0xc] ss:$20 sps:$4 sm:$0xff]   ;;  %v940_v63 = vld [vmem:[#allocation13] sm:$0x3] }
 0x4e3   :  { %1245 = vmatprep.subr.bf16.mxu1 %v6392_v1  ;;  %v945_v1 = vrot.slane %v940_v63, %v7817_v61 }
 0x4e6   :  { %1246 = vmatpush1.bf16.msra.mxu1 %v6390_v2  ;;  %v949_v2 = vrot.slane %v940_v63, %v7820_v0  ;;  %v6500_v63 = vld [vmem:[%s9389_s13 + $0x1e4] ss:$20 sps:$4 sm:$0xff]  }
 0x4e7   :  { %1247 = vmatprep.subr.bf16.mxu1 %v6396_v3 }
 0x4ea   :  { %1248 = vmatpush1.bf16.msra.mxu1 %v6394_v4 }
 0x4eb   :  { %1249 = vmatprep.subr.bf16.mxu1 %v6400_v5 }
 0x4ee   :  { %1250 = vmatpush1.bf16.msra.mxu1 %v6398_v6 }
 0x4ef   :  { %1251 = vmatprep.subr.bf16.mxu1 %v6404_v7 }
 0x4f2   :  { %1252 = vmatpush1.bf16.msra.mxu1 %v6402_v8 }
 0x4f3   :  { %1253 = vmatprep.subr.bf16.mxu1 %v6408_v9 }
 0x4f6   :  { %1254 = vmatpush1.bf16.msra.mxu1 %v6406_v10 }
 0x4f7   :  { %1255 = vmatprep.subr.bf16.mxu1 %v6412_v11 }
 0x4fa   :  { %1256 = vmatpush1.bf16.msra.mxu1 %v6410_v13  ;;  %v6426_v13 = vld [vmem:[%s9389_s13] ss:$20 sps:$4 sm:$0xff]  }
 0x4fb   :  { %1257 = vmatprep.subr.bf16.mxu1 %v6416_v14  ;;  %v6429_v14 = vld [vmem:[%s9389_s13 + $0x8] ss:$20 sps:$4 sm:$0xff]  }
 0x4fe   :  { %1258 = vmatpush1.bf16.msra.mxu1 %v6414_v15 }
 0x4ff   :  { %1259 = vmatprep.subr.bf16.mxu1 %v6420_v51  ;;  %v6483_v51 = vld [vmem:[%s9389_s13 + $0x170] ss:$20 sps:$4 sm:$0xff]  }
 0x502   :  { %1260 = vmatpush1.bf16.msra.mxu1 %v6418_v52  ;;  %v6488_v52 = vld [vmem:[%s9389_s13 + $0x194] ss:$20 sps:$4 sm:$0xff]  }
 0x503   :  { %1261 = vmatprep.subr.bf16.mxu1 %v6424_v54  ;;  %v6486_v54 = vld [vmem:[%s9389_s13 + $0x190] ss:$20 sps:$4 sm:$0xff]  }
 0x506   :  { %1262 = vmatpush1.bf16.msra.mxu1 %v6422_v55  ;;  %v6489_v55 = vld [vmem:[%s9389_s13 + $0x198] ss:$20 sps:$4 sm:$0xff]  }
 0x507   :  { %2001 = vmatprep.subr.bf16.mxu1 %v6428_v57  ;;  %v6497_v57 = vld [vmem:[%s9389_s13 + $0x1c4] ss:$20 sps:$4 sm:$0xff]  }
 0x5b4   :  { %v6236_v17 = vpop.f32.mrb[6].mxu1 }
 0x5b5   :  { %v916_v18 = vadd.f32 %v6236_v17, %v5516_v16  ;;  %v910_v19 = vpop.f32.mrb[7].mxu1  ;;  %v6437_v17 = vld [vmem:[%s9389_s13 + $0x34] ss:$20 sps:$4 sm:$0xff]  }
 0x5b6   :  { %v911_v20 = vadd.f32 %v5516_v16, %v910_v19  ;;  %v6434_v16 = vld [vmem:[%s9389_s13 + $0x2c] ss:$20 sps:$4 sm:$0xff]   ;;  %v6435_v19 = vld [vmem:[%s9389_s13 + $0x30] ss:$20 sps:$4 sm:$0xff]  }
 0x5b7   :  { %v926_v21 = vsel %vm243_vm3, %v916_v18, 0.0  ;;  %v6432_v18 = vld [vmem:[%s9389_s13 + $0x28] ss:$20 sps:$4 sm:$0xff]  }
 0x5b8   :  { %v927_v22 = vrot.slane %v926_v21, 4  ;;  %v919_v23 = vsel %vm243_vm3, %v911_v20, 0.0  ;;  %v6440_v20 = vld [vmem:[%s9389_s13 + $0x54] ss:$20 sps:$4 sm:$0xff]  }
 0x5b9   :  { %v920_v24 = vrot.slane %v919_v23, 4 }
 0x5ba   :  { %v928_v25 = vadd.f32 %v927_v22, %v926_v21  ;;  %v6443_v21 = vld [vmem:[%s9389_s13 + $0x5c] ss:$20 sps:$4 sm:$0xff]  }
 0x5bb   :  { %v921_v26 = vadd.f32 %v920_v24, %v919_v23  ;;  %v6438_v22 = vld [vmem:[%s9389_s13 + $0x50] ss:$20 sps:$4 sm:$0xff]   ;;  %v6441_v23 = vld [vmem:[%s9389_s13 + $0x58] ss:$20 sps:$4 sm:$0xff]  }
 0x5bc   :  { %v929_v27 = vrot.slane %v928_v25, 2  ;;  %v6446_v24 = vld [vmem:[%s9389_s13 + $0x7c] ss:$20 sps:$4 sm:$0xff]  }
 0x5bd   :  { %v922_v28 = vrot.slane %v921_v26, 2 }
 0x5be   :  { %v930_v29 = vadd.f32 %v929_v27, %v928_v25  ;;  %v6449_v25 = vld [vmem:[%s9389_s13 + $0x84] ss:$20 sps:$4 sm:$0xff]   ;;  %v6447_v27 = vld [vmem:[%s9389_s13 + $0x80] ss:$20 sps:$4 sm:$0xff]  }
 0x5bf   :  { %v923_v30 = vadd.f32 %v922_v28, %v921_v26  ;;  %v6444_v26 = vld [vmem:[%s9389_s13 + $0x78] ss:$20 sps:$4 sm:$0xff]  }
 0x5c0   :  { %v931_v31 = vrot.slane %v930_v29, 1  ;;  %v6452_v28 = vld [vmem:[%s9389_s13 + $0xa4] ss:$20 sps:$4 sm:$0xff]  }
 0x5c1   :  { %v924_v32 = vrot.slane %v923_v30, 1 }
 0x5c2   :  { %v932_v33 = vadd.f32 %v931_v31, %v930_v29  ;;  %v6455_v29 = vld [vmem:[%s9389_s13 + $0xac] ss:$20 sps:$4 sm:$0xff]   ;;  %v6453_v31 = vld [vmem:[%s9389_s13 + $0xa8] ss:$20 sps:$4 sm:$0xff]  }
 0x5c3   :  { %v925_v34 = vadd.f32 %v924_v32, %v923_v30  ;;  %v6450_v30 = vld [vmem:[%s9389_s13 + $0xa0] ss:$20 sps:$4 sm:$0xff]  }
 0x5c4   :  { %v935_v35 = vmul.f32 0.125, %v932_v33  ;;  %v6458_v32 = vld [vmem:[%s9389_s13 + $0xcc] ss:$20 sps:$4 sm:$0xff]   ;;  %v6461_v33 = vld [vmem:[%s9389_s13 + $0xd4] ss:$20 sps:$4 sm:$0xff]  }
 0x5c5   :  { %v934_v36 = vmul.f32 0.125, %v925_v34  ;;  %v6456_v34 = vld [vmem:[%s9389_s13 + $0xc8] ss:$20 sps:$4 sm:$0xff]  }
 0x5c6   :  { %v937_v37 = vpack.c.bf16 %v935_v35, %v935_v35  ;;  %v6459_v35 = vld [vmem:[%s9389_s13 + $0xd0] ss:$20 sps:$4 sm:$0xff]  }
 0x5c7   :  { %v936_v38 = vpack.c.bf16 %v934_v36, %v934_v36  ;;  %v6464_v36 = vld [vmem:[%s9389_s13 + $0xf4] ss:$20 sps:$4 sm:$0xff]  }
 0x5c8   :  { %v955_v39 = vunpack.c.l.b16 %v937_v37  ;;  %v6467_v37 = vld [vmem:[%s9389_s13 + $0xfc] ss:$20 sps:$4 sm:$0xff]  }
 0x5c9   :  { %v954_v40 = vunpack.c.l.b16 %v936_v38  ;;  %v6462_v38 = vld [vmem:[%s9389_s13 + $0xf0] ss:$20 sps:$4 sm:$0xff]  }
 0x5cb   :  { %v957_v41 = vsel %vm956_vm7, %v955_v39, %v954_v40  ;;  %v6465_v39 = vld [vmem:[%s9389_s13 + $0xf8] ss:$20 sps:$4 sm:$0xff]   ;;  %v6470_v40 = vld [vmem:[%s9389_s13 + $0x11c] ss:$20 sps:$4 sm:$0xff]  }
 0x5cc   :  { %v958_v43 = vpack.c.b16 %v957_v41, %v957_v41  ;;  %v6473_v41 = vld [vmem:[%s9389_s13 + $0x124] ss:$20 sps:$4 sm:$0xff]  }
 0x5ce   :  { %5523 = vmatmul.mubr.msk.bf16.vlgmr.msra.gmra.mrb[8].mxu0 %vm243_vm3, %v958_v43  ;;  %v6471_v43 = vld [vmem:[%s9389_s13 + $0x120] ss:$20 sps:$4 sm:$0xff]  }
 0x5cf   :  { %1285 = vmatpush1.bf16.msra.mxu0 %v6389_v42  ;;  %v6468_v42 = vld [vmem:[%s9389_s13 + $0x118] ss:$20 sps:$4 sm:$0xff]  }
 0x5d0   :  { %1286 = vmatprep.subr.bf16.mxu0 %v7428_v62 }
 0x5d3   :  { %1287 = vmatpush1.bf16.msra.mxu0 %v6393_v44  ;;  %v6476_v44 = vld [vmem:[%s9389_s13 + $0x144] ss:$20 sps:$4 sm:$0xff]  }
 0x5d4   :  { %1288 = vmatprep.subr.bf16.mxu0 %v7428_v62 }
 0x5d7   :  { %1289 = vmatpush1.bf16.msra.mxu0 %v6397_v45  ;;  %v6479_v45 = vld [vmem:[%s9389_s13 + $0x14c] ss:$20 sps:$4 sm:$0xff]  }
 0x5d8   :  { %1290 = vmatprep.subr.bf16.mxu0 %v7428_v62 }
 0x5db   :  { %1291 = vmatpush1.bf16.msra.mxu0 %v6401_v46  ;;  %v6474_v46 = vld [vmem:[%s9389_s13 + $0x140] ss:$20 sps:$4 sm:$0xff]  }
 0x5dc   :  { %1292 = vmatprep.subr.bf16.mxu0 %v7428_v62 }
 0x5df   :  { %1293 = vmatpush1.bf16.msra.mxu0 %v6405_v47  ;;  %v6477_v47 = vld [vmem:[%s9389_s13 + $0x148] ss:$20 sps:$4 sm:$0xff]  }
 0x5e0   :  { %1294 = vmatprep.subr.bf16.mxu0 %v7428_v62 }
 0x5e3   :  { %1295 = vmatpush1.bf16.msra.mxu0 %v6409_v48  ;;  %v6482_v48 = vld [vmem:[%s9389_s13 + $0x16c] ss:$20 sps:$4 sm:$0xff]  }
 0x5e4   :  { %1296 = vmatprep.subr.bf16.mxu0 %v7428_v62 }
 0x5e7   :  { %1297 = vmatpush1.bf16.msra.mxu0 %v6413_v49  ;;  %v6485_v49 = vld [vmem:[%s9389_s13 + $0x174] ss:$20 sps:$4 sm:$0xff]  }
 0x5e8   :  { %1298 = vmatprep.subr.bf16.mxu0 %v7428_v62 }
 0x5eb   :  { %1299 = vmatpush1.bf16.msra.mxu0 %v6417_v50  ;;  %v6480_v50 = vld [vmem:[%s9389_s13 + $0x168] ss:$20 sps:$4 sm:$0xff]  }
 0x5ec   :  { %1300 = vmatprep.subr.bf16.mxu0 %v7428_v62 }
 0x5ef   :  { %1301 = vmatpush1.bf16.msra.mxu0 %v6421_v53  ;;  %v6491_v53 = vld [vmem:[%s9389_s13 + $0x19c] ss:$20 sps:$4 sm:$0xff]  }
 0x5f0   :  { %1302 = vmatprep.subr.bf16.mxu0 %v7428_v62 }
 0x5f3   :  { %1303 = vmatpush1.bf16.msra.mxu0 %v6425_v56  ;;  %v6494_v56 = vld [vmem:[%s9389_s13 + $0x1bc] ss:$20 sps:$4 sm:$0xff]  }
 0x5f4   :  { %2083 = vmatprep.subr.bf16.mxu0 %v6431_v58  ;;  %v6492_v58 = vld [vmem:[%s9389_s13 + $0x1b8] ss:$20 sps:$4 sm:$0xff]  }
 0x6a1   :  { %v1011_v3 = vpop.f32.mrb[8].mxu0 }
 0x6a2   :  { %v1012_v4 = vadd.f32 %v1011_v3, %v945_v1  ;;  %v1013_v5 = vpop.f32.mrb[9].mxu0  ;;  %v6503_v1 = vld [vmem:[%s9389_s13 + $0x1ec] ss:$20 sps:$4 sm:$0xff]   ;;  %v6501_v3 = vld [vmem:[%s9389_s13 + $0x1e8] ss:$20 sps:$4 sm:$0xff]  }
 0x6a3   :  { %v1014_v6 = vadd.f32 %v1013_v5, %v949_v2  ;;  %v1015_v7 = vpop.f32.mrb[10].mxu0  ;;  %v6498_v2 = vld [vmem:[%s9389_s13 + $0x1e0] ss:$20 sps:$4 sm:$0xff]  }
 0x6a4   :  { %v1018_v8 = vmax.f32 %v1012_v4, 0.0  ;;  %v1016_v9 = vpop.f32.mrb[11].mxu0  ;;  %v6506_v4 = vld [vmem:[%s9389_s13 + $0x20c] ss:$20 sps:$4 sm:$0xff]   ;;  %v6509_v5 = vld [vmem:[%s9389_s13 + $0x214] ss:$20 sps:$4 sm:$0xff]  }
 0x6a5   :  { %v1019_v10 = vmax.f32 %v1014_v6, 0.0  ;;  %v6504_v6 = vld [vmem:[%s9389_s13 + $0x208] ss:$20 sps:$4 sm:$0xff]   ;;  %v6507_v7 = vld [vmem:[%s9389_s13 + $0x210] ss:$20 sps:$4 sm:$0xff]  }
 0x6a6   :  { %v1020_v15 = vpack.c.bf16 %v1018_v8, %v1018_v8  ;;  %v6512_v8 = vld [vmem:[%s9389_s13 + $0x234] ss:$20 sps:$4 sm:$0xff]   ;;  %v6515_v9 = vld [vmem:[%s9389_s13 + $0x23c] ss:$20 sps:$4 sm:$0xff]  }
 0x6a7   :  { %v1021_v11 = vpack.c.bf16 %v1019_v10, %v1019_v10  ;;  %v6510_v10 = vld [vmem:[%s9389_s13 + $0x230] ss:$20 sps:$4 sm:$0xff]  }
 0x6a9   :  { %5554 = vmatprep.mubr.msk.bf16.mxu1 %vm1239_vm8, %v1021_v11  ;;  %5555 = vmatprep.mubr.msk.bf16.mxu0 %vm1239_vm8, %v1021_v11  ;;  %v6513_v11 = vld [vmem:[%s9389_s13 + $0x238] ss:$20 sps:$4 sm:$0xff]  }
 0x6aa   :  { %1276 = vmatmul.mubr.bf16.vlgmr.msra.gmra.mrb[8].mxu1 %v1020_v15  ;;  %1317 = vmatmul.mubr.bf16.vlgmr.msra.gmra.mrb[12].mxu0 %v1020_v15  ;;  %v6516_v15 = vld [vmem:[%s9389_s13 + $0x258] ss:$20 sps:$4 sm:$0xff]  }
 0x6ab   :  { %2002 = vmatpush1.bf16.msra.mxu1 %v6426_v13  ;;  %2084 = vmatpush1.bf16.msra.mxu0 %v6429_v14  ;;  %v6518_v13 = vld [vmem:[%s9389_s13 + $0x25c] ss:$20 sps:$4 sm:$0xff]   ;;  %v6521_v14 = vld [vmem:[%s9389_s13 + $0x264] ss:$20 sps:$4 sm:$0xff]  }
 0x6ac   :  { %2003 = vmatprep.subr.bf16.mxu1 %v6434_v16  ;;  %2085 = vmatprep.subr.bf16.mxu0 %v6437_v17  ;;  %v6519_v16 = vld [vmem:[%s9389_s13 + $0x260] ss:$20 sps:$4 sm:$0xff]   ;;  %v6524_v17 = vld [vmem:[%s9389_s13 + $0x284] ss:$20 sps:$4 sm:$0xff]  }
 0x6af   :  { %2004 = vmatpush1.bf16.msra.mxu1 %v6432_v18  ;;  %2086 = vmatpush1.bf16.msra.mxu0 %v6435_v19  ;;  %v6527_v18 = vld [vmem:[%s9389_s13 + $0x28c] ss:$20 sps:$4 sm:$0xff]   ;;  %v1062_v19 = vld [vmem:[#allocation16] sm:$0x7] }
 0x6b0   :  { %2005 = vmatprep.subr.bf16.mxu1 %v6440_v20  ;;  %2087 = vmatprep.subr.bf16.mxu0 %v6443_v21  ;;  %v1067_v20 = vrot.slane %v1062_v19, %v7817_v61  ;;  %v1071_v21 = vrot.slane %v1062_v19, %v7820_v0 }
 0x6b3   :  { %2006 = vmatpush1.bf16.msra.mxu1 %v6438_v22  ;;  %2088 = vmatpush1.bf16.msra.mxu0 %v6441_v23 }
 0x6b4   :  { %2007 = vmatprep.subr.bf16.mxu1 %v6446_v24  ;;  %2089 = vmatprep.subr.bf16.mxu0 %v6449_v25 }
 0x6b7   :  { %2008 = vmatpush1.bf16.msra.mxu1 %v6444_v26  ;;  %2090 = vmatpush1.bf16.msra.mxu0 %v6447_v27 }
 0x6b8   :  { %2009 = vmatprep.subr.bf16.mxu1 %v6452_v28  ;;  %2091 = vmatprep.subr.bf16.mxu0 %v6455_v29 }
 0x6bb   :  { %2010 = vmatpush1.bf16.msra.mxu1 %v6450_v30  ;;  %2092 = vmatpush1.bf16.msra.mxu0 %v6453_v31 }
 0x6bc   :  { %2011 = vmatprep.subr.bf16.mxu1 %v6458_v32  ;;  %2093 = vmatprep.subr.bf16.mxu0 %v6461_v33 }
 0x6bf   :  { %2012 = vmatpush1.bf16.msra.mxu1 %v6456_v34  ;;  %2094 = vmatpush1.bf16.msra.mxu0 %v6459_v35  ;;  %v6522_v35 = vld [vmem:[%s9389_s13 + $0x280] ss:$20 sps:$4 sm:$0xff]  }
 0x6c0   :  { %2013 = vmatprep.subr.bf16.mxu1 %v6464_v36  ;;  %2095 = vmatprep.subr.bf16.mxu0 %v6467_v37  ;;  %v6525_v36 = vld [vmem:[%s9389_s13 + $0x288] ss:$20 sps:$4 sm:$0xff]  }
 0x6c3   :  { %2014 = vmatpush1.bf16.msra.mxu1 %v6462_v38  ;;  %2096 = vmatpush1.bf16.msra.mxu0 %v6465_v39  ;;  %v8029_v38 = vsub.s32 2, %v7814_v60  ;;  %v6530_v39 = vld [vmem:[%s9389_s13 + $0x2ac] ss:$20 sps:$4 sm:$0xff]  }
 0x6c4   :  { %2015 = vmatprep.subr.bf16.mxu1 %v6470_v40  ;;  %2097 = vmatprep.subr.bf16.mxu0 %v6473_v41  ;;  %v6533_v40 = vld [vmem:[%s9389_s13 + $0x2b4] ss:$20 sps:$4 sm:$0xff]  }
 0x6c5   :  { %v6528_v41 = vld [vmem:[%s9389_s13 + $0x2a8] ss:$20 sps:$4 sm:$0xff]  }
 0x6c7   :  { %2016 = vmatpush1.bf16.msra.mxu1 %v6468_v42  ;;  %2098 = vmatpush1.bf16.msra.mxu0 %v6471_v43  ;;  %v6531_v42 = vld [vmem:[%s9389_s13 + $0x2b0] ss:$20 sps:$4 sm:$0xff]   ;;  %v1075_v43 = vrot.slane %v1062_v19, %v8029_v38  ;;  %v6564_v19 = vld [vmem:[%s9389_s13 + $0x268] ss:$20 sps:$4 sm:$0xff]  }
 0x6c8   :  { %2017 = vmatprep.subr.bf16.mxu1 %v6476_v44  ;;  %2099 = vmatprep.subr.bf16.mxu0 %v6479_v45  ;;  %v6536_v44 = vld [vmem:[%s9389_s13 + $0x2d4] ss:$20 sps:$4 sm:$0xff]   ;;  %v6539_v45 = vld [vmem:[%s9389_s13 + $0x2dc] ss:$20 sps:$4 sm:$0xff]  }
 0x6cb   :  { %2018 = vmatpush1.bf16.msra.mxu1 %v6474_v46  ;;  %2100 = vmatpush1.bf16.msra.mxu0 %v6477_v47  ;;  %v6534_v46 = vld [vmem:[%s9389_s13 + $0x2d0] ss:$20 sps:$4 sm:$0xff]   ;;  %v6537_v47 = vld [vmem:[%s9389_s13 + $0x2d8] ss:$20 sps:$4 sm:$0xff]  }
 0x6cc   :  { %2019 = vmatprep.subr.bf16.mxu1 %v6482_v48  ;;  %2101 = vmatprep.subr.bf16.mxu0 %v6485_v49  ;;  %v6542_v49 = vld [vmem:[%s9389_s13 + $0x2fc] ss:$20 sps:$4 sm:$0xff]  }
 0x6cf   :  { %2020 = vmatpush1.bf16.msra.mxu1 %v6480_v50  ;;  %2102 = vmatpush1.bf16.msra.mxu0 %v6483_v51  ;;  %v6545_v50 = vld [vmem:[%s9389_s13 + $0x304] ss:$20 sps:$4 sm:$0xff]  }
 0x6d0   :  { %2021 = vmatprep.subr.bf16.mxu1 %v6488_v52  ;;  %2103 = vmatprep.subr.bf16.mxu0 %v6491_v53  ;;  %v6540_v51 = vld [vmem:[%s9389_s13 + $0x2f8] ss:$20 sps:$4 sm:$0xff]   ;;  %v6543_v52 = vld [vmem:[%s9389_s13 + $0x300] ss:$20 sps:$4 sm:$0xff]  }
 0x6d3   :  { %2022 = vmatpush1.bf16.msra.mxu1 %v6486_v54  ;;  %2104 = vmatpush1.bf16.msra.mxu0 %v6489_v55  ;;  %v6546_v54 = vld [vmem:[%s9389_s13 + $0x150] ss:$20 sps:$4 sm:$0xff]  }
 0x6d4   :  { %2023 = vmatprep.subr.bf16.mxu1 %v6494_v56  ;;  %2105 = vmatprep.subr.bf16.mxu0 %v6497_v57  ;;  %v6547_v55 = vld [vmem:[%s9389_s13 + $0x10] ss:$20 sps:$4 sm:$0xff]  }
 0x6d5   :  { %v6548_v57 = vld [vmem:[%s9389_s13 + $0x290] ss:$20 sps:$4 sm:$0xff]  }
 0x6d7   :  { %2024 = vmatpush1.bf16.msra.mxu1 %v6492_v58  ;;  %2106 = vmatpush1.bf16.msra.mxu0 %v6495_v59  ;;  %v6549_v58 = vld [vmem:[%s9389_s13 + $0x178] ss:$20 sps:$4 sm:$0xff]  }
 0x6d8   :  { %2025 = vmatprep.subr.bf16.mxu1 %v6500_v63  ;;  %2107 = vmatprep.subr.bf16.mxu0 %v6503_v1  ;;  %v6550_v59 = vld [vmem:[%s9389_s13 + $0x38] ss:$20 sps:$4 sm:$0xff]   ;;  %v6552_v1 = vld [vmem:[%s9389_s13 + $0x1a0] ss:$20 sps:$4 sm:$0xff]  }
 0x6d9   :  { %v6551_v63 = vld [vmem:[%s9389_s13 + $0x2b8] ss:$20 sps:$4 sm:$0xff]  }
 0x6db   :  { %2026 = vmatpush1.bf16.msra.mxu1 %v6498_v2  ;;  %2108 = vmatpush1.bf16.msra.mxu0 %v6501_v3  ;;  %v6553_v2 = vld [vmem:[%s9389_s13 + $0x60] ss:$20 sps:$4 sm:$0xff]  }
 0x6dc   :  { %2027 = vmatprep.subr.bf16.mxu1 %v6506_v4  ;;  %2109 = vmatprep.subr.bf16.mxu0 %v6509_v5  ;;  %v6554_v3 = vld [vmem:[%s9389_s13 + $0x2e0] ss:$20 sps:$4 sm:$0xff]   ;;  %v6555_v4 = vld [vmem:[%s9389_s13 + $0x1c8] ss:$20 sps:$4 sm:$0xff]  }
 0x6dd   :  { %v6556_v5 = vld [vmem:[%s9389_s13 + $0x88] ss:$20 sps:$4 sm:$0xff]  }
 0x6df   :  { %2028 = vmatpush1.bf16.msra.mxu1 %v6504_v6  ;;  %2110 = vmatpush1.bf16.msra.mxu0 %v6507_v7  ;;  %v6557_v6 = vld [vmem:[%s9389_s13 + $0x308] ss:$20 sps:$4 sm:$0xff]   ;;  %v6558_v7 = vld [vmem:[%s9389_s13 + $0x1f0] ss:$20 sps:$4 sm:$0xff]  }
 0x6e0   :  { %2029 = vmatprep.subr.bf16.mxu1 %v6512_v8  ;;  %2111 = vmatprep.subr.bf16.mxu0 %v6515_v9  ;;  %v6568_v8 = vld [vmem:[%s9391_s15 + $0x4] ss:$20 sps:$4 sm:$0xff]  }
 0x6e1   :  { %v6559_v9 = vld [vmem:[%s9389_s13 + $0xb0] ss:$20 sps:$4 sm:$0xff]  }
 0x6e3   :  { %2030 = vmatpush1.bf16.msra.mxu1 %v6510_v10  ;;  %2112 = vmatpush1.bf16.msra.mxu0 %v6513_v11  ;;  %v6560_v10 = vld [vmem:[%s9389_s13 + $0x218] ss:$20 sps:$4 sm:$0xff]   ;;  %v6566_v11 = vld [vmem:[%s9391_s15] ss:$20 sps:$4 sm:$0xff]  }
 0x6e4   :  { %2031 = vmatprep.subr.bf16.mxu1 %v6518_v13  ;;  %2113 = vmatprep.subr.bf16.mxu0 %v6521_v14  ;;  %v6574_v13 = vld [vmem:[%s9391_s15 + $0x2c] ss:$20 sps:$4 sm:$0xff]  }
 0x6e5   :  { %v6561_v14 = vld [vmem:[%s9389_s13 + $0xd8] ss:$20 sps:$4 sm:$0xff]  }
 0x6e7   :  { %2032 = vmatpush1.bf16.msra.mxu1 %v6516_v15  ;;  %2114 = vmatpush1.bf16.msra.mxu0 %v6519_v16  ;;  %v6562_v15 = vld [vmem:[%s9389_s13 + $0x240] ss:$20 sps:$4 sm:$0xff]   ;;  %v6572_v16 = vld [vmem:[%s9391_s15 + $0x28] ss:$20 sps:$4 sm:$0xff]  }
 0x6e8   :  { %2042 = vmatprep.subr.bf16.mxu1 %v6524_v17  ;;  %2124 = vmatprep.subr.bf16.mxu0 %v6527_v18  ;;  %v6580_v17 = vld [vmem:[%s9391_s15 + $0x54] ss:$20 sps:$4 sm:$0xff]  }
 0x6e9   :  { %v6563_v18 = vld [vmem:[%s9389_s13 + $0x100] ss:$20 sps:$4 sm:$0xff]  }
 0x77d   :  { %v1277_v22 = vpop.f32.mrb[8].mxu1  ;;  %v1318_v23 = vpop.f32.mrb[12].mxu0 }
 0x77e   :  { %v1278_v24 = vadd.f32 %v1277_v22, %v1067_v20  ;;  %v1279_v25 = vpop.f32.mrb[9].mxu1  ;;  %v1320_v26 = vpop.f32.mrb[13].mxu0  ;;  %v1319_v48 = vadd.f32 %v1318_v23, %v1075_v43  ;;  %v6578_v20 = vld [vmem:[%s9391_s15 + $0x50] ss:$20 sps:$4 sm:$0xff]   ;;  %v6565_v22 = vld [vmem:[%s9389_s13 + $0x128] ss:$20 sps:$4 sm:$0xff]  }
 0x77f   :  { %v1280_v27 = vadd.f32 %v1279_v25, %v1071_v21  ;;  %v1281_v28 = vpop.f32.mrb[10].mxu1  ;;  %v1321_v29 = vpop.f32.mrb[14].mxu0  ;;  %v6586_v21 = vld [vmem:[%s9391_s15 + $0x7c] ss:$20 sps:$4 sm:$0xff]   ;;  %v6571_v23 = vld [vmem:[%s9391_s15 + $0xc] ss:$20 sps:$4 sm:$0xff]  }
 0x780   :  { %v1324_v30 = vmax.f32 %v1278_v24, 0.0  ;;  %v1282_v31 = vpop.f32.mrb[11].mxu1  ;;  %v1322_v32 = vpop.f32.mrb[15].mxu0  ;;  %v1326_v53 = vmax.f32 %v1319_v48, 0.0  ;;  %v6584_v24 = vld [vmem:[%s9391_s15 + $0x78] ss:$20 sps:$4 sm:$0xff]  }
 0x781   :  { %v1325_v33 = vmax.f32 %v1280_v27, 0.0  ;;  %v6592_v25 = vld [vmem:[%s9391_s15 + $0xa4] ss:$20 sps:$4 sm:$0xff]   ;;  %v6569_v26 = vld [vmem:[%s9391_s15 + $0x8] ss:$20 sps:$4 sm:$0xff]  }
 0x782   :  { %v8026_v37 = vpack.c.bf16 %v1324_v30, %v1324_v30  ;;  %v1329_v56 = vpack.c.bf16 %v1326_v53, %v1326_v53  ;;  %v6577_v27 = vld [vmem:[%s9391_s15 + $0x34] ss:$20 sps:$4 sm:$0xff]   ;;  %v6598_v29 = vld [vmem:[%s9391_s15 + $0xcc] ss:$20 sps:$4 sm:$0xff]   ;;  %v6575_v30 = vld [vmem:[%s9391_s15 + $0x30] ss:$20 sps:$4 sm:$0xff]  }
 0x783   :  { %v1328_v34 = vpack.c.bf16 %v1325_v33, %v1325_v33  ;;  %v6590_v28 = vld [vmem:[%s9391_s15 + $0xa0] ss:$20 sps:$4 sm:$0xff]   ;;  %v6583_v31 = vld [vmem:[%s9391_s15 + $0x5c] ss:$20 sps:$4 sm:$0xff]  }
 0x784   :  { %v6596_v32 = vld [vmem:[%s9391_s15 + $0xc8] ss:$20 sps:$4 sm:$0xff]   ;;  %v6626_v53 = vld [vmem:[%s9391_s15 + $0x190] ss:$20 sps:$4 sm:$0xff]  }
 0x785   :  { %2033 = vmatprep.mubr.bf16.mxu1 %v1328_v34  ;;  %2115 = vmatprep.mubr.bf16.mxu0 %v1328_v34  ;;  %v6604_v33 = vld [vmem:[%s9391_s15 + $0xf4] ss:$20 sps:$4 sm:$0xff]   ;;  %v6607_v48 = vld [vmem:[%s9391_s15 + $0xfc] ss:$20 sps:$4 sm:$0xff]  }
 0x786   :  { %2034 = vmatmul.mubr.bf16.vlgmr.msra.gmra.mrb[12].mxu1 %v8026_v37  ;;  %2116 = vmatmul.mubr.bf16.vlgmr.msra.gmra.mrb[16].mxu0 %v8026_v37  ;;  %v6593_v43 = vld [vmem:[%s9391_s15 + $0xa8] ss:$20 sps:$4 sm:$0xff]  }
 0x787   :  { %2043 = vmatpush1.bf16.msra.mxu1 %v6522_v35  ;;  %2125 = vmatpush1.bf16.msra.mxu0 %v6525_v36  ;;  %v6589_v35 = vld [vmem:[%s9391_s15 + $0x84] ss:$20 sps:$4 sm:$0xff]  }
 0x788   :  { %2044 = vmatprep.subr.bf16.mxu1 %v6530_v39  ;;  %2126 = vmatprep.subr.bf16.mxu0 %v6533_v40  ;;  %v6602_v36 = vld [vmem:[%s9391_s15 + $0xf0] ss:$20 sps:$4 sm:$0xff]   ;;  %v6587_v39 = vld [vmem:[%s9391_s15 + $0x80] ss:$20 sps:$4 sm:$0xff]  }
 0x789   :  { %2074 = vmatprep.mubr.bf16.mxu1 %v7428_v62  ;;  %2156 = vmatprep.mubr.bf16.mxu0 %v7428_v62  ;;  %v6595_v40 = vld [vmem:[%s9391_s15 + $0xac] ss:$20 sps:$4 sm:$0xff]  }
 0x78b   :  { %2045 = vmatpush1.bf16.msra.mxu1 %v6528_v41  ;;  %2127 = vmatpush1.bf16.msra.mxu0 %v6531_v42  ;;  %v6608_v41 = vld [vmem:[%s9391_s15 + $0x118] ss:$20 sps:$4 sm:$0xff]  }
 0x78c   :  { %2046 = vmatprep.subr.bf16.mxu1 %v6536_v44  ;;  %2128 = vmatprep.subr.bf16.mxu0 %v6539_v45  ;;  %v6616_v42 = vld [vmem:[%s9391_s15 + $0x144] ss:$20 sps:$4 sm:$0xff]   ;;  %v6601_v44 = vld [vmem:[%s9391_s15 + $0xd4] ss:$20 sps:$4 sm:$0xff]  }
 0x78d   :  { %v6614_v45 = vld [vmem:[%s9391_s15 + $0x140] ss:$20 sps:$4 sm:$0xff]  }
 0x78f   :  { %2047 = vmatpush1.bf16.msra.mxu1 %v6534_v46  ;;  %2129 = vmatpush1.bf16.msra.mxu0 %v6537_v47  ;;  %v6622_v46 = vld [vmem:[%s9391_s15 + $0x16c] ss:$20 sps:$4 sm:$0xff]   ;;  %v6599_v47 = vld [vmem:[%s9391_s15 + $0xd0] ss:$20 sps:$4 sm:$0xff]  }
 0x790   :  { %2048 = vmatprep.subr.bf16.mxu1 %v6542_v49  ;;  %2130 = vmatprep.subr.bf16.mxu0 %v6545_v50  ;;  %v6620_v49 = vld [vmem:[%s9391_s15 + $0x168] ss:$20 sps:$4 sm:$0xff]  }
 0x791   :  { %v6628_v50 = vld [vmem:[%s9391_s15 + $0x194] ss:$20 sps:$4 sm:$0xff]  }
 0x793   :  { %2049 = vmatpush1.bf16.msra.mxu1 %v6540_v51  ;;  %2131 = vmatpush1.bf16.msra.mxu0 %v6543_v52  ;;  %v6605_v51 = vld [vmem:[%s9391_s15 + $0xf8] ss:$20 sps:$4 sm:$0xff]  }
 0x794   :  { %6056 = vmatprep.subr.bf16.mxu1 %v6546_v54  ;;  %6237 = vmatprep.subr.bf16.mxu0 %v7426_v12  ;;  %v6613_v52 = vld [vmem:[%s9391_s15 + $0x124] ss:$20 sps:$4 sm:$0xff]   ;;  %v6634_v54 = vld [vmem:[%s9391_s15 + $0x1bc] ss:$20 sps:$4 sm:$0xff]  }
 0x796   :  { %5656 = vmatmul.mubr.msk.bf16.vlgmr.msra.gmra.mrb[12].mxu1 %vm1997_vm9, %v1329_v56  ;;  %5657 = vmatmul.mubr.msk.bf16.vlgmr.msra.gmra.mrb[16].mxu0 %vm1997_vm9, %v1329_v56 }
 0x797   :  { %6057 = vmatpush3.bf16.msra.mxu1 %v6547_v55  ;;  %2197 = vmatprep.mubr.bf16.mxu1 %v1328_v34  ;;  %v6581_v34 = vld [vmem:[%s9391_s15 + $0x58] ss:$20 sps:$4 sm:$0xff]   ;;  %v6611_v55 = vld [vmem:[%s9391_s15 + $0x120] ss:$20 sps:$4 sm:$0xff]  }
 0x798   :  { %6238 = vmatpush3.bf16.msra.mxu0 %v6548_v57  ;;  %6058 = vmatprep.subr.bf16.mxu1 %v6549_v58  ;;  %v6632_v57 = vld [vmem:[%s9391_s15 + $0x1b8] ss:$20 sps:$4 sm:$0xff]  }
 0x799   :  { %6239 = vmatprep.subr.bf16.mxu0 %v7426_v12  ;;  %6245 = vmatprep.mubr.msk.bf16.mxu0 %vm7427_vm4, %v7426_v12  ;;  %v6640_v58 = vld [vmem:[%s9391_s15 + $0x1e4] ss:$20 sps:$4 sm:$0xff]  }
 0x79b   :  { %6059 = vmatpush3.bf16.msra.mxu1 %v6550_v59  ;;  %v6617_v59 = vld [vmem:[%s9391_s15 + $0x148] ss:$20 sps:$4 sm:$0xff]  }
 0x79c   :  { %6240 = vmatpush3.bf16.msra.mxu0 %v6551_v63  ;;  %6060 = vmatprep.subr.bf16.mxu1 %v6552_v1  ;;  %v6625_v63 = vld [vmem:[%s9391_s15 + $0x174] ss:$20 sps:$4 sm:$0xff]  }
 0x79d   :  { %6241 = vmatprep.subr.bf16.mxu0 %v7426_v12  ;;  %v6638_v1 = vld [vmem:[%s9391_s15 + $0x1e0] ss:$20 sps:$4 sm:$0xff]  }
 0x79f   :  { %6061 = vmatpush3.bf16.msra.mxu1 %v6553_v2  ;;  %v6646_v2 = vld [vmem:[%s9391_s15 + $0x20c] ss:$20 sps:$4 sm:$0xff]  }
 0x7a0   :  { %6242 = vmatpush3.bf16.msra.mxu0 %v6554_v3  ;;  %6062 = vmatprep.subr.bf16.mxu1 %v6555_v4  ;;  %v6623_v3 = vld [vmem:[%s9391_s15 + $0x170] ss:$20 sps:$4 sm:$0xff]  }
 0x7a1   :  { %6243 = vmatprep.subr.bf16.mxu0 %v7426_v12  ;;  %v6631_v4 = vld [vmem:[%s9391_s15 + $0x19c] ss:$20 sps:$4 sm:$0xff]  }
 0x7a3   :  { %6063 = vmatpush3.bf16.msra.mxu1 %v6556_v5  ;;  %v6644_v5 = vld [vmem:[%s9391_s15 + $0x208] ss:$20 sps:$4 sm:$0xff]  }
 0x7a4   :  { %6244 = vmatpush3.bf16.msra.mxu0 %v6557_v6  ;;  %6064 = vmatprep.subr.bf16.mxu1 %v6558_v7  ;;  %v6629_v6 = vld [vmem:[%s9391_s15 + $0x198] ss:$20 sps:$4 sm:$0xff]  }
 0x7a5   :  { %3562 = vmatprep.subr.bf16.mxu0 %v6568_v8  ;;  %v6637_v7 = vld [vmem:[%s9391_s15 + $0x1c4] ss:$20 sps:$4 sm:$0xff]   ;;  %v6635_v8 = vld [vmem:[%s9391_s15 + $0x1c0] ss:$20 sps:$4 sm:$0xff]  }
 0x7a7   :  { %6246 = vmatmul.mubr.msk.bf16.vlgmr.msra.gmra.mrb[20].mxu0 %vm1997_vm9, %v1329_v56  ;;  %6065 = vmatpush3.bf16.msra.mxu1 %v6559_v9  ;;  %v6619_v56 = vld [vmem:[%s9391_s15 + $0x14c] ss:$20 sps:$4 sm:$0xff]  }
 0x7a8   :  { %6066 = vmatprep.subr.bf16.mxu1 %v6560_v10  ;;  %3563 = vmatpush1.bf16.msra.mxu0 %v6566_v11  ;;  %v6643_v9 = vld [vmem:[%s9391_s15 + $0x1ec] ss:$20 sps:$4 sm:$0xff]   ;;  %v6641_v10 = vld [vmem:[%s9391_s15 + $0x1e8] ss:$20 sps:$4 sm:$0xff]  }
 0x7a9   :  { %3564 = vmatprep.subr.bf16.mxu0 %v6574_v13  ;;  %v6649_v11 = vld [vmem:[%s9391_s15 + $0x214] ss:$20 sps:$4 sm:$0xff]   ;;  %v6647_v13 = vld [vmem:[%s9391_s15 + $0x210] ss:$20 sps:$4 sm:$0xff]  }
 0x7ab   :  { %6067 = vmatpush3.bf16.msra.mxu1 %v6561_v14  ;;  %v6652_v14 = vld [vmem:[%s9391_s15 + $0x234] ss:$20 sps:$4 sm:$0xff]  }
 0x7ac   :  { %6068 = vmatprep.subr.bf16.mxu1 %v6562_v15  ;;  %3565 = vmatpush1.bf16.msra.mxu0 %v6572_v16  ;;  %v6655_v15 = vld [vmem:[%s9391_s15 + $0x23c] ss:$20 sps:$4 sm:$0xff]  }
 0x7ad   :  { %3566 = vmatprep.subr.bf16.mxu0 %v6580_v17  ;;  %v6650_v16 = vld [vmem:[%s9391_s15 + $0x230] ss:$20 sps:$4 sm:$0xff]   ;;  %v6653_v17 = vld [vmem:[%s9391_s15 + $0x238] ss:$20 sps:$4 sm:$0xff]  }
 0x7af   :  { %6069 = vmatpush3.bf16.msra.mxu1 %v6563_v18  ;;  %v6658_v18 = vld [vmem:[%s9391_s15 + $0x25c] ss:$20 sps:$4 sm:$0xff]  }
 0x7b0   :  { %6070 = vmatprep.subr.bf16.mxu1 %v6564_v19  ;;  %3567 = vmatpush1.bf16.msra.mxu0 %v6578_v20  ;;  %v6661_v19 = vld [vmem:[%s9391_s15 + $0x264] ss:$20 sps:$4 sm:$0xff]  }
 0x7b1   :  { %3568 = vmatprep.subr.bf16.mxu0 %v6586_v21  ;;  %v6656_v20 = vld [vmem:[%s9391_s15 + $0x258] ss:$20 sps:$4 sm:$0xff]   ;;  %v6659_v21 = vld [vmem:[%s9391_s15 + $0x260] ss:$20 sps:$4 sm:$0xff]  }
 0x7b3   :  { %6071 = vmatpush3.bf16.msra.mxu1 %v6565_v22  ;;  %v6664_v22 = vld [vmem:[%s9391_s15 + $0x284] ss:$20 sps:$4 sm:$0xff]  }
 0x7b4   :  { %3685 = vmatprep.subr.bf16.mxu1 %v6571_v23  ;;  %3569 = vmatpush1.bf16.msra.mxu0 %v6584_v24  ;;  %v6667_v23 = vld [vmem:[%s9391_s15 + $0x28c] ss:$20 sps:$4 sm:$0xff]  }
 0x7b5   :  { %3570 = vmatprep.subr.bf16.mxu0 %v6592_v25  ;;  %v8340_v24 = vld [vmem:[#allocation17] sm:$0x1f]  ;;  %v1466_v25 = vsub.s32 3, %v7814_v60 }
 0x7b6   :  { %2198 = vmatmul.mubr.bf16.vlgmr.msra.gmra.mrb[16].mxu1 %v8026_v37  ;;  %v6610_v37 = vld [vmem:[%s9391_s15 + $0x11c] ss:$20 sps:$4 sm:$0xff]  }
 0x7b7   :  { %3686 = vmatpush1.bf16.msra.mxu1 %v6569_v26  ;;  %v1455_v26 = vrot.slane %v8340_v24, %v7817_v61 }
 0x7b8   :  { %3687 = vmatprep.subr.bf16.mxu1 %v6577_v27  ;;  %3571 = vmatpush1.bf16.msra.mxu0 %v6590_v28  ;;  %v1459_v27 = vrot.slane %v8340_v24, %v7820_v0  ;;  %v1467_v28 = vrot.slane %v8340_v24, %v1466_v25 }
 0x7b9   :  { %3572 = vmatprep.subr.bf16.mxu0 %v6598_v29 }
 0x7bb   :  { %3688 = vmatpush1.bf16.msra.mxu1 %v6575_v30 }
 0x7bc   :  { %3689 = vmatprep.subr.bf16.mxu1 %v6583_v31  ;;  %3573 = vmatpush1.bf16.msra.mxu0 %v6596_v32 }
 0x7bd   :  { %3574 = vmatprep.subr.bf16.mxu0 %v6604_v33 }
 0x7bf   :  { %3690 = vmatpush1.bf16.msra.mxu1 %v6581_v34 }
 0x7c0   :  { %3691 = vmatprep.subr.bf16.mxu1 %v6589_v35  ;;  %3575 = vmatpush1.bf16.msra.mxu0 %v6602_v36 }
 0x7c1   :  { %3576 = vmatprep.subr.bf16.mxu0 %v6610_v37 }
 0x7c3   :  { %3692 = vmatpush1.bf16.msra.mxu1 %v6587_v39 }
 0x7c4   :  { %3693 = vmatprep.subr.bf16.mxu1 %v6595_v40  ;;  %3577 = vmatpush1.bf16.msra.mxu0 %v6608_v41 }
 0x7c5   :  { %3578 = vmatprep.subr.bf16.mxu0 %v6616_v42 }
 0x7c7   :  { %3694 = vmatpush1.bf16.msra.mxu1 %v6593_v43 }
 0x7c8   :  { %3695 = vmatprep.subr.bf16.mxu1 %v6601_v44  ;;  %3579 = vmatpush1.bf16.msra.mxu0 %v6614_v45  ;;  %v6662_v45 = vld [vmem:[%s9391_s15 + $0x280] ss:$20 sps:$4 sm:$0xff]  }
 0x7c9   :  { %3580 = vmatprep.subr.bf16.mxu0 %v6622_v46  ;;  %v6665_v46 = vld [vmem:[%s9391_s15 + $0x288] ss:$20 sps:$4 sm:$0xff]  }
 0x7cb   :  { %3696 = vmatpush1.bf16.msra.mxu1 %v6599_v47 }
 0x7cc   :  { %3697 = vmatprep.subr.bf16.mxu1 %v6607_v48  ;;  %3581 = vmatpush1.bf16.msra.mxu0 %v6620_v49  ;;  %v6670_v48 = vld [vmem:[%s9391_s15 + $0x2ac] ss:$20 sps:$4 sm:$0xff]   ;;  %v6673_v49 = vld [vmem:[%s9391_s15 + $0x2b4] ss:$20 sps:$4 sm:$0xff]  }
 0x7cd   :  { %3582 = vmatprep.subr.bf16.mxu0 %v6628_v50 }
 0x7cf   :  { %3698 = vmatpush1.bf16.msra.mxu1 %v6605_v51  ;;  %v6668_v51 = vld [vmem:[%s9391_s15 + $0x2a8] ss:$20 sps:$4 sm:$0xff]  }
 0x7d0   :  { %3699 = vmatprep.subr.bf16.mxu1 %v6613_v52  ;;  %3583 = vmatpush1.bf16.msra.mxu0 %v6626_v53  ;;  %v6671_v52 = vld [vmem:[%s9391_s15 + $0x2b0] ss:$20 sps:$4 sm:$0xff]   ;;  %v6676_v53 = vld [vmem:[%s9391_s15 + $0x2d4] ss:$20 sps:$4 sm:$0xff]  }
 0x7d1   :  { %3584 = vmatprep.subr.bf16.mxu0 %v6634_v54  ;;  %v6679_v54 = vld [vmem:[%s9391_s15 + $0x2dc] ss:$20 sps:$4 sm:$0xff]  }
 0x7d3   :  { %3700 = vmatpush1.bf16.msra.mxu1 %v6611_v55  ;;  %v6674_v55 = vld [vmem:[%s9391_s15 + $0x2d0] ss:$20 sps:$4 sm:$0xff]  }
 0x7d4   :  { %3701 = vmatprep.subr.bf16.mxu1 %v6619_v56  ;;  %3585 = vmatpush1.bf16.msra.mxu0 %v6632_v57  ;;  %v6677_v56 = vld [vmem:[%s9391_s15 + $0x2d8] ss:$20 sps:$4 sm:$0xff]   ;;  %v6682_v57 = vld [vmem:[%s9391_s15 + $0x2fc] ss:$20 sps:$4 sm:$0xff]  }
 0x7d5   :  { %3586 = vmatprep.subr.bf16.mxu0 %v6640_v58  ;;  %v6685_v58 = vld [vmem:[%s9391_s15 + $0x304] ss:$20 sps:$4 sm:$0xff]  }
 0x7d7   :  { %3702 = vmatpush1.bf16.msra.mxu1 %v6617_v59 }
 0x7d8   :  { %3703 = vmatprep.subr.bf16.mxu1 %v6625_v63  ;;  %3587 = vmatpush1.bf16.msra.mxu0 %v6638_v1  ;;  %v6680_v1 = vld [vmem:[%s9391_s15 + $0x2f8] ss:$20 sps:$4 sm:$0xff]  }
 0x7d9   :  { %3588 = vmatprep.subr.bf16.mxu0 %v6646_v2  ;;  %v6683_v2 = vld [vmem:[%s9391_s15 + $0x300] ss:$20 sps:$4 sm:$0xff]  }
 0x7db   :  { %3704 = vmatpush1.bf16.msra.mxu1 %v6623_v3 }
 0x7dc   :  { %3705 = vmatprep.subr.bf16.mxu1 %v6631_v4  ;;  %3589 = vmatpush1.bf16.msra.mxu0 %v6644_v5  ;;  %v6688_v4 = vld [vmem:[%s9391_s15 + $0x324] ss:$20 sps:$4 sm:$0xff]   ;;  %v6691_v5 = vld [vmem:[%s9391_s15 + $0x32c] ss:$20 sps:$4 sm:$0xff]  }
 0x7dd   :  { %3590 = vmatprep.subr.bf16.mxu0 %v6652_v14  ;;  %v6700_v14 = vld [vmem:[%s9391_s15 + $0x374] ss:$20 sps:$4 sm:$0xff]  }
 0x7df   :  { %3706 = vmatpush1.bf16.msra.mxu1 %v6629_v6 }
 0x7e0   :  { %3707 = vmatprep.subr.bf16.mxu1 %v6637_v7  ;;  %3591 = vmatpush1.bf16.msra.mxu0 %v6650_v16  ;;  %v6686_v7 = vld [vmem:[%s9391_s15 + $0x320] ss:$20 sps:$4 sm:$0xff]   ;;  %v1470_v16 = vsub.s32 4, %v7814_v60 }
 0x7e1   :  { %3592 = vmatprep.subr.bf16.mxu0 %v6658_v18  ;;  %v6701_v18 = vld [vmem:[%s9391_s15 + $0x378] ss:$20 sps:$4 sm:$0xff]  }
 0x7e3   :  { %3708 = vmatpush1.bf16.msra.mxu1 %v6635_v8  ;;  %v6689_v8 = vld [vmem:[%s9391_s15 + $0x328] ss:$20 sps:$4 sm:$0xff]  }
 0x7e4   :  { %3709 = vmatprep.subr.bf16.mxu1 %v6643_v9  ;;  %3593 = vmatpush1.bf16.msra.mxu0 %v6656_v20  ;;  %v6694_v9 = vld [vmem:[%s9391_s15 + $0x34c] ss:$20 sps:$4 sm:$0xff]   ;;  %v6709_v20 = vld [vmem:[%s9391_s15 + $0x3a4] ss:$20 sps:$4 sm:$0xff]  }
 0x7e5   :  { %3603 = vmatprep.subr.bf16.mxu0 %v6664_v22  ;;  %v1471_v22 = vrot.slane %v8340_v24, %v1470_v16 }
 0x7e7   :  { %3710 = vmatpush1.bf16.msra.mxu1 %v6641_v10  ;;  %v6697_v10 = vld [vmem:[%s9391_s15 + $0x354] ss:$20 sps:$4 sm:$0xff]  }
 0x7e8   :  { %3711 = vmatprep.subr.bf16.mxu1 %v6649_v11  ;;  %v6692_v11 = vld [vmem:[%s9391_s15 + $0x348] ss:$20 sps:$4 sm:$0xff]  }
 0x7eb   :  { %3712 = vmatpush1.bf16.msra.mxu1 %v6647_v13  ;;  %v6695_v13 = vld [vmem:[%s9391_s15 + $0x350] ss:$20 sps:$4 sm:$0xff]  }
 0x7ec   :  { %3713 = vmatprep.subr.bf16.mxu1 %v6655_v15  ;;  %v6703_v15 = vld [vmem:[%s9391_s15 + $0x37c] ss:$20 sps:$4 sm:$0xff]  }
 0x7ef   :  { %3714 = vmatpush1.bf16.msra.mxu1 %v6653_v17  ;;  %v6698_v17 = vld [vmem:[%s9391_s15 + $0x370] ss:$20 sps:$4 sm:$0xff]  }
 0x7f0   :  { %3715 = vmatprep.subr.bf16.mxu1 %v6661_v19  ;;  %v6706_v19 = vld [vmem:[%s9391_s15 + $0x39c] ss:$20 sps:$4 sm:$0xff]  }
 0x7f3   :  { %3716 = vmatpush1.bf16.msra.mxu1 %v6659_v21 }
 0x7f4   :  { %3726 = vmatprep.subr.bf16.mxu1 %v6667_v23 }
 0x869   :  { %v2076_v29 = vpop.f32.mrb[12].mxu1  ;;  %v8350_v30 = vpop.f32.mrb[16].mxu0 }
 0x86a   :  { %v6313_v31 = vadd.f32 %v2076_v29, %v1455_v26  ;;  %v2078_v32 = vpop.f32.mrb[13].mxu1  ;;  %v2160_v33 = vpop.f32.mrb[17].mxu0  ;;  %v6707_v29 = vld [vmem:[%s9391_s15 + $0x3a0] ss:$20 sps:$4 sm:$0xff]  }
 0x86b   :  { %v6314_v34 = vadd.f32 %v2078_v32, %v1459_v27  ;;  %v6316_v35 = vadd.f32 %v2160_v33, %v1467_v28  ;;  %v2080_v36 = vpop.f32.mrb[14].mxu1  ;;  %v2162_v37 = vpop.f32.mrb[18].mxu0  ;;  %v6704_v28 = vld [vmem:[%s9391_s15 + $0x398] ss:$20 sps:$4 sm:$0xff]  }
 0x86c   :  { %v2245_v39 = vmax.f32 %v6313_v31, 0.0  ;;  %v2081_v40 = vpop.f32.mrb[15].mxu1  ;;  %v2163_v41 = vpop.f32.mrb[19].mxu0  ;;  %v6712_v32 = vld [vmem:[%s9391_s15 + $0x3c4] ss:$20 sps:$4 sm:$0xff]  }
 0x86d   :  { %v2246_v42 = vmax.f32 %v6314_v34, 0.0  ;;  %v2248_v43 = vmax.f32 %v6316_v35, 0.0  ;;  %v6715_v33 = vld [vmem:[%s9391_s15 + $0x3cc] ss:$20 sps:$4 sm:$0xff]   ;;  %v6713_v37 = vld [vmem:[%s9391_s15 + $0x3c8] ss:$20 sps:$4 sm:$0xff]  }
 0x86e   :  { %v8360_v47 = vpack.c.bf16 %v2245_v39, %v2245_v39  ;;  %v6710_v36 = vld [vmem:[%s9391_s15 + $0x3c0] ss:$20 sps:$4 sm:$0xff]   ;;  %v6716_v41 = vld [vmem:[%s9391_s15 + $0x3e8] ss:$20 sps:$4 sm:$0xff]  }
 0x86f   :  { %v8352_v44 = vpack.c.bf16 %v2246_v42, %v2246_v42  ;;  %v8370_v50 = vpack.c.bf16 %v2248_v43, %v2248_v43  ;;  %v6718_v39 = vld [vmem:[%s9391_s15 + $0x3ec] ss:$20 sps:$4 sm:$0xff]   ;;  %v6721_v40 = vld [vmem:[%s9391_s15 + $0x3f4] ss:$20 sps:$4 sm:$0xff]   ;;  %v6719_v42 = vld [vmem:[%s9391_s15 + $0x3f0] ss:$20 sps:$4 sm:$0xff]  }
 0x870   :  { %v6724_v43 = vld [vmem:[%s9391_s15 + $0x414] ss:$20 sps:$4 sm:$0xff]  }
 0x871   :  { %3594 = vmatprep.mubr.bf16.mxu0 %v8352_v44  ;;  %3717 = vmatprep.mubr.bf16.mxu1 %v8352_v44 }
 0x872   :  { %3595 = vmatmul.mubr.bf16.vlgmr.msra.gmra.mrb[24].mxu0 %v8360_v47  ;;  %3718 = vmatmul.mubr.bf16.vlgmr.msra.gmra.mrb[20].mxu1 %v8360_v47 }
 0x873   :  { %3604 = vmatpush1.bf16.msra.mxu0 %v6662_v45  ;;  %3727 = vmatpush1.bf16.msra.mxu1 %v6665_v46  ;;  %v6727_v45 = vld [vmem:[%s9391_s15 + $0x41c] ss:$20 sps:$4 sm:$0xff]  }
 0x874   :  { %3635 = vmatprep.mubr.bf16.mxu0 %v8370_v50  ;;  %3758 = vmatprep.mubr.bf16.mxu1 %v8370_v50  ;;  %v6722_v46 = vld [vmem:[%s9391_s15 + $0x410] ss:$20 sps:$4 sm:$0xff]  }
 0x875   :  { %3605 = vmatprep.subr.bf16.mxu0 %v6670_v48  ;;  %3728 = vmatprep.subr.bf16.mxu1 %v6673_v49  ;;  %v6725_v48 = vld [vmem:[%s9391_s15 + $0x418] ss:$20 sps:$4 sm:$0xff]   ;;  %v6730_v49 = vld [vmem:[%s9391_s15 + $0x43c] ss:$20 sps:$4 sm:$0xff]  }
 0x877   :  { %3606 = vmatpush1.bf16.msra.mxu0 %v6668_v51  ;;  %3729 = vmatpush1.bf16.msra.mxu1 %v6671_v52  ;;  %v6733_v51 = vld [vmem:[%s9391_s15 + $0x444] ss:$20 sps:$4 sm:$0xff]  }
 0x878   :  { %3607 = vmatprep.subr.bf16.mxu0 %v6676_v53  ;;  %3730 = vmatprep.subr.bf16.mxu1 %v6679_v54  ;;  %v6728_v52 = vld [vmem:[%s9391_s15 + $0x438] ss:$20 sps:$4 sm:$0xff]   ;;  %v6731_v53 = vld [vmem:[%s9391_s15 + $0x440] ss:$20 sps:$4 sm:$0xff]  }
 0x879   :  { %v6736_v54 = vld [vmem:[%s9391_s15 + $0x464] ss:$20 sps:$4 sm:$0xff]  }
 0x87a   :  { %v2239_v59 = vpop.f32.mrb[20].mxu0 }
 0x87b   :  { %v6247_v63 = vpop.f32.mrb[21].mxu0  ;;  %3608 = vmatpush1.bf16.msra.mxu0 %v6674_v55  ;;  %3731 = vmatpush1.bf16.msra.mxu1 %v6677_v56  ;;  %v6739_v55 = vld [vmem:[%s9391_s15 + $0x46c] ss:$20 sps:$4 sm:$0xff]  }
 0x87c   :  { %v2242_v3 = vpop.f32.mrb[22].mxu0  ;;  %3609 = vmatprep.subr.bf16.mxu0 %v6682_v57  ;;  %3732 = vmatprep.subr.bf16.mxu1 %v6685_v58  ;;  %v6734_v56 = vld [vmem:[%s9391_s15 + $0x460] ss:$20 sps:$4 sm:$0xff]   ;;  %v6737_v57 = vld [vmem:[%s9391_s15 + $0x468] ss:$20 sps:$4 sm:$0xff]  }
 0x87d   :  { %v6248_v6 = vpop.f32.mrb[23].mxu0  ;;  %v6742_v58 = vld [vmem:[%s9391_s15 + $0x48c] ss:$20 sps:$4 sm:$0xff]   ;;  %v6740_v63 = vld [vmem:[%s9391_s15 + $0x488] ss:$20 sps:$4 sm:$0xff]  }
 0x87e   :  { %v6748_v3 = vld [vmem:[%s9391_s15 + $0x4b4] ss:$20 sps:$4 sm:$0xff]  }
 0x87f   :  { %3610 = vmatpush1.bf16.msra.mxu0 %v6680_v1  ;;  %3733 = vmatpush1.bf16.msra.mxu1 %v6683_v2  ;;  %v6743_v1 = vld [vmem:[%s9391_s15 + $0x490] ss:$20 sps:$4 sm:$0xff]   ;;  %v1463_v2 = vrot.slane %v8340_v24, %v8029_v38  ;;  %v6749_v24 = vld [vmem:[%s9391_s15 + $0x4b8] ss:$20 sps:$4 sm:$0xff]  }
 0x880   :  { %3611 = vmatprep.subr.bf16.mxu0 %v6688_v4  ;;  %3734 = vmatprep.subr.bf16.mxu1 %v6691_v5  ;;  %v6751_v4 = vld [vmem:[%s9391_s15 + $0x4bc] ss:$20 sps:$4 sm:$0xff]  }
 0x881   :  { %v6746_v5 = vld [vmem:[%s9391_s15 + $0x4b0] ss:$20 sps:$4 sm:$0xff]   ;;  %v6315_v6 = vadd.f32 %v8350_v30, %v1463_v2  ;;  %v6755_v30 = vld [vmem:[%s9391_s15 + $0x4e0] ss:$20 sps:$4 sm:$0xff]   ;;  %v6813_v2 = vld [vmem:[%s9391_s15 + $0x2b8] ss:$20 sps:$4 sm:$0xff]  }
 0x883   :  { %3612 = vmatpush1.bf16.msra.mxu0 %v6686_v7  ;;  %3735 = vmatpush1.bf16.msra.mxu1 %v6689_v8  ;;  %v6754_v7 = vld [vmem:[%s9391_s15 + $0x4dc] ss:$20 sps:$4 sm:$0xff]   ;;  %v6757_v8 = vld [vmem:[%s9391_s15 + $0x4e4] ss:$20 sps:$4 sm:$0xff]  }
 0x884   :  { %3613 = vmatprep.subr.bf16.mxu0 %v6694_v9  ;;  %3736 = vmatprep.subr.bf16.mxu1 %v6697_v10  ;;  %v6752_v9 = vld [vmem:[%s9391_s15 + $0x4d8] ss:$20 sps:$4 sm:$0xff]   ;;  %v2247_v10 = vmax.f32 %v6315_v6, 0.0  ;;  %v6820_v6 = vld [vmem:[%s9391_s15 + $0x88] ss:$20 sps:$4 sm:$0xff]  }
 0x887   :  { %3614 = vmatpush1.bf16.msra.mxu0 %v6692_v11  ;;  %3737 = vmatpush1.bf16.msra.mxu1 %v6695_v13  ;;  %v6760_v11 = vld [vmem:[%s9391_s15 + $0x504] ss:$20 sps:$4 sm:$0xff]   ;;  %v6763_v13 = vld [vmem:[%s9391_s15 + $0x50c] ss:$20 sps:$4 sm:$0xff]  }
 0x888   :  { %3615 = vmatprep.subr.bf16.mxu0 %v6700_v14  ;;  %3738 = vmatprep.subr.bf16.mxu1 %v6703_v15  ;;  %v6758_v14 = vld [vmem:[%s9391_s15 + $0x500] ss:$20 sps:$4 sm:$0xff]   ;;  %v6761_v15 = vld [vmem:[%s9391_s15 + $0x508] ss:$20 sps:$4 sm:$0xff]  }
 0x889   :  { %v6072_v21 = vpop.f32.mrb[16].mxu1 }
 0x88a   :  { %v6073_v23 = vpop.f32.mrb[17].mxu1 }
 0x88b   :  { %v6074_v26 = vadd.f32 %v6073_v23, %v6072_v21  ;;  %3616 = vmatpush1.bf16.msra.mxu0 %v6698_v17  ;;  %3739 = vmatpush1.bf16.msra.mxu1 %v6701_v18  ;;  %v6075_v27 = vpop.f32.mrb[18].mxu1  ;;  %v8571_v17 = vpack.c.bf16 %v2247_v10, %v2247_v10  ;;  %v6766_v18 = vld [vmem:[%s9391_s15 + $0x52c] ss:$20 sps:$4 sm:$0xff]   ;;  %v6767_v21 = vld [vmem:[%s9391_s15 + $0x530] ss:$20 sps:$4 sm:$0xff]  }
 0x88c   :  { %v6076_v31 = vpop.f32.mrb[19].mxu1  ;;  %3617 = vmatprep.subr.bf16.mxu0 %v6706_v19  ;;  %3740 = vmatprep.subr.bf16.mxu1 %v6709_v20  ;;  %v6769_v19 = vld [vmem:[%s9391_s15 + $0x534] ss:$20 sps:$4 sm:$0xff]   ;;  %v6775_v23 = vld [vmem:[%s9391_s15 + $0x55c] ss:$20 sps:$4 sm:$0xff]  }
 0x88d   :  { %v2200_v34 = vadd.f32 %v6074_v26, %v1471_v22  ;;  %v6764_v20 = vld [vmem:[%s9391_s15 + $0x528] ss:$20 sps:$4 sm:$0xff]   ;;  %v6770_v26 = vld [vmem:[%s9391_s15 + $0x550] ss:$20 sps:$4 sm:$0xff]   ;;  %v6773_v27 = vld [vmem:[%s9391_s15 + $0x558] ss:$20 sps:$4 sm:$0xff]  }
 0x88e   :  { %v6772_v22 = vld [vmem:[%s9391_s15 + $0x554] ss:$20 sps:$4 sm:$0xff]   ;;  %v6776_v31 = vld [vmem:[%s9391_s15 + $0x578] ss:$20 sps:$4 sm:$0xff]   ;;  %v6825_v10 = vld [vmem:[%s9391_s15 + $0x330] ss:$20 sps:$4 sm:$0xff]  }
 0x88f   :  { %v8464_v35 = vadd.f32 %v2239_v59, %v2200_v34  ;;  %3618 = vmatpush1.bf16.msra.mxu0 %v6704_v28  ;;  %3741 = vmatpush1.bf16.msra.mxu1 %v6707_v29  ;;  %v6745_v59 = vld [vmem:[%s9391_s15 + $0x494] ss:$20 sps:$4 sm:$0xff]   ;;  %v6778_v28 = vld [vmem:[%s9391_s15 + $0x57c] ss:$20 sps:$4 sm:$0xff]   ;;  %v6781_v29 = vld [vmem:[%s9391_s15 + $0x584] ss:$20 sps:$4 sm:$0xff]  }
 0x890   :  { %3619 = vmatprep.subr.bf16.mxu0 %v6712_v32  ;;  %3742 = vmatprep.subr.bf16.mxu1 %v6715_v33  ;;  %v6779_v32 = vld [vmem:[%s9391_s15 + $0x580] ss:$20 sps:$4 sm:$0xff]   ;;  %v6784_v33 = vld [vmem:[%s9391_s15 + $0x5a4] ss:$20 sps:$4 sm:$0xff]  }
 0x891   :  { %v6787_v34 = vld [vmem:[%s9391_s15 + $0x5ac] ss:$20 sps:$4 sm:$0xff]  }
 0x893   :  { %3620 = vmatpush1.bf16.msra.mxu0 %v6710_v36  ;;  %3743 = vmatpush1.bf16.msra.mxu1 %v6713_v37  ;;  %v6782_v36 = vld [vmem:[%s9391_s15 + $0x5a0] ss:$20 sps:$4 sm:$0xff]   ;;  %v6785_v37 = vld [vmem:[%s9391_s15 + $0x5a8] ss:$20 sps:$4 sm:$0xff]  }
 0x894   :  { %3621 = vmatprep.subr.bf16.mxu0 %v6718_v39  ;;  %3744 = vmatprep.subr.bf16.mxu1 %v6721_v40  ;;  %v6790_v39 = vld [vmem:[%s9391_s15 + $0x5cc] ss:$20 sps:$4 sm:$0xff]   ;;  %v6793_v40 = vld [vmem:[%s9391_s15 + $0x5d4] ss:$20 sps:$4 sm:$0xff]  }
 0x897   :  { %3622 = vmatpush1.bf16.msra.mxu0 %v6716_v41  ;;  %3745 = vmatpush1.bf16.msra.mxu1 %v6719_v42  ;;  %v6788_v41 = vld [vmem:[%s9391_s15 + $0x5c8] ss:$20 sps:$4 sm:$0xff]   ;;  %v6791_v42 = vld [vmem:[%s9391_s15 + $0x5d0] ss:$20 sps:$4 sm:$0xff]  }
 0x898   :  { %3623 = vmatprep.subr.bf16.mxu0 %v6724_v43  ;;  %3746 = vmatprep.subr.bf16.mxu1 %v6727_v45  ;;  %v6796_v43 = vld [vmem:[%s9391_s15 + $0x5f4] ss:$20 sps:$4 sm:$0xff]   ;;  %v6799_v45 = vld [vmem:[%s9391_s15 + $0x5fc] ss:$20 sps:$4 sm:$0xff]  }
 0x89b   :  { %3624 = vmatpush1.bf16.msra.mxu0 %v6722_v46  ;;  %3747 = vmatpush1.bf16.msra.mxu1 %v6725_v48  ;;  %v6794_v46 = vld [vmem:[%s9391_s15 + $0x5f0] ss:$20 sps:$4 sm:$0xff]   ;;  %v6797_v48 = vld [vmem:[%s9391_s15 + $0x5f8] ss:$20 sps:$4 sm:$0xff]  }
 0x89c   :  { %3625 = vmatprep.subr.bf16.mxu0 %v6730_v49  ;;  %3748 = vmatprep.subr.bf16.mxu1 %v6733_v51  ;;  %v6802_v49 = vld [vmem:[%s9391_s15 + $0x61c] ss:$20 sps:$4 sm:$0xff]   ;;  %v6805_v51 = vld [vmem:[%s9391_s15 + $0x624] ss:$20 sps:$4 sm:$0xff]  }
 0x89f   :  { %3626 = vmatpush1.bf16.msra.mxu0 %v6728_v52  ;;  %3749 = vmatpush1.bf16.msra.mxu1 %v6731_v53  ;;  %v6800_v52 = vld [vmem:[%s9391_s15 + $0x618] ss:$20 sps:$4 sm:$0xff]   ;;  %v6803_v53 = vld [vmem:[%s9391_s15 + $0x620] ss:$20 sps:$4 sm:$0xff]  }
 0x8a0   :  { %3627 = vmatprep.subr.bf16.mxu0 %v6736_v54  ;;  %3750 = vmatprep.subr.bf16.mxu1 %v6739_v55  ;;  %v2249_v54 = vmax.f32 %v8464_v35, 0.0  ;;  %v6806_v55 = vld [vmem:[%s9391_s15 + $0x150] ss:$20 sps:$4 sm:$0xff]  }
 0x8a1   :  { %v6809_v35 = vld [vmem:[%s9391_s15 + $0x290] ss:$20 sps:$4 sm:$0xff]  }
 0x8a3   :  { %3628 = vmatpush1.bf16.msra.mxu0 %v6734_v56  ;;  %3751 = vmatpush1.bf16.msra.mxu1 %v6737_v57  ;;  %v6807_v56 = vld [vmem:[%s9391_s15 + $0x3d0] ss:$20 sps:$4 sm:$0xff]  }
 0x8a4   :  { %3629 = vmatprep.subr.bf16.mxu0 %v6742_v58  ;;  %3752 = vmatprep.subr.bf16.mxu1 %v6745_v59  ;;  %v6808_v57 = vld [vmem:[%s9391_s15 + $0x10] ss:$20 sps:$4 sm:$0xff]   ;;  %v8671_v58 = vpack.c.bf16 %v2249_v54, %v2249_v54  ;;  %v6810_v59 = vld [vmem:[%s9391_s15 + $0x178] ss:$20 sps:$4 sm:$0xff]   ;;  %v6845_v54 = vld [vmem:[%s9391_s15 + $0x628] ss:$20 sps:$4 sm:$0xff]  }
 0x8a7   :  { %3630 = vmatpush1.bf16.msra.mxu0 %v6740_v63  ;;  %3753 = vmatpush1.bf16.msra.mxu1 %v6743_v1  ;;  %v6811_v63 = vld [vmem:[%s9391_s15 + $0x3f8] ss:$20 sps:$4 sm:$0xff]  }
 0x8a8   :  { %3631 = vmatprep.subr.bf16.mxu0 %v6748_v3  ;;  %3754 = vmatprep.subr.bf16.mxu1 %v6751_v4  ;;  %v6812_v1 = vld [vmem:[%s9391_s15 + $0x38] ss:$20 sps:$4 sm:$0xff]   ;;  %v6814_v3 = vld [vmem:[%s9391_s15 + $0x1a0] ss:$20 sps:$4 sm:$0xff]  }
 0x8a9   :  { %v6816_v4 = vld [vmem:[%s9391_s15 + $0x60] ss:$20 sps:$4 sm:$0xff]  }
 0x8ab   :  { %3632 = vmatpush1.bf16.msra.mxu0 %v6746_v5  ;;  %3755 = vmatpush1.bf16.msra.mxu1 %v6749_v24  ;;  %v6818_v5 = vld [vmem:[%s9391_s15 + $0x1c8] ss:$20 sps:$4 sm:$0xff]  }
 0x8ac   :  { %3633 = vmatprep.subr.bf16.mxu0 %v6754_v7  ;;  %3756 = vmatprep.subr.bf16.mxu1 %v6757_v8  ;;  %v6819_v24 = vld [vmem:[%s9391_s15 + $0x448] ss:$20 sps:$4 sm:$0xff]   ;;  %v6822_v8 = vld [vmem:[%s9391_s15 + $0x1f0] ss:$20 sps:$4 sm:$0xff]  }
 0x8ad   :  { %v6821_v7 = vld [vmem:[%s9391_s15 + $0x308] ss:$20 sps:$4 sm:$0xff]  }
 0x8af   :  { %3634 = vmatpush1.bf16.msra.mxu0 %v6752_v9  ;;  %3757 = vmatpush1.bf16.msra.mxu1 %v6755_v30  ;;  %v6823_v9 = vld [vmem:[%s9391_s15 + $0x470] ss:$20 sps:$4 sm:$0xff]  }
 0x8b0   :  { %3644 = vmatprep.subr.bf16.mxu0 %v6760_v11  ;;  %3767 = vmatprep.subr.bf16.mxu1 %v6763_v13  ;;  %v6824_v30 = vld [vmem:[%s9391_s15 + $0xb0] ss:$20 sps:$4 sm:$0xff]   ;;  %v6826_v11 = vld [vmem:[%s9391_s15 + $0x218] ss:$20 sps:$4 sm:$0xff]  }
 0x8b1   :  { %v6827_v13 = vld [vmem:[%s9391_s15 + $0x498] ss:$20 sps:$4 sm:$0xff]  }
 0x8b2   :  { %3636 = vmatmul.mubr.bf16.vlgmr.msra.gmra.mrb[24].mxu0 %v8571_v17  ;;  %3759 = vmatmul.mubr.bf16.vlgmr.msra.gmra.mrb[20].mxu1 %v8571_v17 }
 0x8b3   :  { %3645 = vmatpush1.bf16.msra.mxu0 %v6758_v14  ;;  %3768 = vmatpush1.bf16.msra.mxu1 %v6761_v15  ;;  %v6828_v14 = vld [vmem:[%s9391_s15 + $0xd8] ss:$20 sps:$4 sm:$0xff]  }
 0x8b4   :  { %3646 = vmatprep.subr.bf16.mxu0 %v6766_v18  ;;  %3769 = vmatprep.subr.bf16.mxu1 %v6769_v19  ;;  %v6829_v15 = vld [vmem:[%s9391_s15 + $0x358] ss:$20 sps:$4 sm:$0xff]   ;;  %v6830_v18 = vld [vmem:[%s9391_s15 + $0x240] ss:$20 sps:$4 sm:$0xff]  }
 0x8b5   :  { %3676 = vmatprep.mubr.bf16.mxu0 %v7428_v62  ;;  %3799 = vmatprep.mubr.bf16.mxu1 %v7428_v62  ;;  %v6831_v19 = vld [vmem:[%s9391_s15 + $0x4c0] ss:$20 sps:$4 sm:$0xff]  }
 0x8b7   :  { %3647 = vmatpush1.bf16.msra.mxu0 %v6764_v20  ;;  %3770 = vmatpush1.bf16.msra.mxu1 %v6767_v21  ;;  %v6832_v20 = vld [vmem:[%s9391_s15 + $0x100] ss:$20 sps:$4 sm:$0xff]  }
 0x8b8   :  { %3648 = vmatprep.subr.bf16.mxu0 %v6772_v22  ;;  %3771 = vmatprep.subr.bf16.mxu1 %v6775_v23  ;;  %v6833_v21 = vld [vmem:[%s9391_s15 + $0x380] ss:$20 sps:$4 sm:$0xff]   ;;  %v6834_v22 = vld [vmem:[%s9391_s15 + $0x268] ss:$20 sps:$4 sm:$0xff]  }
 0x8b9   :  { %v6835_v23 = vld [vmem:[%s9391_s15 + $0x4e8] ss:$20 sps:$4 sm:$0xff]  }
 0x8bb   :  { %3649 = vmatpush1.bf16.msra.mxu0 %v6770_v26  ;;  %3772 = vmatpush1.bf16.msra.mxu1 %v6773_v27  ;;  %v6836_v26 = vld [vmem:[%s9391_s15 + $0x128] ss:$20 sps:$4 sm:$0xff]  }
 0x8bc   :  { %3650 = vmatprep.subr.bf16.mxu0 %v6778_v28  ;;  %3773 = vmatprep.subr.bf16.mxu1 %v6781_v29  ;;  %v6837_v27 = vld [vmem:[%s9391_s15 + $0x3a8] ss:$20 sps:$4 sm:$0xff]   ;;  %v6848_v28 = vld [vmem:[%s9393_s17 + $0x4] ss:$12 sps:$4 sm:$0xff]  }
 0x8bd   :  { %v6838_v29 = vld [vmem:[%s9391_s15 + $0x510] ss:$20 sps:$4 sm:$0xff]  }
 0x8bf   :  { %3651 = vmatpush1.bf16.msra.mxu0 %v6776_v31  ;;  %3774 = vmatpush1.bf16.msra.mxu1 %v6779_v32  ;;  %v6846_v31 = vld [vmem:[%s9393_s17] ss:$12 sps:$4 sm:$0xff]   ;;  %v6851_v32 = vld [vmem:[%s9393_s17 + $0x1c] ss:$12 sps:$4 sm:$0xff]  }
 0x8c0   :  { %3652 = vmatprep.subr.bf16.mxu0 %v6784_v33  ;;  %3775 = vmatprep.subr.bf16.mxu1 %v6787_v34  ;;  %v6839_v33 = vld [vmem:[%s9391_s15 + $0x538] ss:$20 sps:$4 sm:$0xff]   ;;  %v6840_v34 = vld [vmem:[%s9391_s15 + $0x560] ss:$20 sps:$4 sm:$0xff]  }
 0x8c3   :  { %3653 = vmatpush1.bf16.msra.mxu0 %v6782_v36  ;;  %3776 = vmatpush1.bf16.msra.mxu1 %v6785_v37  ;;  %v6852_v36 = vld [vmem:[%s9393_s17 + $0x30] ss:$12 sps:$4 sm:$0xff]   ;;  %v6857_v37 = vld [vmem:[%s9393_s17 + $0x4c] ss:$12 sps:$4 sm:$0xff]  }
 0x8c4   :  { %3654 = vmatprep.subr.bf16.mxu0 %v6790_v39  ;;  %3777 = vmatprep.subr.bf16.mxu1 %v6793_v40  ;;  %v6841_v39 = vld [vmem:[%s9391_s15 + $0x588] ss:$20 sps:$4 sm:$0xff]  }
 0x8c5   :  { %v6855_v40 = vld [vmem:[%s9393_s17 + $0x48] ss:$12 sps:$4 sm:$0xff]  }
 0x8c7   :  { %3655 = vmatpush1.bf16.msra.mxu0 %v6788_v41  ;;  %3778 = vmatpush1.bf16.msra.mxu1 %v6791_v42  ;;  %v6860_v41 = vld [vmem:[%s9393_s17 + $0x64] ss:$12 sps:$4 sm:$0xff]  }
 0x8c8   :  { %3656 = vmatprep.subr.bf16.mxu0 %v6796_v43  ;;  %3779 = vmatprep.subr.bf16.mxu1 %v6799_v45  ;;  %v6842_v42 = vld [vmem:[%s9391_s15 + $0x5b0] ss:$20 sps:$4 sm:$0xff]   ;;  %v6858_v43 = vld [vmem:[%s9393_s17 + $0x60] ss:$12 sps:$4 sm:$0xff]   ;;  %v6863_v45 = vld [vmem:[%s9393_s17 + $0x7c] ss:$12 sps:$4 sm:$0xff]  }
 0x8cb   :  { %3657 = vmatpush1.bf16.msra.mxu0 %v6794_v46  ;;  %3780 = vmatpush1.bf16.msra.mxu1 %v6797_v48  ;;  %v6843_v46 = vld [vmem:[%s9391_s15 + $0x5d8] ss:$20 sps:$4 sm:$0xff]  }
 0x8cc   :  { %3658 = vmatprep.subr.bf16.mxu0 %v6802_v49  ;;  %3781 = vmatprep.subr.bf16.mxu1 %v6805_v51  ;;  %v6861_v48 = vld [vmem:[%s9393_s17 + $0x78] ss:$12 sps:$4 sm:$0xff]   ;;  %v6866_v49 = vld [vmem:[%s9393_s17 + $0x94] ss:$12 sps:$4 sm:$0xff]  }
 0x8cd   :  { %v6844_v51 = vld [vmem:[%s9391_s15 + $0x600] ss:$20 sps:$4 sm:$0xff]  }
 0x8cf   :  { %3659 = vmatpush1.bf16.msra.mxu0 %v6800_v52  ;;  %3782 = vmatpush1.bf16.msra.mxu1 %v6803_v53  ;;  %v6864_v52 = vld [vmem:[%s9393_s17 + $0x90] ss:$12 sps:$4 sm:$0xff]   ;;  %v6869_v53 = vld [vmem:[%s9393_s17 + $0xac] ss:$12 sps:$4 sm:$0xff]  }
 0x8d0   :  { %6083 = vmatprep.subr.bf16.mxu0 %v6806_v55  ;;  %6105 = vmatprep.subr.bf16.mxu1 %v6807_v56  ;;  %v6873_v55 = vld [vmem:[%s9393_s17 + $0xc8] ss:$12 sps:$4 sm:$0xff]  }
 0x8d1   :  { %v6867_v56 = vld [vmem:[%s9393_s17 + $0xa8] ss:$12 sps:$4 sm:$0xff]  }
 0x8d2   :  { %3677 = vmatmul.mubr.bf16.vlgmr.msra.gmra.mrb[24].mxu0 %v8671_v58  ;;  %3800 = vmatmul.mubr.bf16.vlgmr.msra.gmra.mrb[20].mxu1 %v8671_v58 }
 0x8d3   :  { %6084 = vmatpush3.bf16.msra.mxu0 %v6808_v57  ;;  %3840 = vmatprep.mubr.bf16.mxu0 %v8352_v44  ;;  %v6815_v44 = vld [vmem:[%s9391_s15 + $0x420] ss:$20 sps:$4 sm:$0xff]   ;;  %v6872_v57 = vld [vmem:[%s9393_s17 + $0xc4] ss:$12 sps:$4 sm:$0xff]  }
 0x8d4   :  { %6106 = vmatpush3.bf16.msra.mxu1 %v6809_v35  ;;  %3880 = vmatprep.mubr.bf16.mxu1 %v8370_v50  ;;  %v6817_v50 = vld [vmem:[%s9391_s15 + $0x2e0] ss:$20 sps:$4 sm:$0xff]  }
 0x8d5   :  { %6085 = vmatprep.subr.bf16.mxu0 %v6810_v59  ;;  %6107 = vmatprep.subr.bf16.mxu1 %v6811_v63  ;;  %v6874_v35 = vld [vmem:[%s9393_s17 + $0x8] ss:$12 sps:$4 sm:$0xff]   ;;  %v6878_v59 = vld [vmem:[%s9393_s17 + $0xe0] ss:$12 sps:$4 sm:$0xff]  }
 0x8d6   :  { %v6870_v63 = vld [vmem:[%s9393_s17 + $0xc0] ss:$12 sps:$4 sm:$0xff]  }
 0x8d7   :  { %6086 = vmatpush3.bf16.msra.mxu0 %v6812_v1  ;;  %v6877_v1 = vld [vmem:[%s9393_s17 + $0xdc] ss:$12 sps:$4 sm:$0xff]  }
 0x8d8   :  { %6108 = vmatpush3.bf16.msra.mxu1 %v6813_v2  ;;  %6087 = vmatprep.subr.bf16.mxu0 %v6814_v3  ;;  %v6879_v2 = vld [vmem:[%s9393_s17 + $0x20] ss:$12 sps:$4 sm:$0xff]   ;;  %v6883_v3 = vld [vmem:[%s9393_s17 + $0xf8] ss:$12 sps:$4 sm:$0xff]  }
 0x8d9   :  { %6109 = vmatprep.subr.bf16.mxu1 %v6815_v44  ;;  %v6882_v44 = vld [vmem:[%s9393_s17 + $0xf4] ss:$12 sps:$4 sm:$0xff]  }
 0x8db   :  { %6088 = vmatpush3.bf16.msra.mxu0 %v6816_v4  ;;  %v6884_v4 = vld [vmem:[%s9393_s17 + $0x38] ss:$12 sps:$4 sm:$0xff]  }
 0x8dc   :  { %6110 = vmatpush3.bf16.msra.mxu1 %v6817_v50  ;;  %6089 = vmatprep.subr.bf16.mxu0 %v6818_v5  ;;  %v6888_v50 = vld [vmem:[%s9393_s17 + $0x110] ss:$12 sps:$4 sm:$0xff]  }
 0x8dd   :  { %6111 = vmatprep.subr.bf16.mxu1 %v6819_v24  ;;  %v6880_v5 = vld [vmem:[%s9393_s17 + $0xf0] ss:$12 sps:$4 sm:$0xff]   ;;  %v6887_v24 = vld [vmem:[%s9393_s17 + $0x10c] ss:$12 sps:$4 sm:$0xff]  }
 0x8df   :  { %6090 = vmatpush3.bf16.msra.mxu0 %v6820_v6  ;;  %v6889_v6 = vld [vmem:[%s9393_s17 + $0x50] ss:$12 sps:$4 sm:$0xff]  }
 0x8e0   :  { %6112 = vmatpush3.bf16.msra.mxu1 %v6821_v7  ;;  %6091 = vmatprep.subr.bf16.mxu0 %v6822_v8  ;;  %v6893_v7 = vld [vmem:[%s9393_s17 + $0x128] ss:$12 sps:$4 sm:$0xff]  }
 0x8e1   :  { %6113 = vmatprep.subr.bf16.mxu1 %v6823_v9  ;;  %v6885_v8 = vld [vmem:[%s9393_s17 + $0x108] ss:$12 sps:$4 sm:$0xff]   ;;  %v6892_v9 = vld [vmem:[%s9393_s17 + $0x124] ss:$12 sps:$4 sm:$0xff]  }
 0x8e3   :  { %6092 = vmatpush3.bf16.msra.mxu0 %v6824_v30  ;;  %v6894_v30 = vld [vmem:[%s9393_s17 + $0x68] ss:$12 sps:$4 sm:$0xff]  }
 0x8e4   :  { %6114 = vmatpush3.bf16.msra.mxu1 %v6825_v10  ;;  %6093 = vmatprep.subr.bf16.mxu0 %v6826_v11  ;;  %v6898_v10 = vld [vmem:[%s9393_s17 + $0x140] ss:$12 sps:$4 sm:$0xff]  }
 0x8e5   :  { %6115 = vmatprep.subr.bf16.mxu1 %v6827_v13  ;;  %v6890_v11 = vld [vmem:[%s9393_s17 + $0x120] ss:$12 sps:$4 sm:$0xff]   ;;  %v6897_v13 = vld [vmem:[%s9393_s17 + $0x13c] ss:$12 sps:$4 sm:$0xff]  }
 0x8e7   :  { %6094 = vmatpush3.bf16.msra.mxu0 %v6828_v14  ;;  %v6899_v14 = vld [vmem:[%s9393_s17 + $0x80] ss:$12 sps:$4 sm:$0xff]  }
 0x8e8   :  { %6116 = vmatpush3.bf16.msra.mxu1 %v6829_v15  ;;  %6095 = vmatprep.subr.bf16.mxu0 %v6830_v18  ;;  %v6903_v15 = vld [vmem:[%s9393_s17 + $0x158] ss:$12 sps:$4 sm:$0xff]  }
 0x8e9   :  { %6117 = vmatprep.subr.bf16.mxu1 %v6831_v19  ;;  %v6895_v18 = vld [vmem:[%s9393_s17 + $0x138] ss:$12 sps:$4 sm:$0xff]   ;;  %v6902_v19 = vld [vmem:[%s9393_s17 + $0x154] ss:$12 sps:$4 sm:$0xff]  }
 0x8eb   :  { %6096 = vmatpush3.bf16.msra.mxu0 %v6832_v20  ;;  %v6904_v20 = vld [vmem:[%s9393_s17 + $0x98] ss:$12 sps:$4 sm:$0xff]  }
 0x8ec   :  { %6118 = vmatpush3.bf16.msra.mxu1 %v6833_v21  ;;  %6097 = vmatprep.subr.bf16.mxu0 %v6834_v22  ;;  %v6908_v21 = vld [vmem:[%s9393_s17 + $0x170] ss:$12 sps:$4 sm:$0xff]  }
 0x8ed   :  { %6119 = vmatprep.subr.bf16.mxu1 %v6835_v23  ;;  %v6900_v22 = vld [vmem:[%s9393_s17 + $0x150] ss:$12 sps:$4 sm:$0xff]   ;;  %v6907_v23 = vld [vmem:[%s9393_s17 + $0x16c] ss:$12 sps:$4 sm:$0xff]  }
 0x8ef   :  { %6098 = vmatpush3.bf16.msra.mxu0 %v6836_v26  ;;  %v6909_v26 = vld [vmem:[%s9393_s17 + $0xb0] ss:$12 sps:$4 sm:$0xff]  }
 0x8f0   :  { %6120 = vmatpush3.bf16.msra.mxu1 %v6837_v27  ;;  %6249 = vmatprep.subr.bf16.mxu0 %v7426_v12  ;;  %v6913_v27 = vld [vmem:[%s9393_s17 + $0x248] ss:$12 sps:$4 sm:$0xff]  }
 0x8f1   :  { %4755 = vmatprep.subr.bf16.mxu1 %v6848_v28  ;;  %v6905_v28 = vld [vmem:[%s9393_s17 + $0x168] ss:$12 sps:$4 sm:$0xff]  }
 0x8f2   :  { %3841 = vmatmul.mubr.bf16.vlgmr.msra.gmra.mrb[28].mxu0 %v8360_v47  ;;  %v6849_v47 = vld [vmem:[%s9393_s17 + $0x18] ss:$12 sps:$4 sm:$0xff]  }
 0x8f3   :  { %3881 = vmatmul.mubr.bf16.vlgmr.msra.gmra.mrb[24].mxu1 %v8571_v17  ;;  %6250 = vmatpush3.bf16.msra.mxu0 %v6838_v29  ;;  %v6854_v17 = vld [vmem:[%s9393_s17 + $0x34] ss:$12 sps:$4 sm:$0xff]   ;;  %v6912_v29 = vld [vmem:[%s9393_s17 + $0x184] ss:$12 sps:$4 sm:$0xff]  }
 0x8f4   :  { %6251 = vmatprep.subr.bf16.mxu0 %v7426_v12  ;;  %6265 = vmatprep.mubr.msk.bf16.mxu0 %vm7427_vm4, %v7426_v12 }
 0x8f5   :  { %4756 = vmatpush1.bf16.msra.mxu1 %v6846_v31  ;;  %v8951_v31 = vld [vmem:[#allocation19] sm:$0x1f] }
 0x8f6   :  { %4757 = vmatprep.subr.bf16.mxu1 %v6851_v32  ;;  %v2500_v32 = vrot.slane %v8951_v31, %v7817_v61 }
 0x8f7   :  { %6252 = vmatpush3.bf16.msra.mxu0 %v6839_v33  ;;  %v2504_v33 = vrot.slane %v8951_v31, %v7820_v0 }
 0x8f8   :  { %6253 = vmatprep.subr.bf16.mxu0 %v7426_v12 }
 0x8f9   :  { %4758 = vmatpush1.bf16.msra.mxu1 %v6849_v47  ;;  %v2512_v47 = vrot.slane %v8951_v31, %v1466_v25  ;;  %v6910_v25 = vld [vmem:[%s9393_s17 + $0x180] ss:$12 sps:$4 sm:$0xff]  }
 0x8fa   :  { %4759 = vmatprep.subr.bf16.mxu1 %v6854_v17 }
 0x8fb   :  { %6254 = vmatpush3.bf16.msra.mxu0 %v6840_v34 }
 0x8fc   :  { %6255 = vmatprep.subr.bf16.mxu0 %v7426_v12 }
 0x8fd   :  { %4760 = vmatpush1.bf16.msra.mxu1 %v6852_v36 }
 0x8fe   :  { %4761 = vmatprep.subr.bf16.mxu1 %v6857_v37 }
 0x8ff   :  { %6256 = vmatpush3.bf16.msra.mxu0 %v6841_v39 }
 0x900   :  { %6257 = vmatprep.subr.bf16.mxu0 %v7426_v12 }
 0x901   :  { %4762 = vmatpush1.bf16.msra.mxu1 %v6855_v40 }
 0x902   :  { %4763 = vmatprep.subr.bf16.mxu1 %v6860_v41 }
 0x903   :  { %6258 = vmatpush3.bf16.msra.mxu0 %v6842_v42 }
 0x904   :  { %6259 = vmatprep.subr.bf16.mxu0 %v7426_v12 }
 0x905   :  { %4764 = vmatpush1.bf16.msra.mxu1 %v6858_v43 }
 0x906   :  { %4765 = vmatprep.subr.bf16.mxu1 %v6863_v45 }
 0x907   :  { %6260 = vmatpush3.bf16.msra.mxu0 %v6843_v46 }
 0x908   :  { %6261 = vmatprep.subr.bf16.mxu0 %v7426_v12 }
 0x909   :  { %4766 = vmatpush1.bf16.msra.mxu1 %v6861_v48 }
 0x90a   :  { %4767 = vmatprep.subr.bf16.mxu1 %v6866_v49 }
 0x90b   :  { %6262 = vmatpush3.bf16.msra.mxu0 %v6844_v51 }
 0x90c   :  { %6263 = vmatprep.subr.bf16.mxu0 %v7426_v12 }
 0x90d   :  { %4768 = vmatpush1.bf16.msra.mxu1 %v6864_v52 }
 0x90e   :  { %4769 = vmatprep.subr.bf16.mxu1 %v6869_v53  ;;  %v6914_v53 = vld [vmem:[%s9393_s17 + $0x188] ss:$12 sps:$4 sm:$0xff]  }
 0x90f   :  { %6264 = vmatpush3.bf16.msra.mxu0 %v6845_v54 }
 0x910   :  { %6136 = vmatprep.subr.bf16.mxu0 %v6873_v55  ;;  %v6917_v55 = vld [vmem:[%s9393_s17 + $0x19c] ss:$12 sps:$4 sm:$0xff]  }
 0x911   :  { %4770 = vmatpush1.bf16.msra.mxu1 %v6867_v56  ;;  %v6918_v56 = vld [vmem:[%s9393_s17 + $0x260] ss:$12 sps:$4 sm:$0xff]  }
 0x912   :  { %6266 = vmatmul.mubr.bf16.vlgmr.msra.gmra.mrb[32].mxu0 %v8671_v58  ;;  %4771 = vmatprep.subr.bf16.mxu1 %v6872_v57  ;;  %v6875_v58 = vld [vmem:[%s9393_s17 + $0xd8] ss:$12 sps:$4 sm:$0xff]  }
 0x913   :  { %6137 = vmatpush3.bf16.msra.mxu0 %v6874_v35  ;;  %v6915_v35 = vld [vmem:[%s9393_s17 + $0x198] ss:$12 sps:$4 sm:$0xff]  }
 0x914   :  { %6138 = vmatprep.subr.bf16.mxu0 %v6878_v59  ;;  %v6919_v59 = vld [vmem:[%s9393_s17 + $0x1a0] ss:$12 sps:$4 sm:$0xff]  }
 0x915   :  { %4772 = vmatpush1.bf16.msra.mxu1 %v6870_v63  ;;  %v6922_v63 = vld [vmem:[%s9393_s17 + $0x1b4] ss:$12 sps:$4 sm:$0xff]  }
 0x916   :  { %4773 = vmatprep.subr.bf16.mxu1 %v6877_v1  ;;  %v6923_v1 = vld [vmem:[%s9393_s17 + $0x278] ss:$12 sps:$4 sm:$0xff]  }
 0x917   :  { %6139 = vmatpush3.bf16.msra.mxu0 %v6879_v2  ;;  %v6920_v2 = vld [vmem:[%s9393_s17 + $0x1b0] ss:$12 sps:$4 sm:$0xff]  }
 0x918   :  { %6140 = vmatprep.subr.bf16.mxu0 %v6883_v3  ;;  %v6924_v3 = vld [vmem:[%s9393_s17 + $0x1b8] ss:$12 sps:$4 sm:$0xff]  }
 0x919   :  { %4774 = vmatpush1.bf16.msra.mxu1 %v6875_v58  ;;  %v6927_v58 = vld [vmem:[%s9393_s17 + $0x1cc] ss:$12 sps:$4 sm:$0xff]  }
 0x91a   :  { %4775 = vmatprep.subr.bf16.mxu1 %v6882_v44  ;;  %v6928_v44 = vld [vmem:[%s9393_s17 + $0x290] ss:$12 sps:$4 sm:$0xff]  }
 0x91b   :  { %6141 = vmatpush3.bf16.msra.mxu0 %v6884_v4  ;;  %v6925_v4 = vld [vmem:[%s9393_s17 + $0x1c8] ss:$12 sps:$4 sm:$0xff]  }
 0x91c   :  { %6142 = vmatprep.subr.bf16.mxu0 %v6888_v50  ;;  %v6929_v50 = vld [vmem:[%s9393_s17 + $0x1d0] ss:$12 sps:$4 sm:$0xff]  }
 0x91d   :  { %4776 = vmatpush1.bf16.msra.mxu1 %v6880_v5  ;;  %v6932_v5 = vld [vmem:[%s9393_s17 + $0x1e4] ss:$12 sps:$4 sm:$0xff]  }
 0x91e   :  { %4777 = vmatprep.subr.bf16.mxu1 %v6887_v24  ;;  %v6933_v24 = vld [vmem:[%s9393_s17 + $0x2a8] ss:$12 sps:$4 sm:$0xff]  }
 0x91f   :  { %6143 = vmatpush3.bf16.msra.mxu0 %v6889_v6  ;;  %v6930_v6 = vld [vmem:[%s9393_s17 + $0x1e0] ss:$12 sps:$4 sm:$0xff]  }
 0x920   :  { %6144 = vmatprep.subr.bf16.mxu0 %v6893_v7  ;;  %v6934_v7 = vld [vmem:[%s9393_s17 + $0x1e8] ss:$12 sps:$4 sm:$0xff]  }
 0x921   :  { %4778 = vmatpush1.bf16.msra.mxu1 %v6885_v8  ;;  %v6937_v8 = vld [vmem:[%s9393_s17 + $0x1fc] ss:$12 sps:$4 sm:$0xff]  }
 0x922   :  { %4779 = vmatprep.subr.bf16.mxu1 %v6892_v9  ;;  %v6938_v9 = vld [vmem:[%s9393_s17 + $0x2c0] ss:$12 sps:$4 sm:$0xff]  }
 0x923   :  { %6145 = vmatpush3.bf16.msra.mxu0 %v6894_v30  ;;  %v6935_v30 = vld [vmem:[%s9393_s17 + $0x1f8] ss:$12 sps:$4 sm:$0xff]  }
 0x924   :  { %6146 = vmatprep.subr.bf16.mxu0 %v6898_v10  ;;  %v6939_v10 = vld [vmem:[%s9393_s17 + $0x200] ss:$12 sps:$4 sm:$0xff]  }
 0x925   :  { %4780 = vmatpush1.bf16.msra.mxu1 %v6890_v11  ;;  %v2508_v11 = vrot.slane %v8951_v31, %v8029_v38 }
 0x926   :  { %4781 = vmatprep.subr.bf16.mxu1 %v6897_v13  ;;  %v6942_v13 = vld [vmem:[%s9393_s17 + $0x214] ss:$12 sps:$4 sm:$0xff]  }
 0x927   :  { %6147 = vmatpush3.bf16.msra.mxu0 %v6899_v14  ;;  %v6943_v14 = vld [vmem:[%s9393_s17 + $0x2d8] ss:$12 sps:$4 sm:$0xff]  }
 0x928   :  { %6148 = vmatprep.subr.bf16.mxu0 %v6903_v15  ;;  %v6940_v15 = vld [vmem:[%s9393_s17 + $0x210] ss:$12 sps:$4 sm:$0xff]  }
 0x929   :  { %4782 = vmatpush1.bf16.msra.mxu1 %v6895_v18  ;;  %v6944_v18 = vld [vmem:[%s9393_s17 + $0x218] ss:$12 sps:$4 sm:$0xff]  }
 0x92a   :  { %4783 = vmatprep.subr.bf16.mxu1 %v6902_v19 }
 0x92b   :  { %6149 = vmatpush3.bf16.msra.mxu0 %v6904_v20  ;;  %v6947_v20 = vld [vmem:[%s9393_s17 + $0x22c] ss:$12 sps:$4 sm:$0xff]  }
 0x92c   :  { %6150 = vmatprep.subr.bf16.mxu0 %v6908_v21  ;;  %v6948_v21 = vld [vmem:[%s9393_s17 + $0x2f0] ss:$12 sps:$4 sm:$0xff]  }
 0x92d   :  { %4784 = vmatpush1.bf16.msra.mxu1 %v6900_v22 }
 0x92e   :  { %4785 = vmatprep.subr.bf16.mxu1 %v6907_v23  ;;  %v2516_v23 = vrot.slane %v8951_v31, %v1470_v16  ;;  %v6952_v16 = vld [vmem:[%s9393_s17 + $0x244] ss:$12 sps:$4 sm:$0xff]  }
 0x92f   :  { %6151 = vmatpush3.bf16.msra.mxu0 %v6909_v26 }
 0x930   :  { %6158 = vmatprep.subr.bf16.mxu0 %v6913_v27 }
 0x931   :  { %4786 = vmatpush1.bf16.msra.mxu1 %v6905_v28 }
 0x932   :  { %4796 = vmatprep.subr.bf16.mxu1 %v6912_v29 }
 0x9a5   :  { %v3678_v17 = vpop.f32.mrb[24].mxu0  ;;  %v8960_v34 = vpop.f32.mrb[20].mxu1 }
 0x9a6   :  { %v6317_v36 = vadd.f32 %v3678_v17, %v2500_v32  ;;  %v3680_v37 = vpop.f32.mrb[25].mxu0  ;;  %v3803_v39 = vpop.f32.mrb[21].mxu1  ;;  %v6319_v19 = vadd.f32 %v8960_v34, %v2508_v11  ;;  %v6990_v11 = vld [vmem:[%s9393_s17 + $0x334] ss:$12 sps:$4 sm:$0xff]  }
 0x9a7   :  { %v6318_v40 = vadd.f32 %v3680_v37, %v2504_v33  ;;  %v6320_v41 = vadd.f32 %v3803_v39, %v2512_v47  ;;  %v3682_v42 = vpop.f32.mrb[26].mxu0  ;;  %v3805_v43 = vpop.f32.mrb[22].mxu1  ;;  %v6945_v33 = vld [vmem:[%s9393_s17 + $0x228] ss:$12 sps:$4 sm:$0xff]   ;;  %v6949_v47 = vld [vmem:[%s9393_s17 + $0x230] ss:$12 sps:$4 sm:$0xff]  }
 0x9a8   :  { %v3928_v45 = vmax.f32 %v6317_v36, 0.0  ;;  %v3683_v46 = vpop.f32.mrb[27].mxu0  ;;  %v3806_v48 = vpop.f32.mrb[23].mxu1  ;;  %v3930_v17 = vmax.f32 %v6319_v19, 0.0  ;;  %v6950_v39 = vld [vmem:[%s9393_s17 + $0x240] ss:$12 sps:$4 sm:$0xff]  }
 0x9a9   :  { %v3929_v49 = vmax.f32 %v6318_v40, 0.0  ;;  %v3931_v51 = vmax.f32 %v6320_v41, 0.0  ;;  %v6953_v40 = vld [vmem:[%s9393_s17 + $0x308] ss:$12 sps:$4 sm:$0xff]   ;;  %v6957_v46 = vld [vmem:[%s9393_s17 + $0x320] ss:$12 sps:$4 sm:$0xff]  }
 0x9aa   :  { %v3933_v54 = vpack.c.bf16 %v3928_v45, %v3928_v45  ;;  %v9067_v42 = vpack.c.bf16 %v3930_v17, %v3930_v17  ;;  %v6956_v43 = vld [vmem:[%s9393_s17 + $0x25c] ss:$12 sps:$4 sm:$0xff]   ;;  %v6954_v45 = vld [vmem:[%s9393_s17 + $0x258] ss:$12 sps:$4 sm:$0xff]   ;;  %v6960_v48 = vld [vmem:[%s9393_s17 + $0x274] ss:$12 sps:$4 sm:$0xff]  }
 0x9ab   :  { %v3934_v52 = vpack.c.bf16 %v3929_v49, %v3929_v49  ;;  %v3936_v57 = vpack.c.bf16 %v3931_v51, %v3931_v51  ;;  %v6958_v49 = vld [vmem:[%s9393_s17 + $0x270] ss:$12 sps:$4 sm:$0xff]   ;;  %v6961_v51 = vld [vmem:[%s9393_s17 + $0x338] ss:$12 sps:$4 sm:$0xff]   ;;  %v6994_v19 = vld [vmem:[%s9393_s17 + $0x360] ss:$12 sps:$4 sm:$0xff]  }
 0x9ac   :  { %v7012_v17 = vld [vmem:[%s9395_s19 + $0x20] ss:$8 sps:$4 sm:$0xff]  }
 0x9ad   :  { %4787 = vmatprep.mubr.bf16.mxu1 %v3934_v52  ;;  %4910 = vmatprep.mubr.bf16.mxu0 %v3934_v52  ;;  %v6964_v52 = vld [vmem:[%s9393_s17 + $0x28c] ss:$12 sps:$4 sm:$0xff]  }
 0x9ae   :  { %4788 = vmatmul.mubr.bf16.vlgmr.msra.gmra.mrb[28].mxu1 %v3933_v54  ;;  %4911 = vmatmul.mubr.bf16.vlgmr.msra.gmra.mrb[36].mxu0 %v3933_v54  ;;  %v6968_v54 = vld [vmem:[%s9393_s17 + $0x2a4] ss:$12 sps:$4 sm:$0xff]  }
 0x9af   :  { %4797 = vmatpush1.bf16.msra.mxu1 %v6910_v25  ;;  %6159 = vmatpush3.bf16.msra.mxu0 %v6914_v53  ;;  %v6962_v25 = vld [vmem:[%s9393_s17 + $0x288] ss:$12 sps:$4 sm:$0xff]   ;;  %v6965_v53 = vld [vmem:[%s9393_s17 + $0x350] ss:$12 sps:$4 sm:$0xff]  }
 0x9b0   :  { %4828 = vmatprep.mubr.bf16.mxu1 %v3936_v57  ;;  %4950 = vmatprep.mubr.bf16.mxu0 %v3936_v57  ;;  %v6972_v57 = vld [vmem:[%s9393_s17 + $0x2bc] ss:$12 sps:$4 sm:$0xff]  }
 0x9b1   :  { %4798 = vmatprep.subr.bf16.mxu1 %v6917_v55  ;;  %6160 = vmatprep.subr.bf16.mxu0 %v6918_v56  ;;  %v6966_v55 = vld [vmem:[%s9393_s17 + $0x2a0] ss:$12 sps:$4 sm:$0xff]   ;;  %v6969_v56 = vld [vmem:[%s9393_s17 + $0x368] ss:$12 sps:$4 sm:$0xff]  }
 0x9b3   :  { %4799 = vmatpush1.bf16.msra.mxu1 %v6915_v35  ;;  %6161 = vmatpush3.bf16.msra.mxu0 %v6919_v59  ;;  %v6970_v35 = vld [vmem:[%s9393_s17 + $0x2b8] ss:$12 sps:$4 sm:$0xff]   ;;  %v6973_v59 = vld [vmem:[%s9393_s17 + $0x380] ss:$12 sps:$4 sm:$0xff]  }
 0x9b4   :  { %4800 = vmatprep.subr.bf16.mxu1 %v6922_v63  ;;  %6162 = vmatprep.subr.bf16.mxu0 %v6923_v1  ;;  %v6976_v63 = vld [vmem:[%s9393_s17 + $0x2d4] ss:$12 sps:$4 sm:$0xff]   ;;  %v6974_v1 = vld [vmem:[%s9393_s17 + $0x2d0] ss:$12 sps:$4 sm:$0xff]  }
 0x9b7   :  { %4801 = vmatpush1.bf16.msra.mxu1 %v6920_v2  ;;  %6163 = vmatpush3.bf16.msra.mxu0 %v6924_v3  ;;  %v6977_v2 = vld [vmem:[%s9393_s17 + $0x398] ss:$12 sps:$4 sm:$0xff]  }
 0x9b8   :  { %4802 = vmatprep.subr.bf16.mxu1 %v6927_v58  ;;  %6164 = vmatprep.subr.bf16.mxu0 %v6928_v44  ;;  %v6980_v3 = vld [vmem:[%s9393_s17 + $0x2ec] ss:$12 sps:$4 sm:$0xff]  }
 0x9bb   :  { %4803 = vmatpush1.bf16.msra.mxu1 %v6925_v4  ;;  %6165 = vmatpush3.bf16.msra.mxu0 %v6929_v50 }
 0x9bc   :  { %4804 = vmatprep.subr.bf16.mxu1 %v6932_v5  ;;  %6166 = vmatprep.subr.bf16.mxu0 %v6933_v24  ;;  %v6978_v5 = vld [vmem:[%s9393_s17 + $0x2e8] ss:$12 sps:$4 sm:$0xff]   ;;  %v6981_v24 = vld [vmem:[%s9393_s17 + $0x3b0] ss:$12 sps:$4 sm:$0xff]  }
 0x9bf   :  { %4805 = vmatpush1.bf16.msra.mxu1 %v6930_v6  ;;  %6167 = vmatpush3.bf16.msra.mxu0 %v6934_v7 }
 0x9c0   :  { %4806 = vmatprep.subr.bf16.mxu1 %v6937_v8  ;;  %6168 = vmatprep.subr.bf16.mxu0 %v6938_v9  ;;  %v6984_v8 = vld [vmem:[%s9393_s17 + $0x304] ss:$12 sps:$4 sm:$0xff]  }
 0x9c3   :  { %4807 = vmatpush1.bf16.msra.mxu1 %v6935_v30  ;;  %6169 = vmatpush3.bf16.msra.mxu0 %v6939_v10  ;;  %v6982_v30 = vld [vmem:[%s9393_s17 + $0x300] ss:$12 sps:$4 sm:$0xff]   ;;  %v6987_v10 = vld [vmem:[%s9393_s17 + $0x31c] ss:$12 sps:$4 sm:$0xff]  }
 0x9c4   :  { %4808 = vmatprep.subr.bf16.mxu1 %v6942_v13  ;;  %6170 = vmatprep.subr.bf16.mxu0 %v6943_v14  ;;  %v6988_v13 = vld [vmem:[%s9393_s17 + $0x330] ss:$12 sps:$4 sm:$0xff]   ;;  %v6993_v14 = vld [vmem:[%s9393_s17 + $0x34c] ss:$12 sps:$4 sm:$0xff]  }
 0x9c5   :  { %v6099_v22 = vpop.f32.mrb[28].mxu0 }
 0x9c6   :  { %v6121_v26 = vpop.f32.mrb[24].mxu1  ;;  %v6100_v27 = vpop.f32.mrb[29].mxu0 }
 0x9c7   :  { %v6101_v28 = vadd.f32 %v6100_v27, %v6099_v22  ;;  %v6122_v29 = vpop.f32.mrb[25].mxu1  ;;  %4809 = vmatpush1.bf16.msra.mxu1 %v6940_v15  ;;  %6171 = vmatpush3.bf16.msra.mxu0 %v6944_v18  ;;  %v6102_v32 = vpop.f32.mrb[30].mxu0  ;;  %v6991_v15 = vld [vmem:[%s9393_s17 + $0x348] ss:$12 sps:$4 sm:$0xff]   ;;  %v6996_v18 = vld [vmem:[%s9393_s17 + $0x364] ss:$12 sps:$4 sm:$0xff]  }
 0x9c8   :  { %v6123_v34 = vadd.f32 %v6122_v29, %v6121_v26  ;;  %v6124_v60 = vpop.f32.mrb[26].mxu1  ;;  %v6103_v36 = vpop.f32.mrb[31].mxu0  ;;  %4810 = vmatprep.subr.bf16.mxu1 %v6947_v20  ;;  %6172 = vmatprep.subr.bf16.mxu0 %v6948_v21  ;;  %v6999_v20 = vld [vmem:[%s9393_s17 + $0x37c] ss:$12 sps:$4 sm:$0xff]   ;;  %v6997_v21 = vld [vmem:[%s9393_s17 + $0x378] ss:$12 sps:$4 sm:$0xff]  }
 0x9c9   :  { %v3843_v31 = vadd.f32 %v6101_v28, %v2516_v23  ;;  %v6125_v37 = vpop.f32.mrb[27].mxu1  ;;  %v7002_v22 = vld [vmem:[%s9393_s17 + $0x394] ss:$12 sps:$4 sm:$0xff]   ;;  %v7000_v23 = vld [vmem:[%s9393_s17 + $0x390] ss:$12 sps:$4 sm:$0xff]  }
 0x9ca   :  { %v7005_v26 = vld [vmem:[%s9393_s17 + $0x3ac] ss:$12 sps:$4 sm:$0xff]   ;;  %v7003_v27 = vld [vmem:[%s9393_s17 + $0x3a8] ss:$12 sps:$4 sm:$0xff]  }
 0x9cb   :  { %4811 = vmatpush1.bf16.msra.mxu1 %v6945_v33  ;;  %6173 = vmatpush3.bf16.msra.mxu0 %v6949_v47  ;;  %v3883_v41 = vadd.f32 %v6123_v34, %v3843_v31  ;;  %v7006_v28 = vld [vmem:[%s9395_s19] ss:$8 sps:$4 sm:$0xff]   ;;  %v7008_v29 = vld [vmem:[%s9395_s19 + $0x4] ss:$8 sps:$4 sm:$0xff]   ;;  %v7011_v32 = vld [vmem:[%s9395_s19 + $0x14] ss:$8 sps:$4 sm:$0xff]  }
 0x9cc   :  { %4812 = vmatprep.subr.bf16.mxu1 %v6952_v16  ;;  %6269 = vmatprep.subr.bf16.mxu0 %v7426_v12  ;;  %v7009_v33 = vld [vmem:[%s9395_s19 + $0x10] ss:$8 sps:$4 sm:$0xff]   ;;  %v7014_v47 = vld [vmem:[%s9395_s19 + $0x24] ss:$8 sps:$4 sm:$0xff]   ;;  %v7017_v34 = vld [vmem:[%s9395_s19 + $0x34] ss:$8 sps:$4 sm:$0xff]  }
 0x9cd   :  { %v7015_v60 = vld [vmem:[%s9395_s19 + $0x30] ss:$8 sps:$4 sm:$0xff]   ;;  %v7020_v36 = vld [vmem:[%s9395_s19 + $0x44] ss:$8 sps:$4 sm:$0xff]   ;;  %v7018_v16 = vld [vmem:[%s9395_s19 + $0x40] ss:$8 sps:$4 sm:$0xff]  }
 0x9ce   :  { %4951 = vmatmul.mubr.bf16.vlgmr.msra.gmra.mrb[40].mxu0 %v9067_v42  ;;  %v7023_v31 = vld [vmem:[%s9395_s19 + $0x54] ss:$8 sps:$4 sm:$0xff]   ;;  %v7021_v37 = vld [vmem:[%s9395_s19 + $0x50] ss:$8 sps:$4 sm:$0xff]  }
 0x9cf   :  { %4813 = vmatpush1.bf16.msra.mxu1 %v6950_v39  ;;  %6270 = vmatpush3.bf16.msra.mxu0 %v6953_v40  ;;  %v7026_v39 = vld [vmem:[%s9395_s19 + $0x64] ss:$8 sps:$4 sm:$0xff]   ;;  %v7024_v40 = vld [vmem:[%s9395_s19 + $0x60] ss:$8 sps:$4 sm:$0xff]  }
 0x9d0   :  { %4814 = vmatprep.subr.bf16.mxu1 %v6956_v43  ;;  %6271 = vmatprep.subr.bf16.mxu0 %v7426_v12  ;;  %v7030_v43 = vld [vmem:[%s9395_s19 + $0x80] ss:$8 sps:$4 sm:$0xff]  }
 0x9d1   :  { %6285 = vmatprep.mubr.msk.bf16.mxu0 %vm7427_vm4, %v7426_v12 }
 0x9d3   :  { %4815 = vmatpush1.bf16.msra.mxu1 %v6954_v45  ;;  %6272 = vmatpush3.bf16.msra.mxu0 %v6957_v46  ;;  %v7032_v45 = vld [vmem:[%s9395_s19 + $0x84] ss:$8 sps:$4 sm:$0xff]   ;;  %v7035_v46 = vld [vmem:[%s9395_s19 + $0x94] ss:$8 sps:$4 sm:$0xff]  }
 0x9d4   :  { %4816 = vmatprep.subr.bf16.mxu1 %v6960_v48  ;;  %6273 = vmatprep.subr.bf16.mxu0 %v7426_v12  ;;  %v7033_v48 = vld [vmem:[%s9395_s19 + $0x90] ss:$8 sps:$4 sm:$0xff]  }
 0x9d7   :  { %4817 = vmatpush1.bf16.msra.mxu1 %v6958_v49  ;;  %6274 = vmatpush3.bf16.msra.mxu0 %v6961_v51  ;;  %v7038_v49 = vld [vmem:[%s9395_s19 + $0xa4] ss:$8 sps:$4 sm:$0xff]   ;;  %v7036_v51 = vld [vmem:[%s9395_s19 + $0xa0] ss:$8 sps:$4 sm:$0xff]  }
 0x9d8   :  { %4818 = vmatprep.subr.bf16.mxu1 %v6964_v52  ;;  %6275 = vmatprep.subr.bf16.mxu0 %v7426_v12  ;;  %v7041_v52 = vld [vmem:[%s9395_s19 + $0xb4] ss:$8 sps:$4 sm:$0xff]  }
 0x9db   :  { %4819 = vmatpush1.bf16.msra.mxu1 %v6962_v25  ;;  %6276 = vmatpush3.bf16.msra.mxu0 %v6965_v53  ;;  %v7039_v25 = vld [vmem:[%s9395_s19 + $0xb0] ss:$8 sps:$4 sm:$0xff]   ;;  %v7044_v53 = vld [vmem:[%s9395_s19 + $0xc4] ss:$8 sps:$4 sm:$0xff]  }
 0x9dc   :  { %4820 = vmatprep.subr.bf16.mxu1 %v6968_v54  ;;  %6277 = vmatprep.subr.bf16.mxu0 %v7426_v12  ;;  %v7042_v54 = vld [vmem:[%s9395_s19 + $0xc0] ss:$8 sps:$4 sm:$0xff]  }
 0x9df   :  { %4821 = vmatpush1.bf16.msra.mxu1 %v6966_v55  ;;  %6278 = vmatpush3.bf16.msra.mxu0 %v6969_v56  ;;  %v7047_v55 = vld [vmem:[%s9395_s19 + $0xd4] ss:$8 sps:$4 sm:$0xff]   ;;  %v7045_v56 = vld [vmem:[%s9395_s19 + $0xd0] ss:$8 sps:$4 sm:$0xff]  }
 0x9e0   :  { %4822 = vmatprep.subr.bf16.mxu1 %v6972_v57  ;;  %6279 = vmatprep.subr.bf16.mxu0 %v7426_v12  ;;  %v7050_v57 = vld [vmem:[%s9395_s19 + $0xe4] ss:$8 sps:$4 sm:$0xff]  }
 0x9e3   :  { %4823 = vmatpush1.bf16.msra.mxu1 %v6970_v35  ;;  %6280 = vmatpush3.bf16.msra.mxu0 %v6973_v59  ;;  %v7048_v35 = vld [vmem:[%s9395_s19 + $0xe0] ss:$8 sps:$4 sm:$0xff]   ;;  %v7053_v59 = vld [vmem:[%s9395_s19 + $0xf4] ss:$8 sps:$4 sm:$0xff]  }
 0x9e4   :  { %4824 = vmatprep.subr.bf16.mxu1 %v6976_v63  ;;  %6281 = vmatprep.subr.bf16.mxu0 %v7426_v12  ;;  %v7051_v63 = vld [vmem:[%s9395_s19 + $0xf0] ss:$8 sps:$4 sm:$0xff]  }
 0x9e5   :  { %v3922_v58 = vpop.f32.mrb[32].mxu0 }
 0x9e6   :  { %v3923_v44 = vadd.f32 %v3922_v58, %v3883_v41  ;;  %v6267_v4 = vpop.f32.mrb[33].mxu0  ;;  %v7029_v41 = vld [vmem:[%s9395_s19 + $0x74] ss:$8 sps:$4 sm:$0xff]  }
 0x9e7   :  { %4825 = vmatpush1.bf16.msra.mxu1 %v6974_v1  ;;  %6282 = vmatpush3.bf16.msra.mxu0 %v6977_v2  ;;  %v3925_v50 = vpop.f32.mrb[34].mxu0  ;;  %v7056_v1 = vld [vmem:[%s9395_s19 + $0x104] ss:$8 sps:$4 sm:$0xff]   ;;  %v7068_v58 = vld [vmem:[%s9397_s21 + $0x10] sm:$0xff]  }
 0x9e8   :  { %v3932_v6 = vmax.f32 %v3923_v44, 0.0  ;;  %v6268_v7 = vpop.f32.mrb[35].mxu0  ;;  %4826 = vmatprep.subr.bf16.mxu1 %v6980_v3  ;;  %6283 = vmatprep.subr.bf16.mxu0 %v7426_v12  ;;  %v6985_v12 = vld [vmem:[%s9393_s17 + $0x318] ss:$12 sps:$4 sm:$0xff]   ;;  %v7067_v3 = vld [vmem:[%s9397_s21 + $0x8] sm:$0xff]  }
 0x9e9   :  { %v7066_v2 = vld [vmem:[%s9397_s21] sm:$0xff]  }
 0x9ea   :  { %v3937_v9 = vpack.c.bf16 %v3932_v6, %v3932_v6  ;;  %v7069_v6 = vld [vmem:[%s9397_s21 + $0x18] sm:$0xff]   ;;  %v7070_v7 = vld [vmem:[%s9397_s21 + $0x20] sm:$0xff]  }
 0x9eb   :  { %4827 = vmatpush1.bf16.msra.mxu1 %v6978_v5  ;;  %6284 = vmatpush3.bf16.msra.mxu0 %v6981_v24 }
 0x9ec   :  { %4837 = vmatprep.subr.bf16.mxu1 %v6984_v8  ;;  %5259 = vmatprep.subr.bf16.mxu0 %v7008_v29  ;;  %v7071_v8 = vld [vmem:[%s9397_s21 + $0x28] sm:$0xff]  }
 0x9ee   :  { %4829 = vmatmul.mubr.bf16.vlgmr.msra.gmra.mrb[28].mxu1 %v9067_v42  ;;  %6286 = vmatmul.mubr.bf16.vlgmr.msra.gmra.mrb[44].mxu0 %v3937_v9  ;;  %v7027_v42 = vld [vmem:[%s9395_s19 + $0x70] ss:$8 sps:$4 sm:$0xff]  }
 0x9ef   :  { %4838 = vmatpush1.bf16.msra.mxu1 %v6982_v30  ;;  %4869 = vmatprep.mubr.bf16.mxu1 %v7428_v62  ;;  %v7073_v30 = vld [vmem:[%s9397_s21 + $0x38] sm:$0xff]  }
 0x9f0   :  { %4839 = vmatprep.subr.bf16.mxu1 %v6987_v10  ;;  %5260 = vmatpush1.bf16.msra.mxu0 %v7006_v28  ;;  %v4098_v10 = vld [vmem:[#allocation20] sm:$0x7] }
 0x9f1   :  { %5261 = vmatprep.subr.bf16.mxu0 %v7011_v32  ;;  %v4103_v28 = vrot.slane %v4098_v10, %v7817_v61  ;;  %v4107_v29 = vrot.slane %v4098_v10, %v7820_v0 }
 0x9f3   :  { %4840 = vmatpush1.bf16.msra.mxu1 %v6985_v12  ;;  %v4111_v12 = vrot.slane %v4098_v10, %v8029_v38 }
 0x9f4   :  { %4841 = vmatprep.subr.bf16.mxu1 %v6990_v11  ;;  %5262 = vmatpush1.bf16.msra.mxu0 %v7009_v33 }
 0x9f5   :  { %5263 = vmatprep.subr.bf16.mxu0 %v7014_v47 }
 0x9f7   :  { %4842 = vmatpush1.bf16.msra.mxu1 %v6988_v13 }
 0x9f8   :  { %4843 = vmatprep.subr.bf16.mxu1 %v6993_v14  ;;  %5264 = vmatpush1.bf16.msra.mxu0 %v7012_v17 }
 0x9f9   :  { %5265 = vmatprep.subr.bf16.mxu0 %v7017_v34 }
 0x9fb   :  { %4844 = vmatpush1.bf16.msra.mxu1 %v6991_v15 }
 0x9fc   :  { %4845 = vmatprep.subr.bf16.mxu1 %v6996_v18  ;;  %5266 = vmatpush1.bf16.msra.mxu0 %v7015_v60 }
 0x9fd   :  { %5267 = vmatprep.subr.bf16.mxu0 %v7020_v36 }
 0x9ff   :  { %4846 = vmatpush1.bf16.msra.mxu1 %v6994_v19 }
 0xa00   :  { %4847 = vmatprep.subr.bf16.mxu1 %v6999_v20  ;;  %5268 = vmatpush1.bf16.msra.mxu0 %v7018_v16 }
 0xa01   :  { %5269 = vmatprep.subr.bf16.mxu0 %v7023_v31  ;;  %v7054_v31 = vld [vmem:[%s9395_s19 + $0x100] ss:$8 sps:$4 sm:$0xff]  }
 0xa03   :  { %4848 = vmatpush1.bf16.msra.mxu1 %v6997_v21 }
 0xa04   :  { %4849 = vmatprep.subr.bf16.mxu1 %v7002_v22  ;;  %5270 = vmatpush1.bf16.msra.mxu0 %v7021_v37 }
 0xa05   :  { %5271 = vmatprep.subr.bf16.mxu0 %v7026_v39  ;;  %v7059_v39 = vld [vmem:[%s9395_s19 + $0x114] ss:$8 sps:$4 sm:$0xff]  }
 0xa07   :  { %4850 = vmatpush1.bf16.msra.mxu1 %v7000_v23 }
 0xa08   :  { %4851 = vmatprep.subr.bf16.mxu1 %v7005_v26  ;;  %5272 = vmatpush1.bf16.msra.mxu0 %v7024_v40  ;;  %v7057_v40 = vld [vmem:[%s9395_s19 + $0x110] ss:$8 sps:$4 sm:$0xff]  }
 0xa09   :  { %5273 = vmatprep.subr.bf16.mxu0 %v7029_v41  ;;  %v7062_v41 = vld [vmem:[%s9395_s19 + $0x124] ss:$8 sps:$4 sm:$0xff]  }
 0xa0b   :  { %4852 = vmatpush1.bf16.msra.mxu1 %v7003_v27 }
 0xa0c   :  { %5435 = vmatprep.subr.bf16.mxu1 %v7428_v62  ;;  %5274 = vmatpush1.bf16.msra.mxu0 %v7027_v42  ;;  %v7060_v42 = vld [vmem:[%s9395_s19 + $0x120] ss:$8 sps:$4 sm:$0xff]  }
 0xa0d   :  { %5275 = vmatprep.subr.bf16.mxu0 %v7032_v45  ;;  %v7063_v45 = vld [vmem:[%s9395_s19 + $0x130] ss:$8 sps:$4 sm:$0xff]  }
 0xa0e   :  { %4870 = vmatmul.mubr.bf16.vlgmr.msra.gmra.mrb[28].mxu1 %v3937_v9  ;;  %v7072_v9 = vld [vmem:[%s9397_s21 + $0x30] sm:$0xff]  }
 0xa0f   :  { %5436 = vmatpush1.bf16.msra.mxu1 %v7066_v2 }
 0xa10   :  { %5276 = vmatpush1.bf16.msra.mxu0 %v7030_v43  ;;  %5437 = vmatprep.subr.bf16.mxu1 %v7428_v62  ;;  %v7065_v43 = vld [vmem:[%s9395_s19 + $0x134] ss:$8 sps:$4 sm:$0xff]  }
 0xa11   :  { %5277 = vmatprep.subr.bf16.mxu0 %v7035_v46 }
 0xa13   :  { %5438 = vmatpush1.bf16.msra.mxu1 %v7067_v3  ;;  %v6020_v3 = vld [vmem:[%s9429_s26] ss:$0 sm:$0xff] }
 0xa14   :  { %5278 = vmatpush1.bf16.msra.mxu0 %v7033_v48  ;;  %5439 = vmatprep.subr.bf16.mxu1 %v7428_v62 }
 0xa15   :  { %5279 = vmatprep.subr.bf16.mxu0 %v7038_v49  ;;  %v7074_v49 = vld [vmem:[%s9397_s21 + $0x40] sm:$0xff]  }
 0xa17   :  { %5440 = vmatpush1.bf16.msra.mxu1 %v7068_v58 }
 0xa18   :  { %5280 = vmatpush1.bf16.msra.mxu0 %v7036_v51  ;;  %5441 = vmatprep.subr.bf16.mxu1 %v7428_v62  ;;  %v7075_v51 = vld [vmem:[%s9397_s21 + $0x48] sm:$0xff]  }
 0xa19   :  { %5281 = vmatprep.subr.bf16.mxu0 %v7041_v52  ;;  %v5044_v52 = vld [vmem:[#allocation22] sm:$0x3] }
 0xa1b   :  { %5442 = vmatpush1.bf16.msra.mxu1 %v7069_v6 }
 0xa1c   :  { %5282 = vmatpush1.bf16.msra.mxu0 %v7039_v25  ;;  %5443 = vmatprep.subr.bf16.mxu1 %v7428_v62  ;;  %v5049_v25 = vrot.slane %v5044_v52, %v7817_v61 }
 0xa1d   :  { %5283 = vmatprep.subr.bf16.mxu0 %v7044_v53  ;;  %v5053_v53 = vrot.slane %v5044_v52, %v7820_v0 }
 0xa1f   :  { %5444 = vmatpush1.bf16.msra.mxu1 %v7070_v7 }
 0xa20   :  { %5284 = vmatpush1.bf16.msra.mxu0 %v7042_v54  ;;  %5445 = vmatprep.subr.bf16.mxu1 %v7428_v62 }
 0xa21   :  { %5285 = vmatprep.subr.bf16.mxu0 %v7047_v55 }
 0xa23   :  { %5446 = vmatpush1.bf16.msra.mxu1 %v7071_v8 }
 0xa24   :  { %5286 = vmatpush1.bf16.msra.mxu0 %v7045_v56  ;;  %5447 = vmatprep.subr.bf16.mxu1 %v7428_v62 }
 0xa25   :  { %5287 = vmatprep.subr.bf16.mxu0 %v7050_v57 }
 0xa27   :  { %5448 = vmatpush1.bf16.msra.mxu1 %v7072_v9 }
 0xa28   :  { %5288 = vmatpush1.bf16.msra.mxu0 %v7048_v35  ;;  %5449 = vmatprep.subr.bf16.mxu1 %v7428_v62 }
 0xa29   :  { %5289 = vmatprep.subr.bf16.mxu0 %v7053_v59 }
 0xa2b   :  { %5450 = vmatpush1.bf16.msra.mxu1 %v7073_v30 }
 0xa2c   :  { %5290 = vmatpush1.bf16.msra.mxu0 %v7051_v63  ;;  %5451 = vmatprep.subr.bf16.mxu1 %v7428_v62 }
 0xa2d   :  { %5300 = vmatprep.subr.bf16.mxu0 %v7056_v1 }
 0xa2f   :  { %5452 = vmatpush1.bf16.msra.mxu1 %v7074_v49 }
 0xa30   :  { %5453 = vmatprep.subr.bf16.mxu1 %v7428_v62 }
 0xa33   :  { %5454 = vmatpush1.bf16.msra.mxu1 %v7075_v51 }
 0xa81   :  { %v6152_v44 = vpop.f32.mrb[36].mxu0 }
 0xa82   :  { %v6153_v4 = vpop.f32.mrb[37].mxu0 }
 0xa83   :  { %v6154_v50 = vadd.f32 %v6153_v4, %v6152_v44  ;;  %v6155_v5 = vpop.f32.mrb[38].mxu0 }
 0xa84   :  { %v6156_v24 = vpop.f32.mrb[39].mxu0 }
 0xa85   :  { %v4913_v14 = vadd.f32 %v6154_v50, %v4111_v12 }
 0xaa1   :  { %v6174_v11 = vpop.f32.mrb[40].mxu0 }
 0xaa2   :  { %v6175_v13 = vpop.f32.mrb[41].mxu0 }
 0xaa3   :  { %v6176_v15 = vadd.f32 %v6175_v13, %v6174_v11  ;;  %v6177_v18 = vpop.f32.mrb[42].mxu0 }
 0xaa4   :  { %v6178_v19 = vpop.f32.mrb[43].mxu0 }
 0xaa5   :  { %v4953_v20 = vadd.f32 %v6176_v15, %v4913_v14 }
 0xac1   :  { %v4992_v21 = vpop.f32.mrb[44].mxu0 }
 0xac2   :  { %v4993_v22 = vadd.f32 %v4992_v21, %v4953_v20  ;;  %v6287_v23 = vpop.f32.mrb[45].mxu0 }
 0xac3   :  { %v4995_v26 = vpop.f32.mrb[46].mxu0 }
 0xac4   :  { %v6288_v27 = vpop.f32.mrb[47].mxu0  ;;  %v5000_v46 = vmax.f32 %v4993_v22, 0.0 }
 0xac6   :  { %v5003_v48 = vpack.c.bf16 %v5000_v46, %v5000_v46 }
 0xae1   :  { %v4871_v32 = vpop.f32.mrb[28].mxu1 }
 0xae2   :  { %v6321_v33 = vadd.f32 %v4871_v32, %v4103_v28  ;;  %v4873_v47 = vpop.f32.mrb[29].mxu1 }
 0xae3   :  { %v6322_v38 = vadd.f32 %v4873_v47, %v4107_v29  ;;  %v4875_v17 = vpop.f32.mrb[30].mxu1 }
 0xae4   :  { %v4998_v34 = vmax.f32 %v6321_v33, 0.0  ;;  %v4876_v60 = vpop.f32.mrb[31].mxu1 }
 0xae5   :  { %v4999_v36 = vmax.f32 %v6322_v38, 0.0 }
 0xae6   :  { %v5001_v37 = vpack.c.bf16 %v4998_v34, %v4998_v34 }
 0xae7   :  { %v5002_v16 = vpack.c.bf16 %v4999_v36, %v4999_v36 }
 0xae9   :  { %5291 = vmatprep.mubr.bf16.mxu0 %v5002_v16 }
 0xaea   :  { %5292 = vmatmul.mubr.bf16.vlgmr.msra.gmra.mrb[48].mxu0 %v5001_v37 }
 0xaeb   :  { %5301 = vmatpush1.bf16.msra.mxu0 %v7054_v31  ;;  %5332 = vmatprep.mubr.bf16.mxu0 %v7428_v62 }
 0xaec   :  { %5302 = vmatprep.subr.bf16.mxu0 %v7059_v39 }
 0xaef   :  { %5303 = vmatpush1.bf16.msra.mxu0 %v7057_v40 }
 0xaf0   :  { %5304 = vmatprep.subr.bf16.mxu0 %v7062_v41 }
 0xaf3   :  { %5305 = vmatpush1.bf16.msra.mxu0 %v7060_v42 }
 0xaf4   :  { %5306 = vmatprep.subr.bf16.mxu0 %v7065_v43 }
 0xaf7   :  { %5307 = vmatpush1.bf16.msra.mxu0 %v7063_v45 }
 0xafa   :  { %6019 = vmatmul.mubr.msk.bf16.vlgmr.msra.gmra.mrb[48].mxu0 %vm1997_vm9, %v5003_v48 }
 0xbcd   :  { %v5334_v54 = vpop.f32.mrb[48].mxu0 }
 0xbce   :  { %v6323_v55 = vadd.f32 %v5334_v54, %v5049_v25  ;;  %v5336_v56 = vpop.f32.mrb[49].mxu0 }
 0xbcf   :  { %v6324_v57 = vadd.f32 %v5336_v56, %v5053_v53  ;;  %v5338_v35 = vpop.f32.mrb[50].mxu0 }
 0xbd0   :  { %v5341_v59 = vmax.f32 %v6323_v55, 0.0  ;;  %v5339_v63 = vpop.f32.mrb[51].mxu0 }
 0xbd1   :  { %v5342_v1 = vmax.f32 %v6324_v57, 0.0 }
 0xbd2   :  { %v5343_v62 = vpack.c.bf16 %v5341_v59, %v5341_v59 }
 0xbd3   :  { %v5344_v2 = vpack.c.bf16 %v5342_v1, %v5342_v1 }
 0xbd5   :  { %6031 = vmatprep.mubr.msk.bf16.mxu1 %vm1239_vm8, %v5344_v2 }
 0xbd6   :  { %5468 = vmatmul.mubr.bf16.vlgmr.msra.gmra.mrb[32].mxu1 %v5343_v62 }
 0xca9   :  { %v5469_v61 = vpop.f32.mrb[32].mxu1 }
 0xcaa   :  { %v5470_v0 = vadd.f32 %v6020_v3, %v5469_v61  ;;  %v5471_v58 = vpop.f32.mrb[33].mxu1 }
 0xcab   :  { %v5472_v44 = vpop.f32.mrb[34].mxu1 }
 0xcac   :  { %v5473_v4 = vpop.f32.mrb[35].mxu1  ;;  %5476 = vst.msk [vmem:[#allocation23] sm:$0x3] %vm5475_vm10, %v5470_v0 }
 0xcad   :  { %7381 = shalt.err (!%p7378_p10)
}
 0xcae   :  { %s9430_s28 = sld [smem:[#allocation41_spill]] }
 0xcb4   :  { %s7382_s3 = scalar_lea.hbm %s9430_s28, 32 }
 0xcb5   :  { %p7383_p11 = scmp.ne.s32.totalorder %s9430_s28, %s7382_s3  ;;  %p7386_p12 = scmp.lt.u32.totalorder %s7382_s3, %s9430_s28 }
 0xcb7   :  { %p7388_p13 = pnand %p7386_p12, %p7383_p11 }
 0xcb9   :  { %7391 = shalt.err (!%p7388_p13)
}
 0xcba   :  { %5486 = dma.vmem_to_hbm [thread:$0]  %s5484_s30, 32, %s9430_s28, [#allocation4]  }
 0xcbb   :  { %7406 = dma.done.wait [#allocation4], 32  }
 0xcbc   :  { %7407 = vsyncadd [#allocation4], 4294967264 }
 0xcbd   :  { %5490 = vsyncpa [#allocation3], 1 }
 0xcbe   :  { %5491 = vsyncpa [#allocation6], 1 }
 0xcbf   :  { %5492 = vsyncpa [#allocation9], 1 }
 0xcc0   :  { %5493 = vsyncpa [#allocation12], 1 }
 0xcc1   :  { %5494 = vsyncpa [#allocation15], 1 }
 0xcc2   :  { %5495 = vsyncpa [#allocation18], 1 }
 0xcc3   :  { %5496 = vsyncpa [#allocation21], 1 }
 0xcc4   :  { %5497 = vsyncpa [#allocation4], 1 }

</bundles_post_ra>
